<compile_context>
chip_gen: v7x
topology: tpu7x:2x2x1
jax: 0.10.0
libtpu: 0.0.40
codegen_flags: <defaults>
</compile_context>

<pallas_src>
import jax
import jax.numpy as jnp
import numpy as np
from jax import lax
from jax.experimental import pallas as pl
from jax.experimental.pallas import tpu as pltpu


# ----------------------------------------------------------------------------
# Fused kernel: one batch block (B images) per grid step.
# ----------------------------------------------------------------------------
def _net_kernel(x_ref, m1_ref, b1_ref, m2_ref, b2_ref,
                wfc1_ref, bfc1_ref, wfc2_ref, bfc2_ref, out_ref):
    f32 = jnp.float32
    bf16 = jnp.bfloat16
    B = out_ref.shape[1]                       # images per block

    # ---- conv1 (5x5, 1->20): one fused K=140 dot per output-row phase r ----
    # x_ref[0, r] : (6B, 140)  rows = u*B + img, cols = kh*28 + w_in
    # m1          : (140, 512) cols = s*256 + q*20 + c   (s = output-W parity)
    # W-pool (max over s halves, 128-lane aligned) applied immediately.
    m1 = m1_ref[...]
    wp = []
    for r in range(4):
        a = jnp.dot(x_ref[0, r], m1, preferred_element_type=f32)   # (6B, 512)
        wp.append(jnp.maximum(a[:, :256], a[:, 256:]))              # (6B, 256)

    # ---- H-pool + bias + ReLU (pool1 kept split by output-row parity) ------
    b1 = b1_ref[...]                                                # (1, 256)
    p1 = (jnp.maximum(jnp.maximum(wp[0], wp[1]) + b1, 0.0).astype(bf16),
          jnp.maximum(jnp.maximum(wp[2], wp[3]) + b1, 0.0).astype(bf16))
    # p1[par] : (6B, 256)  rows = u*B + img (pool1 row i1 = 2u + par),
    #                      cols = q*20 + c  (cols 240..255 are zero padding)

    # ---- conv2 (5x5, 20->50), split by output-row parity t2 -----------------
    mt = []
    for t2 in range(2):
        acc = None
        for kh2 in range(5):
            par = (t2 + kh2) % 2
            off = (t2 + kh2) // 2
            lhs = p1[par][off * B:(off + 4) * B, :]                 # (4B, 256)
            d = jnp.dot(lhs, m2_ref[kh2], preferred_element_type=f32)
            acc = d if acc is None else acc + d                     # (4B, 512)
        # W-pool right away: cols = s2*256 + j2*50 + co -> max over 256-halves
        mt.append(jnp.maximum(acc[:, :256], acc[:, 256:]))          # (4B, 256)

    # ---- pool2 H-step + bias + ReLU -----------------------------------------
    h2 = jnp.maximum(jnp.maximum(mt[0], mt[1]) + b2_ref[...], 0.0).astype(bf16)
    # h2 : (4B, 256)  rows = h*B + img, cols = j2*50 + co (cols 200..255 zero)

    # ---- fc1 (800 -> 500): 4 accumulated dots, one per pooled row h --------
    acc = None
    for h in range(4):
        d = jnp.dot(h2[h * B:(h + 1) * B, :], wfc1_ref[h],
                    preferred_element_type=f32)                      # (B, 512)
        acc = d if acc is None else acc + d
    h1 = jnp.maximum(acc + bfc1_ref[...], 0.0).astype(bf16)          # (B, 512)

    # ---- fc2 (500 -> 10, lane-padded to 128) + log_softmax (all f32) -------
    logits = jnp.dot(h1, wfc2_ref[...], preferred_element_type=f32) + bfc2_ref[...]
    zmax = jnp.max(logits, axis=-1, keepdims=True)
    z = logits - zmax
    lse = jnp.log(jnp.sum(jnp.exp(z), axis=-1, keepdims=True))
    out_ref[0] = (z - lse).astype(out_ref.dtype)                     # (B, 128)


# ----------------------------------------------------------------------------
# One-time parameter preparation (pure JAX, call once outside the hot path).
# ----------------------------------------------------------------------------
def prepare_params(params):
    f32 = jnp.float32
    bf16 = jnp.bfloat16
    w1 = params["conv1_w"].astype(f32)      # (20, 1, 5, 5)
    b1 = params["conv1_b"].astype(f32)
    w2 = params["conv2_w"].astype(f32)      # (50, 20, 5, 5)
    b2 = params["conv2_b"].astype(f32)
    fc1_w = params["fc1_w"].astype(f32)     # (500, 800) (out, in), in = c*16 + h*4 + w
    fc1_b = params["fc1_b"].astype(f32)
    fc2_w = params["fc2_w"].astype(f32)     # (10, 500)
    fc2_b = params["fc2_b"].astype(f32)

    # conv1 banded matrix, all 5 kh taps stacked along K:
    #   M1[kh*28 + w_in, s*256 + q*20 + c] = w1[c, 0, kh, w_in - 2q - s]
    win = np.arange(28)[:, None, None, None]
    s = np.arange(2)[None, :, None, None]
    q = np.arange(12)[None, None, :, None]
    kw = np.arange(5)[None, None, None, :]
    sel1 = (win == 2 * q + s + kw).astype(np.float32)                 # (28,2,12,5)
    m1 = jnp.einsum("Wsqk,chk->hWsqc", jnp.asarray(sel1), w1[:, 0],
                    precision="highest")                              # (5,28,2,12,20)
    m1 = m1.reshape(5, 28, 2, 240)
    m1 = jnp.pad(m1, ((0, 0), (0, 0), (0, 0), (0, 16)))               # 240 -> 256
    m1 = m1.reshape(140, 512).astype(bf16)

    # conv2 banded matrices (one per kh2 tap):
    #   M2[kh2][q*20 + c, s2*256 + j2*50 + co] = w2[co, c, kh2, q - 2j2 - s2]
    qq = np.arange(12)[:, None, None, None]
    s2 = np.arange(2)[None, :, None, None]
    j2 = np.arange(4)[None, None, :, None]
    kw2 = np.arange(5)[None, None, None, :]
    sel2 = (qq == 2 * j2 + s2 + kw2).astype(np.float32)               # (12,2,4,5)
    m2 = jnp.einsum("qsjk,ochk->hqcsjo", jnp.asarray(sel2), w2,
                    precision="highest")                              # (5,12,20,2,4,50)
    m2 = m2.reshape(5, 240, 2, 200)
    m2 = jnp.pad(m2, ((0, 0), (0, 16), (0, 0), (0, 56)))              # rows/cols -> 256
    m2 = m2.reshape(5, 256, 512).astype(bf16)

    # fc1 regrouped per pooled output row h:  Wfc1[h][j2*50 + co, o]
    wfc1 = fc1_w.reshape(500, 50, 4, 4).transpose(2, 3, 1, 0)         # (h, j2, co, o)
    wfc1 = wfc1.reshape(4, 200, 500)
    wfc1 = jnp.pad(wfc1, ((0, 0), (0, 56), (0, 12))).astype(bf16)     # (4, 256, 512)

    wfc2 = jnp.pad(fc2_w.T, ((0, 12), (0, 118))).astype(bf16)         # (512, 128)

    b1p = jnp.concatenate([jnp.tile(b1, 12), jnp.zeros((16,), f32)]).reshape(1, 256)
    b2p = jnp.concatenate([jnp.tile(b2, 4), jnp.zeros((56,), f32)]).reshape(1, 256)
    bfc1p = jnp.pad(fc1_b, (0, 12)).reshape(1, 512)
    # padded fc2 columns get a huge negative bias so they never affect the softmax
    bfc2p = jnp.concatenate([fc2_b, jnp.full((118,), -1e30, f32)]).reshape(1, 128)

    return {"M1": m1, "b1": b1p, "M2": m2, "b2": b2p,
            "Wfc1": wfc1, "fc1_b": bfc1p, "Wfc2": wfc2, "fc2_b": bfc2p}


# ----------------------------------------------------------------------------
# Forward: input im2row/layout prep (pure XLA) + ONE pallas_call.
# ----------------------------------------------------------------------------
def _cdiv(a, b):
    return -(-a // b)


def _prep_inputs(x, bb):
    """(N,1,28,28) f32 -> (G, 4, 6*bb, 140) bf16 im2row slab (layout only)."""
    n = x.shape[0]
    g = _cdiv(n, bb)
    npad = g * bb
    xb = x[:, 0].astype(jnp.bfloat16)                        # (N, 28, 28)
    if npad != n:
        xb = jnp.pad(xb, ((0, npad - n), (0, 0), (0, 0)))    # zero-pad partial block
    # rows[n, r, u, kh, :] = x[n, 4u + r + kh, :]   (conv1 output row H = 4u + r)
    r = np.arange(4)[:, None, None]
    u = np.arange(6)[None, :, None]
    kh = np.arange(5)[None, None, :]
    hidx = 4 * u + r + kh                                     # (4, 6, 5), values 0..27
    rows = xb[:, hidx, :]                                     # (Npad, 4, 6, 5, 28)
    rows = rows.reshape(npad, 4, 6, 140)
    rows = rows.reshape(g, bb, 4, 6, 140).transpose(0, 2, 3, 1, 4)  # (G,4,6,bb,140)
    return rows.reshape(g, 4, 6 * bb, 140), g, npad


def net_forward(x, kp, *, batch_block=16):
    n = x.shape[0]
    bb = batch_block
    if n > 8 and _cdiv(n, bb) < 2:
        bb = 8      # keep >=2 grid steps so both v7x TensorCores get work
    x_prep, g, npad = _prep_inputs(x, bb)

    out = pl.pallas_call(
        _net_kernel,
        out_shape=jax.ShapeDtypeStruct((g, bb, 128), jnp.float32),
        grid=(g,),
        in_specs=[
            pl.BlockSpec((1, 4, 6 * bb, 140), lambda i: (i, 0, 0, 0)),  # im2row x block
            pl.BlockSpec((140, 512), lambda i: (0, 0)),                 # M1   (resident)
            pl.BlockSpec((1, 256), lambda i: (0, 0)),                   # b1
            pl.BlockSpec((5, 256, 512), lambda i: (0, 0, 0)),           # M2
            pl.BlockSpec((1, 256), lambda i: (0, 0)),                   # b2
            pl.BlockSpec((4, 256, 512), lambda i: (0, 0, 0)),           # Wfc1
            pl.BlockSpec((1, 512), lambda i: (0, 0)),                   # fc1_b
            pl.BlockSpec((512, 128), lambda i: (0, 0)),                 # Wfc2
            pl.BlockSpec((1, 128), lambda i: (0, 0)),                   # fc2_b
        ],
        out_specs=pl.BlockSpec((1, bb, 128), lambda i: (i, 0, 0)),
        compiler_params=pltpu.CompilerParams(
            dimension_semantics=("parallel",)),
    )(x_prep, kp["M1"], kp["b1"], kp["M2"], kp["b2"],
      kp["Wfc1"], kp["fc1_b"], kp["Wfc2"], kp["fc2_b"])

    return out.reshape(npad, 128)[:n, :10]


# ----------------------------------------------------------------------------
# Pure-JAX reference (PyTorch semantics) + param init.
# ----------------------------------------------------------------------------
def net_reference(x, params):
    def conv(x, w, b):
        y = lax.conv_general_dilated(x, w, (1, 1), "VALID",
                                     dimension_numbers=("NCHW", "OIHW", "NCHW"))
        return jax.nn.relu(y + b[None, :, None, None])

    def pool(y):
        n, c, h, w = y.shape
        return y.reshape(n, c, h // 2, 2, w // 2, 2).max(axis=(3, 5))

    y = pool(conv(x, params["conv1_w"], params["conv1_b"]))
    y = pool(conv(y, params["conv2_w"], params["conv2_b"]))
    y = y.reshape(y.shape[0], -1)
    y = jax.nn.relu(y @ params["fc1_w"].T + params["fc1_b"])
    z = y @ params["fc2_w"].T + params["fc2_b"]
    return jax.nn.log_softmax(z, axis=-1)


def init_params(key):
    ks = jax.random.split(key, 8)

    def u(k, shape, fan_in):
        bound = 1.0 / jnp.sqrt(jnp.float32(fan_in))
        return jax.random.uniform(k, shape, jnp.float32, -bound, bound)

    return {
        "conv1_w": u(ks[0], (20, 1, 5, 5), 1 * 5 * 5),
        "conv1_b": u(ks[1], (20,), 1 * 5 * 5),
        "conv2_w": u(ks[2], (50, 20, 5, 5), 20 * 5 * 5),
        "conv2_b": u(ks[3], (50,), 20 * 5 * 5),
        "fc1_w":   u(ks[4], (500, 800), 800),   # PyTorch (out, in) layout
        "fc1_b":   u(ks[5], (500,), 800),
        "fc2_w":   u(ks[6], (10, 500), 500),
        "fc2_b":   u(ks[7], (10,), 500),
    }


if __name__ == "__main__":
    key = jax.random.PRNGKey(0)
    pkey, xkey = jax.random.split(key)
    params = init_params(pkey)
    # MNIST-shaped input (28x28 is required by the 4*4*50 flatten).  50 images
    # -> padded to 4 batch blocks of 16: exercises the partial-block zero
    # padding and gives the grid >=2 parallel steps (v7x megacore).
    x = jax.random.normal(xkey, (50, 1, 28, 28), jnp.float32)

    kparams = prepare_params(params)              # one-time weight prep
    out = jax.jit(net_forward)(x, kparams)
    out = jax.block_until_ready(out)

    assert out.shape == (50, 10)
    assert bool(jnp.all(jnp.isfinite(out)))
    # log_softmax rows must exponentiate to ~1 (computed in f32)
    assert jnp.allclose(jnp.exp(out).sum(axis=1), 1.0, atol=1e-4)
    # match the f32 reference (bf16 MXU inputs, f32 accumulation)
    ref = net_reference(x, params)
    err = float(jnp.max(jnp.abs(out - ref)))
    assert jnp.allclose(out, ref, atol=2e-1), err
    print("KERNEL_OK")
</pallas_src>

<mosaic_0001>
module attributes {stable_mosaic.version = 11 : i64} {
  func.func @_net_kernel(%arg0: i32, %arg1: memref<1x4x96x140xbf16, #tpu.memory_space<vmem>>, %arg2: memref<140x512xbf16, #tpu.memory_space<vmem>>, %arg3: memref<1x256xf32, #tpu.memory_space<vmem>>, %arg4: memref<5x256x512xbf16, #tpu.memory_space<vmem>>, %arg5: memref<1x256xf32, #tpu.memory_space<vmem>>, %arg6: memref<4x256x512xbf16, #tpu.memory_space<vmem>>, %arg7: memref<1x512xf32, #tpu.memory_space<vmem>>, %arg8: memref<512x128xbf16, #tpu.memory_space<vmem>>, %arg9: memref<1x128xf32, #tpu.memory_space<vmem>>, %arg10: memref<1x16x128xf32, #tpu.memory_space<vmem>>) attributes {dimension_semantics = [#tpu.dimension_semantics<parallel>], iteration_bounds = array<i64: 4>, scalar_prefetch = 0 : i64, scratch_operands = 0 : i64, tpu.core_type = #tpu.core_type<tc>, window_params = [{transform_indices = @transform_0, window_bounds = array<i64: 1, 4, 96, 140>}, {pipeline_mode = #tpu.pipeline_mode<synchronous>, transform_indices = @transform_1, window_bounds = array<i64: 140, 512>}, {pipeline_mode = #tpu.pipeline_mode<synchronous>, transform_indices = @transform_2, window_bounds = array<i64: 1, 256>}, {pipeline_mode = #tpu.pipeline_mode<synchronous>, transform_indices = @transform_3, window_bounds = array<i64: 5, 256, 512>}, {pipeline_mode = #tpu.pipeline_mode<synchronous>, transform_indices = @transform_4, window_bounds = array<i64: 1, 256>}, {pipeline_mode = #tpu.pipeline_mode<synchronous>, transform_indices = @transform_5, window_bounds = array<i64: 4, 256, 512>}, {pipeline_mode = #tpu.pipeline_mode<synchronous>, transform_indices = @transform_6, window_bounds = array<i64: 1, 512>}, {pipeline_mode = #tpu.pipeline_mode<synchronous>, transform_indices = @transform_7, window_bounds = array<i64: 512, 128>}, {pipeline_mode = #tpu.pipeline_mode<synchronous>, transform_indices = @transform_8, window_bounds = array<i64: 1, 128>}, {transform_indices = @transform_9, window_bounds = array<i64: 1, 16, 128>}]} {
    %c0 = arith.constant 0 : index
    %c0_0 = arith.constant 0 : index
    %0 = vector.load %arg2[%c0, %c0_0] : memref<140x512xbf16, #tpu.memory_space<vmem>>, vector<140x512xbf16>
    %c0_1 = arith.constant 0 : index
    %c0_2 = arith.constant 0 : index
    %c0_3 = arith.constant 0 : index
    %c0_4 = arith.constant 0 : index
    %1 = vector.load %arg1[%c0_1, %c0_2, %c0_3, %c0_4] : memref<1x4x96x140xbf16, #tpu.memory_space<vmem>>, vector<1x1x96x140xbf16>
    %2 = vector.shape_cast %1 : vector<1x1x96x140xbf16> to vector<96x140xbf16>
    %cst = arith.constant dense<0.000000e+00> : vector<96x512xf32>
    %3 = tpu.matmul %2, %0, %cst {dimension_numbers = #tpu.dot_dimension_numbers<[1], [0], [0], [1], [0, 0, 1, 1], [], []>} : vector<96x140xbf16>, vector<140x512xbf16>, vector<96x512xf32> -> vector<96x512xf32>
    %4 = vector.extract_strided_slice %3 {offsets = [0, 0], sizes = [96, 256], strides = [1, 1]} : vector<96x512xf32> to vector<96x256xf32>
    %5 = vector.extract_strided_slice %3 {offsets = [0, 256], sizes = [96, 256], strides = [1, 1]} : vector<96x512xf32> to vector<96x256xf32>
    %6 = arith.maximumf %4, %5 : vector<96x256xf32>
    %c0_5 = arith.constant 0 : index
    %c1 = arith.constant 1 : index
    %c0_6 = arith.constant 0 : index
    %c0_7 = arith.constant 0 : index
    %7 = vector.load %arg1[%c0_5, %c1, %c0_6, %c0_7] : memref<1x4x96x140xbf16, #tpu.memory_space<vmem>>, vector<1x1x96x140xbf16>
    %8 = vector.shape_cast %7 : vector<1x1x96x140xbf16> to vector<96x140xbf16>
    %cst_8 = arith.constant dense<0.000000e+00> : vector<96x512xf32>
    %9 = tpu.matmul %8, %0, %cst_8 {dimension_numbers = #tpu.dot_dimension_numbers<[1], [0], [0], [1], [0, 0, 1, 1], [], []>} : vector<96x140xbf16>, vector<140x512xbf16>, vector<96x512xf32> -> vector<96x512xf32>
    %10 = vector.extract_strided_slice %9 {offsets = [0, 0], sizes = [96, 256], strides = [1, 1]} : vector<96x512xf32> to vector<96x256xf32>
    %11 = vector.extract_strided_slice %9 {offsets = [0, 256], sizes = [96, 256], strides = [1, 1]} : vector<96x512xf32> to vector<96x256xf32>
    %12 = arith.maximumf %10, %11 : vector<96x256xf32>
    %c0_9 = arith.constant 0 : index
    %c2 = arith.constant 2 : index
    %c0_10 = arith.constant 0 : index
    %c0_11 = arith.constant 0 : index
    %13 = vector.load %arg1[%c0_9, %c2, %c0_10, %c0_11] : memref<1x4x96x140xbf16, #tpu.memory_space<vmem>>, vector<1x1x96x140xbf16>
    %14 = vector.shape_cast %13 : vector<1x1x96x140xbf16> to vector<96x140xbf16>
    %cst_12 = arith.constant dense<0.000000e+00> : vector<96x512xf32>
    %15 = tpu.matmul %14, %0, %cst_12 {dimension_numbers = #tpu.dot_dimension_numbers<[1], [0], [0], [1], [0, 0, 1, 1], [], []>} : vector<96x140xbf16>, vector<140x512xbf16>, vector<96x512xf32> -> vector<96x512xf32>
    %16 = vector.extract_strided_slice %15 {offsets = [0, 0], sizes = [96, 256], strides = [1, 1]} : vector<96x512xf32> to vector<96x256xf32>
    %17 = vector.extract_strided_slice %15 {offsets = [0, 256], sizes = [96, 256], strides = [1, 1]} : vector<96x512xf32> to vector<96x256xf32>
    %18 = arith.maximumf %16, %17 : vector<96x256xf32>
    %c0_13 = arith.constant 0 : index
    %c3 = arith.constant 3 : index
    %c0_14 = arith.constant 0 : index
    %c0_15 = arith.constant 0 : index
    %19 = vector.load %arg1[%c0_13, %c3, %c0_14, %c0_15] : memref<1x4x96x140xbf16, #tpu.memory_space<vmem>>, vector<1x1x96x140xbf16>
    %20 = vector.shape_cast %19 : vector<1x1x96x140xbf16> to vector<96x140xbf16>
    %cst_16 = arith.constant dense<0.000000e+00> : vector<96x512xf32>
    %21 = tpu.matmul %20, %0, %cst_16 {dimension_numbers = #tpu.dot_dimension_numbers<[1], [0], [0], [1], [0, 0, 1, 1], [], []>} : vector<96x140xbf16>, vector<140x512xbf16>, vector<96x512xf32> -> vector<96x512xf32>
    %22 = vector.extract_strided_slice %21 {offsets = [0, 0], sizes = [96, 256], strides = [1, 1]} : vector<96x512xf32> to vector<96x256xf32>
    %23 = vector.extract_strided_slice %21 {offsets = [0, 256], sizes = [96, 256], strides = [1, 1]} : vector<96x512xf32> to vector<96x256xf32>
    %24 = arith.maximumf %22, %23 : vector<96x256xf32>
    %c0_17 = arith.constant 0 : index
    %c0_18 = arith.constant 0 : index
    %25 = vector.load %arg3[%c0_17, %c0_18] : memref<1x256xf32, #tpu.memory_space<vmem>>, vector<1x256xf32>
    %26 = arith.maximumf %6, %12 : vector<96x256xf32>
    %27 = vector.broadcast %25 : vector<1x256xf32> to vector<96x256xf32>
    %28 = arith.addf %26, %27 : vector<96x256xf32>
    %cst_19 = arith.constant 0.000000e+00 : f32
    %29 = vector.broadcast %cst_19 : f32 to vector<96x256xf32>
    %30 = arith.maximumf %28, %29 : vector<96x256xf32>
    %31 = arith.truncf %30 : vector<96x256xf32> to vector<96x256xbf16>
    %32 = arith.maximumf %18, %24 : vector<96x256xf32>
    %33 = vector.broadcast %25 : vector<1x256xf32> to vector<96x256xf32>
    %34 = arith.addf %32, %33 : vector<96x256xf32>
    %cst_20 = arith.constant 0.000000e+00 : f32
    %35 = vector.broadcast %cst_20 : f32 to vector<96x256xf32>
    %36 = arith.maximumf %34, %35 : vector<96x256xf32>
    %37 = arith.truncf %36 : vector<96x256xf32> to vector<96x256xbf16>
    %38 = vector.extract_strided_slice %31 {offsets = [0, 0], sizes = [64, 256], strides = [1, 1]} : vector<96x256xbf16> to vector<64x256xbf16>
    %c0_21 = arith.constant 0 : index
    %c0_22 = arith.constant 0 : index
    %c0_23 = arith.constant 0 : index
    %39 = vector.load %arg4[%c0_21, %c0_22, %c0_23] : memref<5x256x512xbf16, #tpu.memory_space<vmem>>, vector<1x256x512xbf16>
    %40 = vector.shape_cast %39 : vector<1x256x512xbf16> to vector<256x512xbf16>
    %cst_24 = arith.constant dense<0.000000e+00> : vector<64x512xf32>
    %41 = tpu.matmul %38, %40, %cst_24 {dimension_numbers = #tpu.dot_dimension_numbers<[1], [0], [0], [1], [0, 0, 1, 1], [], []>} : vector<64x256xbf16>, vector<256x512xbf16>, vector<64x512xf32> -> vector<64x512xf32>
    %42 = vector.extract_strided_slice %37 {offsets = [0, 0], sizes = [64, 256], strides = [1, 1]} : vector<96x256xbf16> to vector<64x256xbf16>
    %c1_25 = arith.constant 1 : index
    %c0_26 = arith.constant 0 : index
    %c0_27 = arith.constant 0 : index
    %43 = vector.load %arg4[%c1_25, %c0_26, %c0_27] : memref<5x256x512xbf16, #tpu.memory_space<vmem>>, vector<1x256x512xbf16>
    %44 = vector.shape_cast %43 : vector<1x256x512xbf16> to vector<256x512xbf16>
    %cst_28 = arith.constant dense<0.000000e+00> : vector<64x512xf32>
    %45 = tpu.matmul %42, %44, %cst_28 {dimension_numbers = #tpu.dot_dimension_numbers<[1], [0], [0], [1], [0, 0, 1, 1], [], []>} : vector<64x256xbf16>, vector<256x512xbf16>, vector<64x512xf32> -> vector<64x512xf32>
    %46 = arith.addf %41, %45 : vector<64x512xf32>
    %47 = vector.extract_strided_slice %31 {offsets = [16, 0], sizes = [64, 256], strides = [1, 1]} : vector<96x256xbf16> to vector<64x256xbf16>
    %c2_29 = arith.constant 2 : index
    %c0_30 = arith.constant 0 : index
    %c0_31 = arith.constant 0 : index
    %48 = vector.load %arg4[%c2_29, %c0_30, %c0_31] : memref<5x256x512xbf16, #tpu.memory_space<vmem>>, vector<1x256x512xbf16>
    %49 = vector.shape_cast %48 : vector<1x256x512xbf16> to vector<256x512xbf16>
    %cst_32 = arith.constant dense<0.000000e+00> : vector<64x512xf32>
    %50 = tpu.matmul %47, %49, %cst_32 {dimension_numbers = #tpu.dot_dimension_numbers<[1], [0], [0], [1], [0, 0, 1, 1], [], []>} : vector<64x256xbf16>, vector<256x512xbf16>, vector<64x512xf32> -> vector<64x512xf32>
    %51 = arith.addf %46, %50 : vector<64x512xf32>
    %52 = vector.extract_strided_slice %37 {offsets = [16, 0], sizes = [64, 256], strides = [1, 1]} : vector<96x256xbf16> to vector<64x256xbf16>
    %c3_33 = arith.constant 3 : index
    %c0_34 = arith.constant 0 : index
    %c0_35 = arith.constant 0 : index
    %53 = vector.load %arg4[%c3_33, %c0_34, %c0_35] : memref<5x256x512xbf16, #tpu.memory_space<vmem>>, vector<1x256x512xbf16>
    %54 = vector.shape_cast %53 : vector<1x256x512xbf16> to vector<256x512xbf16>
    %cst_36 = arith.constant dense<0.000000e+00> : vector<64x512xf32>
    %55 = tpu.matmul %52, %54, %cst_36 {dimension_numbers = #tpu.dot_dimension_numbers<[1], [0], [0], [1], [0, 0, 1, 1], [], []>} : vector<64x256xbf16>, vector<256x512xbf16>, vector<64x512xf32> -> vector<64x512xf32>
    %56 = arith.addf %51, %55 : vector<64x512xf32>
    %57 = vector.extract_strided_slice %31 {offsets = [32, 0], sizes = [64, 256], strides = [1, 1]} : vector<96x256xbf16> to vector<64x256xbf16>
    %c4 = arith.constant 4 : index
    %c0_37 = arith.constant 0 : index
    %c0_38 = arith.constant 0 : index
    %58 = vector.load %arg4[%c4, %c0_37, %c0_38] : memref<5x256x512xbf16, #tpu.memory_space<vmem>>, vector<1x256x512xbf16>
    %59 = vector.shape_cast %58 : vector<1x256x512xbf16> to vector<256x512xbf16>
    %cst_39 = arith.constant dense<0.000000e+00> : vector<64x512xf32>
    %60 = tpu.matmul %57, %59, %cst_39 {dimension_numbers = #tpu.dot_dimension_numbers<[1], [0], [0], [1], [0, 0, 1, 1], [], []>} : vector<64x256xbf16>, vector<256x512xbf16>, vector<64x512xf32> -> vector<64x512xf32>
    %61 = arith.addf %56, %60 : vector<64x512xf32>
    %62 = vector.extract_strided_slice %61 {offsets = [0, 0], sizes = [64, 256], strides = [1, 1]} : vector<64x512xf32> to vector<64x256xf32>
    %63 = vector.extract_strided_slice %61 {offsets = [0, 256], sizes = [64, 256], strides = [1, 1]} : vector<64x512xf32> to vector<64x256xf32>
    %64 = arith.maximumf %62, %63 : vector<64x256xf32>
    %65 = vector.extract_strided_slice %37 {offsets = [0, 0], sizes = [64, 256], strides = [1, 1]} : vector<96x256xbf16> to vector<64x256xbf16>
    %c0_40 = arith.constant 0 : index
    %c0_41 = arith.constant 0 : index
    %c0_42 = arith.constant 0 : index
    %66 = vector.load %arg4[%c0_40, %c0_41, %c0_42] : memref<5x256x512xbf16, #tpu.memory_space<vmem>>, vector<1x256x512xbf16>
    %67 = vector.shape_cast %66 : vector<1x256x512xbf16> to vector<256x512xbf16>
    %cst_43 = arith.constant dense<0.000000e+00> : vector<64x512xf32>
    %68 = tpu.matmul %65, %67, %cst_43 {dimension_numbers = #tpu.dot_dimension_numbers<[1], [0], [0], [1], [0, 0, 1, 1], [], []>} : vector<64x256xbf16>, vector<256x512xbf16>, vector<64x512xf32> -> vector<64x512xf32>
    %69 = vector.extract_strided_slice %31 {offsets = [16, 0], sizes = [64, 256], strides = [1, 1]} : vector<96x256xbf16> to vector<64x256xbf16>
    %c1_44 = arith.constant 1 : index
    %c0_45 = arith.constant 0 : index
    %c0_46 = arith.constant 0 : index
    %70 = vector.load %arg4[%c1_44, %c0_45, %c0_46] : memref<5x256x512xbf16, #tpu.memory_space<vmem>>, vector<1x256x512xbf16>
    %71 = vector.shape_cast %70 : vector<1x256x512xbf16> to vector<256x512xbf16>
    %cst_47 = arith.constant dense<0.000000e+00> : vector<64x512xf32>
    %72 = tpu.matmul %69, %71, %cst_47 {dimension_numbers = #tpu.dot_dimension_numbers<[1], [0], [0], [1], [0, 0, 1, 1], [], []>} : vector<64x256xbf16>, vector<256x512xbf16>, vector<64x512xf32> -> vector<64x512xf32>
    %73 = arith.addf %68, %72 : vector<64x512xf32>
    %74 = vector.extract_strided_slice %37 {offsets = [16, 0], sizes = [64, 256], strides = [1, 1]} : vector<96x256xbf16> to vector<64x256xbf16>
    %c2_48 = arith.constant 2 : index
    %c0_49 = arith.constant 0 : index
    %c0_50 = arith.constant 0 : index
    %75 = vector.load %arg4[%c2_48, %c0_49, %c0_50] : memref<5x256x512xbf16, #tpu.memory_space<vmem>>, vector<1x256x512xbf16>
    %76 = vector.shape_cast %75 : vector<1x256x512xbf16> to vector<256x512xbf16>
    %cst_51 = arith.constant dense<0.000000e+00> : vector<64x512xf32>
    %77 = tpu.matmul %74, %76, %cst_51 {dimension_numbers = #tpu.dot_dimension_numbers<[1], [0], [0], [1], [0, 0, 1, 1], [], []>} : vector<64x256xbf16>, vector<256x512xbf16>, vector<64x512xf32> -> vector<64x512xf32>
    %78 = arith.addf %73, %77 : vector<64x512xf32>
    %79 = vector.extract_strided_slice %31 {offsets = [32, 0], sizes = [64, 256], strides = [1, 1]} : vector<96x256xbf16> to vector<64x256xbf16>
    %c3_52 = arith.constant 3 : index
    %c0_53 = arith.constant 0 : index
    %c0_54 = arith.constant 0 : index
    %80 = vector.load %arg4[%c3_52, %c0_53, %c0_54] : memref<5x256x512xbf16, #tpu.memory_space<vmem>>, vector<1x256x512xbf16>
    %81 = vector.shape_cast %80 : vector<1x256x512xbf16> to vector<256x512xbf16>
    %cst_55 = arith.constant dense<0.000000e+00> : vector<64x512xf32>
    %82 = tpu.matmul %79, %81, %cst_55 {dimension_numbers = #tpu.dot_dimension_numbers<[1], [0], [0], [1], [0, 0, 1, 1], [], []>} : vector<64x256xbf16>, vector<256x512xbf16>, vector<64x512xf32> -> vector<64x512xf32>
    %83 = arith.addf %78, %82 : vector<64x512xf32>
    %84 = vector.extract_strided_slice %37 {offsets = [32, 0], sizes = [64, 256], strides = [1, 1]} : vector<96x256xbf16> to vector<64x256xbf16>
    %c4_56 = arith.constant 4 : index
    %c0_57 = arith.constant 0 : index
    %c0_58 = arith.constant 0 : index
    %85 = vector.load %arg4[%c4_56, %c0_57, %c0_58] : memref<5x256x512xbf16, #tpu.memory_space<vmem>>, vector<1x256x512xbf16>
    %86 = vector.shape_cast %85 : vector<1x256x512xbf16> to vector<256x512xbf16>
    %cst_59 = arith.constant dense<0.000000e+00> : vector<64x512xf32>
    %87 = tpu.matmul %84, %86, %cst_59 {dimension_numbers = #tpu.dot_dimension_numbers<[1], [0], [0], [1], [0, 0, 1, 1], [], []>} : vector<64x256xbf16>, vector<256x512xbf16>, vector<64x512xf32> -> vector<64x512xf32>
    %88 = arith.addf %83, %87 : vector<64x512xf32>
    %89 = vector.extract_strided_slice %88 {offsets = [0, 0], sizes = [64, 256], strides = [1, 1]} : vector<64x512xf32> to vector<64x256xf32>
    %90 = vector.extract_strided_slice %88 {offsets = [0, 256], sizes = [64, 256], strides = [1, 1]} : vector<64x512xf32> to vector<64x256xf32>
    %91 = arith.maximumf %89, %90 : vector<64x256xf32>
    %92 = arith.maximumf %64, %91 : vector<64x256xf32>
    %c0_60 = arith.constant 0 : index
    %c0_61 = arith.constant 0 : index
    %93 = vector.load %arg5[%c0_60, %c0_61] : memref<1x256xf32, #tpu.memory_space<vmem>>, vector<1x256xf32>
    %94 = vector.broadcast %93 : vector<1x256xf32> to vector<64x256xf32>
    %95 = arith.addf %92, %94 : vector<64x256xf32>
    %cst_62 = arith.constant 0.000000e+00 : f32
    %96 = vector.broadcast %cst_62 : f32 to vector<64x256xf32>
    %97 = arith.maximumf %95, %96 : vector<64x256xf32>
    %98 = arith.truncf %97 : vector<64x256xf32> to vector<64x256xbf16>
    %99 = vector.extract_strided_slice %98 {offsets = [0, 0], sizes = [16, 256], strides = [1, 1]} : vector<64x256xbf16> to vector<16x256xbf16>
    %c0_63 = arith.constant 0 : index
    %c0_64 = arith.constant 0 : index
    %c0_65 = arith.constant 0 : index
    %100 = vector.load %arg6[%c0_63, %c0_64, %c0_65] : memref<4x256x512xbf16, #tpu.memory_space<vmem>>, vector<1x256x512xbf16>
    %101 = vector.shape_cast %100 : vector<1x256x512xbf16> to vector<256x512xbf16>
    %cst_66 = arith.constant dense<0.000000e+00> : vector<16x512xf32>
    %102 = tpu.matmul %99, %101, %cst_66 {dimension_numbers = #tpu.dot_dimension_numbers<[1], [0], [0], [1], [0, 0, 1, 1], [], []>} : vector<16x256xbf16>, vector<256x512xbf16>, vector<16x512xf32> -> vector<16x512xf32>
    %103 = vector.extract_strided_slice %98 {offsets = [16, 0], sizes = [16, 256], strides = [1, 1]} : vector<64x256xbf16> to vector<16x256xbf16>
    %c1_67 = arith.constant 1 : index
    %c0_68 = arith.constant 0 : index
    %c0_69 = arith.constant 0 : index
    %104 = vector.load %arg6[%c1_67, %c0_68, %c0_69] : memref<4x256x512xbf16, #tpu.memory_space<vmem>>, vector<1x256x512xbf16>
    %105 = vector.shape_cast %104 : vector<1x256x512xbf16> to vector<256x512xbf16>
    %cst_70 = arith.constant dense<0.000000e+00> : vector<16x512xf32>
    %106 = tpu.matmul %103, %105, %cst_70 {dimension_numbers = #tpu.dot_dimension_numbers<[1], [0], [0], [1], [0, 0, 1, 1], [], []>} : vector<16x256xbf16>, vector<256x512xbf16>, vector<16x512xf32> -> vector<16x512xf32>
    %107 = arith.addf %102, %106 : vector<16x512xf32>
    %108 = vector.extract_strided_slice %98 {offsets = [32, 0], sizes = [16, 256], strides = [1, 1]} : vector<64x256xbf16> to vector<16x256xbf16>
    %c2_71 = arith.constant 2 : index
    %c0_72 = arith.constant 0 : index
    %c0_73 = arith.constant 0 : index
    %109 = vector.load %arg6[%c2_71, %c0_72, %c0_73] : memref<4x256x512xbf16, #tpu.memory_space<vmem>>, vector<1x256x512xbf16>
    %110 = vector.shape_cast %109 : vector<1x256x512xbf16> to vector<256x512xbf16>
    %cst_74 = arith.constant dense<0.000000e+00> : vector<16x512xf32>
    %111 = tpu.matmul %108, %110, %cst_74 {dimension_numbers = #tpu.dot_dimension_numbers<[1], [0], [0], [1], [0, 0, 1, 1], [], []>} : vector<16x256xbf16>, vector<256x512xbf16>, vector<16x512xf32> -> vector<16x512xf32>
    %112 = arith.addf %107, %111 : vector<16x512xf32>
    %113 = vector.extract_strided_slice %98 {offsets = [48, 0], sizes = [16, 256], strides = [1, 1]} : vector<64x256xbf16> to vector<16x256xbf16>
    %c3_75 = arith.constant 3 : index
    %c0_76 = arith.constant 0 : index
    %c0_77 = arith.constant 0 : index
    %114 = vector.load %arg6[%c3_75, %c0_76, %c0_77] : memref<4x256x512xbf16, #tpu.memory_space<vmem>>, vector<1x256x512xbf16>
    %115 = vector.shape_cast %114 : vector<1x256x512xbf16> to vector<256x512xbf16>
    %cst_78 = arith.constant dense<0.000000e+00> : vector<16x512xf32>
    %116 = tpu.matmul %113, %115, %cst_78 {dimension_numbers = #tpu.dot_dimension_numbers<[1], [0], [0], [1], [0, 0, 1, 1], [], []>} : vector<16x256xbf16>, vector<256x512xbf16>, vector<16x512xf32> -> vector<16x512xf32>
    %117 = arith.addf %112, %116 : vector<16x512xf32>
    %c0_79 = arith.constant 0 : index
    %c0_80 = arith.constant 0 : index
    %118 = vector.load %arg7[%c0_79, %c0_80] : memref<1x512xf32, #tpu.memory_space<vmem>>, vector<1x512xf32>
    %119 = vector.broadcast %118 : vector<1x512xf32> to vector<16x512xf32>
    %120 = arith.addf %117, %119 : vector<16x512xf32>
    %cst_81 = arith.constant 0.000000e+00 : f32
    %121 = vector.broadcast %cst_81 : f32 to vector<16x512xf32>
    %122 = arith.maximumf %120, %121 : vector<16x512xf32>
    %123 = arith.truncf %122 : vector<16x512xf32> to vector<16x512xbf16>
    %c0_82 = arith.constant 0 : index
    %c0_83 = arith.constant 0 : index
    %124 = vector.load %arg8[%c0_82, %c0_83] : memref<512x128xbf16, #tpu.memory_space<vmem>>, vector<512x128xbf16>
    %cst_84 = arith.constant dense<0.000000e+00> : vector<16x128xf32>
    %125 = tpu.matmul %123, %124, %cst_84 {dimension_numbers = #tpu.dot_dimension_numbers<[1], [0], [0], [1], [0, 0, 1, 1], [], []>} : vector<16x512xbf16>, vector<512x128xbf16>, vector<16x128xf32> -> vector<16x128xf32>
    %c0_85 = arith.constant 0 : index
    %c0_86 = arith.constant 0 : index
    %126 = vector.load %arg9[%c0_85, %c0_86] : memref<1x128xf32, #tpu.memory_space<vmem>>, vector<1x128xf32>
    %127 = vector.broadcast %126 : vector<1x128xf32> to vector<16x128xf32>
    %128 = arith.addf %125, %127 : vector<16x128xf32>
    %cst_87 = arith.constant dense<0xFF800000> : vector<16xf32>
    %129 = vector.multi_reduction <maximumf>, %128, %cst_87 [1] : vector<16x128xf32> to vector<16xf32>
    %130 = vector.shape_cast %129 : vector<16xf32> to vector<16x1xf32>
    %131 = vector.broadcast %130 : vector<16x1xf32> to vector<16x128xf32>
    %132 = arith.subf %128, %131 : vector<16x128xf32>
    %133 = math.exp %132 : vector<16x128xf32>
    %cst_88 = arith.constant dense<0.000000e+00> : vector<16xf32>
    %134 = vector.multi_reduction <add>, %133, %cst_88 [1] : vector<16x128xf32> to vector<16xf32>
    %135 = vector.shape_cast %134 : vector<16xf32> to vector<16x1xf32>
    %136 = math.log %135 : vector<16x1xf32>
    %137 = vector.broadcast %136 : vector<16x1xf32> to vector<16x128xf32>
    %138 = arith.subf %132, %137 : vector<16x128xf32>
    %c0_89 = arith.constant 0 : index
    %c0_90 = arith.constant 0 : index
    %c0_91 = arith.constant 0 : index
    %139 = vector.load %arg10[%c0_89, %c0_90, %c0_91] : memref<1x16x128xf32, #tpu.memory_space<vmem>>, vector<1x16x128xf32>
    %140 = vector.shape_cast %139 : vector<1x16x128xf32> to vector<16x128xf32>
    %141 = vector.shape_cast %138 : vector<16x128xf32> to vector<1x16x128xf32>
    tpu.vector_store %arg10[%c0_89, %c0_90, %c0_91], %141 {strides = array<i32>} : memref<1x16x128xf32, #tpu.memory_space<vmem>>, vector<1x16x128xf32>,
    return
  }
  func.func @transform_0(%arg0: i32) -> (i32, i32, i32, i32) {
    %c0_i32 = arith.constant 0 : i32
    %c0_i32_0 = arith.constant 0 : i32
    %c0_i32_1 = arith.constant 0 : i32
    %c0_i32_2 = arith.constant 0 : i32
    return %arg0, %c0_i32, %c0_i32_0, %c0_i32_1 : i32, i32, i32, i32
  }
  func.func @transform_1(%arg0: i32) -> (i32, i32) {
    %c0_i32 = arith.constant 0 : i32
    %c0_i32_0 = arith.constant 0 : i32
    %c0_i32_1 = arith.constant 0 : i32
    return %c0_i32, %c0_i32_0 : i32, i32
  }
  func.func @transform_2(%arg0: i32) -> (i32, i32) {
    %c0_i32 = arith.constant 0 : i32
    %c0_i32_0 = arith.constant 0 : i32
    %c0_i32_1 = arith.constant 0 : i32
    return %c0_i32, %c0_i32_0 : i32, i32
  }
  func.func @transform_3(%arg0: i32) -> (i32, i32, i32) {
    %c0_i32 = arith.constant 0 : i32
    %c0_i32_0 = arith.constant 0 : i32
    %c0_i32_1 = arith.constant 0 : i32
    %c0_i32_2 = arith.constant 0 : i32
    return %c0_i32, %c0_i32_0, %c0_i32_1 : i32, i32, i32
  }
  func.func @transform_4(%arg0: i32) -> (i32, i32) {
    %c0_i32 = arith.constant 0 : i32
    %c0_i32_0 = arith.constant 0 : i32
    %c0_i32_1 = arith.constant 0 : i32
    return %c0_i32, %c0_i32_0 : i32, i32
  }
  func.func @transform_5(%arg0: i32) -> (i32, i32, i32) {
    %c0_i32 = arith.constant 0 : i32
    %c0_i32_0 = arith.constant 0 : i32
    %c0_i32_1 = arith.constant 0 : i32
    %c0_i32_2 = arith.constant 0 : i32
    return %c0_i32, %c0_i32_0, %c0_i32_1 : i32, i32, i32
  }
  func.func @transform_6(%arg0: i32) -> (i32, i32) {
    %c0_i32 = arith.constant 0 : i32
    %c0_i32_0 = arith.constant 0 : i32
    %c0_i32_1 = arith.constant 0 : i32
    return %c0_i32, %c0_i32_0 : i32, i32
  }
  func.func @transform_7(%arg0: i32) -> (i32, i32) {
    %c0_i32 = arith.constant 0 : i32
    %c0_i32_0 = arith.constant 0 : i32
    %c0_i32_1 = arith.constant 0 : i32
    return %c0_i32, %c0_i32_0 : i32, i32
  }
  func.func @transform_8(%arg0: i32) -> (i32, i32) {
    %c0_i32 = arith.constant 0 : i32
    %c0_i32_0 = arith.constant 0 : i32
    %c0_i32_1 = arith.constant 0 : i32
    return %c0_i32, %c0_i32_0 : i32, i32
  }
  func.func @transform_9(%arg0: i32) -> (i32, i32, i32) {
    %c0_i32 = arith.constant 0 : i32
    %c0_i32_0 = arith.constant 0 : i32
    %c0_i32_1 = arith.constant 0 : i32
    return %arg0, %c0_i32, %c0_i32_0 : i32, i32, i32
  }
}

</mosaic_0001>

<bundles_post_ra>
// kernel: net_forward.1
= control target key start
LH: loop header
LB: loop body
LE: loop exit
PB: predicated region body
PF: predicated region fallthrough
CT: control target
= control target key end

     0   :  { %s10917_s30 = smov 0   ;;  %s15184_s0 = inlined_call_operand.vmem [shape: bf16[4,4,96,140], index: 0, kind: input, shape index: {}]   ;;  %s15185_s1 = inlined_call_operand.vmem [shape: bf16[140,512], index: 1, kind: input, shape index: {}]   ;;  %s15186_s2 = inlined_call_operand.vmem [shape: f32[1,256], index: 2, kind: input, shape index: {}]   ;;  %s15187_s3 = inlined_call_operand.vmem [shape: bf16[5,256,512], index: 3, kind: input, shape index: {}]   ;;  %s15188_s4 = inlined_call_operand.vmem [shape: f32[1,256], index: 4, kind: input, shape index: {}]   ;;  %s15189_s5 = inlined_call_operand.vmem [shape: bf16[4,256,512], index: 5, kind: input, shape index: {}]   ;;  %s15190_s6 = inlined_call_operand.vmem [shape: f32[1,512], index: 6, kind: input, shape index: {}]   ;;  %s15191_s7 = inlined_call_operand.vmem [shape: bf16[512,128], index: 7, kind: input, shape index: {}]   ;;  %s15192_s8 = inlined_call_operand.vmem [shape: f32[1,128], index: 8, kind: input, shape index: {}]   ;;  %s15193_s9 = inlined_call_operand.vmem [shape: f32[4,16,128], index: 9, kind: output, shape index: {}]  }
   0x1 LB: > { %s7958_s10 = sadd.s32 4294967295, %s10865_s30   ;;  %p7962_p0 = scmp.ge.s32.totalorder %s10865_s30, 1  ;;  %s10865_s30 = sphi %s10917_s30, %s19_s30  }
   0x2   : > { %p287_p1 = scmp.lt.s32.totalorder %s10865_s30, 5 }
   0x4   : > { %p288_p2 = pnand %p7962_p0, %p287_p1 }
   0x6   : > { %291 = sbr.rel (%p288_p2) target bundleno = 2191 (0x88f), region = 56 }
   0xd   : > { %v10928_v0 = vld [vmem:[%s15185_s1 + $0x4] ss:$16 sps:$4 sm:$0xff]   ;;  %v10933_v1 = vld [vmem:[%s15185_s1 + $0xc] ss:$16 sps:$4 sm:$0xff]   ;;  %v10939_v2 = vld [vmem:[%s15185_s1] ss:$16 sps:$4 sm:$0xff]  }
   0xe   : > { %644 = vmatprep.subr.bf16.mxu0 %v10928_v0  ;;  %v10944_v3 = vld [vmem:[%s15185_s1 + $0x8] ss:$16 sps:$4 sm:$0xff]   ;;  %737 = vmatprep.subr.bf16.mxu1 %v10933_v1  ;;  %v10950_v4 = vld [vmem:[%s15185_s1 + $0x24] ss:$16 sps:$4 sm:$0xff]   ;;  %v10957_v5 = vld [vmem:[%s15185_s1 + $0x2c] ss:$16 sps:$4 sm:$0xff]  }
   0xf   : > { %645 = vmatpush1.bf16.msra.mxu0 %v10939_v2  ;;  %738 = vmatpush1.bf16.msra.mxu1 %v10944_v3  ;;  %v10962_v6 = vld [vmem:[%s15185_s1 + $0x20] ss:$16 sps:$4 sm:$0xff]   ;;  %v10968_v7 = vld [vmem:[%s15185_s1 + $0x28] ss:$16 sps:$4 sm:$0xff]   ;;  %v10974_v8 = vld [vmem:[%s15185_s1 + $0x44] ss:$16 sps:$4 sm:$0xff]  }
  0x10   : > { %646 = vmatprep.subr.bf16.mxu0 %v10950_v4  ;;  %739 = vmatprep.subr.bf16.mxu1 %v10957_v5  ;;  %v10979_v9 = vld [vmem:[%s15185_s1 + $0x4c] ss:$16 sps:$4 sm:$0xff]   ;;  %v10984_v10 = vld [vmem:[%s15185_s1 + $0x40] ss:$16 sps:$4 sm:$0xff]   ;;  %v10989_v11 = vld [vmem:[%s15185_s1 + $0x48] ss:$16 sps:$4 sm:$0xff]  }
  0x11   : > { %v10996_v12 = vld [vmem:[%s15185_s1 + $0x64] ss:$16 sps:$4 sm:$0xff]   ;;  %v11003_v13 = vld [vmem:[%s15185_s1 + $0x6c] ss:$16 sps:$4 sm:$0xff]   ;;  %p323_p3 = scmp.lt.s32.totalorder %s7958_s10, 3  ;;  %vm612_vm0 = vcmask 97280  }
  0x12   : > { %v11010_v14 = vld [vmem:[%s15185_s1 + $0x60] ss:$16 sps:$4 sm:$0xff]   ;;  %v11017_v15 = vld [vmem:[%s15185_s1 + $0x68] ss:$16 sps:$4 sm:$0xff]   ;;  %v11022_v16 = vld [vmem:[%s15185_s1 + $0x84] ss:$16 sps:$4 sm:$0xff]  }
  0x13   : > { %647 = vmatpush1.bf16.msra.mxu0 %v10962_v6  ;;  %740 = vmatpush1.bf16.msra.mxu1 %v10968_v7  ;;  %v11029_v17 = vld [vmem:[%s15185_s1 + $0x8c] ss:$16 sps:$4 sm:$0xff]   ;;  %s15462_s10 = smov (!%p323_p3, %s7958_s10), 3  ;;  %v11038_v18 = vld [vmem:[%s15185_s1 + $0x80] ss:$16 sps:$4 sm:$0xff]   ;;  %vm631_vm1 = vcmask 1045504  }
  0x14   : > { %648 = vmatprep.subr.bf16.mxu0 %v10974_v8  ;;  %741 = vmatprep.subr.bf16.mxu1 %v10979_v9  ;;  %v11043_v19 = vld [vmem:[%s15185_s1 + $0x88] ss:$16 sps:$4 sm:$0xff]   ;;  %v11050_v20 = vld [vmem:[%s15185_s1 + $0xa4] ss:$16 sps:$4 sm:$0xff]   ;;  %v11057_v21 = vld [vmem:[%s15185_s1 + $0xac] ss:$16 sps:$4 sm:$0xff]  }
  0x15   : > { %s9526_s17 = smul.u32 384, %s15462_s10  ;;  %v11063_v22 = vld [vmem:[%s15185_s1 + $0xa0] ss:$16 sps:$4 sm:$0xff]   ;;  %v11070_v23 = vld [vmem:[%s15185_s1 + $0xa8] ss:$16 sps:$4 sm:$0xff]   ;;  %s9201_s22 = sshll.u32 %s15462_s10, 4 }
  0x16   : > { %v11075_v24 = vld [vmem:[%s15185_s1 + $0xc4] ss:$16 sps:$4 sm:$0xff]   ;;  %v11082_v25 = vld [vmem:[%s15185_s1 + $0xcc] ss:$16 sps:$4 sm:$0xff]   ;;  %v11092_v26 = vld [vmem:[%s15185_s1 + $0xc0] ss:$16 sps:$4 sm:$0xff]   ;;  %s332_s25 = scalar_lea.vmem %s15193_s9, %s9201_s22 }
  0x17   : > { %649 = vmatpush1.bf16.msra.mxu0 %v10984_v10  ;;  %742 = vmatpush1.bf16.msra.mxu1 %v10989_v11  ;;  %s11087_s28 = scalar_lea.vmem %s15184_s0, %s9526_s17  ;;  %v11097_v27 = vld [vmem:[%s15185_s1 + $0xc8] ss:$16 sps:$4 sm:$0xff]   ;;  %v11104_v28 = vld [vmem:[%s15185_s1 + $0xe4] ss:$16 sps:$4 sm:$0xff]   ;;  %v11111_v29 = vld [vmem:[%s15185_s1 + $0xec] ss:$16 sps:$4 sm:$0xff]  }
  0x18   : > { %650 = vmatprep.subr.bf16.mxu0 %v10996_v12  ;;  %743 = vmatprep.subr.bf16.mxu1 %v11003_v13  ;;  %v9591_v30 = vld [vmem:[%s11087_s28 + $0x4] ss:$8 sps:$4 sm:$0xff]   ;;  %v11117_v31 = vld [vmem:[%s15185_s1 + $0xe0] ss:$16 sps:$4 sm:$0xff]   ;;  %v11122_v32 = vld [vmem:[%s15185_s1 + $0xe8] ss:$16 sps:$4 sm:$0xff]  }
  0x19   : > { %v11127_v33 = vld [vmem:[%s15185_s1 + $0x104] ss:$16 sps:$4 sm:$0x3f]   ;;  %v11132_v34 = vld [vmem:[%s15185_s1 + $0x10c] ss:$16 sps:$4 sm:$0x3f]   ;;  %8015 = vmatprep.mubr.msk.bf16.mxu0 %vm612_vm0, %v9591_v30  ;;  %8022 = vmatprep.mubr.msk.bf16.mxu1 %vm612_vm0, %v9591_v30 }
  0x1a   : > { %v9587_v35 = vld [vmem:[%s15185_s1 + $0x100] ss:$16 sps:$4 sm:$0x3f]   ;;  %v9588_v36 = vld [vmem:[%s15185_s1 + $0x108] ss:$16 sps:$4 sm:$0x3f]  }
  0x1b   : > { %651 = vmatpush1.bf16.msra.mxu0 %v11010_v14  ;;  %744 = vmatpush1.bf16.msra.mxu1 %v11017_v15  ;;  %v11153_v37 = vsel %vm631_vm1, %v9587_v35, 0  ;;  %v11156_v38 = vsel %vm631_vm1, %v9588_v36, 0  ;;  %v9589_v39 = vld [vmem:[%s11087_s28] ss:$8 sps:$4 sm:$0xff]   ;;  %v9592_v40 = vld [vmem:[%s11087_s28 + $0x14] ss:$8 sps:$4 sm:$0xff]  }
  0x1c   : > { %652 = vmatprep.subr.bf16.mxu0 %v11022_v16  ;;  %745 = vmatprep.subr.bf16.mxu1 %v11029_v17  ;;  %v9594_v41 = vld [vmem:[%s11087_s28 + $0x10] ss:$8 sps:$4 sm:$0xff]   ;;  %v9595_v42 = vld [vmem:[%s11087_s28 + $0x24] ss:$8 sps:$4 sm:$0xff]   ;;  %v9597_v43 = vld [vmem:[%s11087_s28 + $0x20] ss:$8 sps:$4 sm:$0xff]  }
  0x1d   : > { %v9598_v44 = vld [vmem:[%s11087_s28 + $0x34] ss:$8 sps:$4 sm:$0xff]   ;;  %v9600_v45 = vld [vmem:[%s11087_s28 + $0x30] ss:$8 sps:$4 sm:$0xff]   ;;  %v9601_v46 = vld [vmem:[%s11087_s28 + $0x44] ss:$8 sps:$4 sm:$0xff]  }
  0x1e   : > { %v9603_v47 = vld [vmem:[%s11087_s28 + $0x40] ss:$8 sps:$4 sm:$0xff]   ;;  %v9604_v48 = vld [vmem:[%s11087_s28 + $0x54] ss:$8 sps:$4 sm:$0xff]   ;;  %v9606_v49 = vld [vmem:[%s11087_s28 + $0x50] ss:$8 sps:$4 sm:$0xff]  }
  0x1f   : > { %653 = vmatpush1.bf16.msra.mxu0 %v11038_v18  ;;  %746 = vmatpush1.bf16.msra.mxu1 %v11043_v19  ;;  %v9609_v50 = vld [vmem:[%s11087_s28 + $0x64] ss:$8 sps:$4 sm:$0xff]   ;;  %v9607_v51 = vld [vmem:[%s11087_s28 + $0x60] ss:$8 sps:$4 sm:$0xff]   ;;  %v9610_v52 = vld [vmem:[%s11087_s28 + $0x74] ss:$8 sps:$4 sm:$0xff]  }
  0x20   : > { %654 = vmatprep.subr.bf16.mxu0 %v11050_v20  ;;  %747 = vmatprep.subr.bf16.mxu1 %v11057_v21  ;;  %v9612_v53 = vld [vmem:[%s11087_s28 + $0x70] ss:$8 sps:$4 sm:$0xff]   ;;  %v9613_v54 = vld [vmem:[%s11087_s28 + $0x84] ss:$8 sps:$4 sm:$0xff]   ;;  %v9615_v55 = vld [vmem:[%s11087_s28 + $0x80] ss:$8 sps:$4 sm:$0xff]  }
  0x21   : > { %v9616_v56 = vld [vmem:[%s11087_s28 + $0x94] ss:$8 sps:$4 sm:$0xff]   ;;  %v9618_v57 = vld [vmem:[%s11087_s28 + $0x90] ss:$8 sps:$4 sm:$0xff]   ;;  %v9619_v58 = vld [vmem:[%s11087_s28 + $0xa4] ss:$8 sps:$4 sm:$0xff]  }
  0x22   : > { %v9621_v59 = vld [vmem:[%s11087_s28 + $0xa0] ss:$8 sps:$4 sm:$0xff]   ;;  %v9622_v60 = vld [vmem:[%s11087_s28 + $0xb4] ss:$8 sps:$4 sm:$0xff]   ;;  %v9624_v61 = vld [vmem:[%s11087_s28 + $0xb0] ss:$8 sps:$4 sm:$0xff]  }
  0x23   : > { %655 = vmatpush1.bf16.msra.mxu0 %v11063_v22  ;;  %748 = vmatpush1.bf16.msra.mxu1 %v11070_v23  ;;  %v9627_v62 = vld [vmem:[%s11087_s28 + $0xc4] ss:$8 sps:$4 sm:$0xff]   ;;  %v9625_v63 = vld [vmem:[%s11087_s28 + $0xc0] ss:$8 sps:$4 sm:$0xff]   ;;  %v9640_v36 = vld [vmem:[%s11087_s28 + $0x114] ss:$8 sps:$4 sm:$0xff]  }
  0x24   : > { %656 = vmatprep.subr.bf16.mxu0 %v11075_v24  ;;  %749 = vmatprep.subr.bf16.mxu1 %v11082_v25  ;;  %v10588_v30 = vld [vmem:[%s15185_s1 + $0xcc] ss:$16 sps:$4 sm:$0xff]  }
  0x25   : > { %v10592_v35 = vld [vmem:[%s15185_s1 + $0xec] ss:$16 sps:$4 sm:$0xff]  }
  0x27   : > { %657 = vmatpush1.bf16.msra.mxu0 %v11092_v26  ;;  %750 = vmatpush1.bf16.msra.mxu1 %v11097_v27 }
  0x28   : > { %658 = vmatprep.subr.bf16.mxu0 %v11104_v28  ;;  %751 = vmatprep.subr.bf16.mxu1 %v11111_v29 }
  0x2b   : > { %659 = vmatpush1.bf16.msra.mxu0 %v11117_v31  ;;  %752 = vmatpush1.bf16.msra.mxu1 %v11122_v32 }
  0x2c   : > { %8014 = vmatprep.subr.msk.bf16.mxu0 %vm631_vm1, %v11127_v33  ;;  %8021 = vmatprep.subr.msk.bf16.mxu1 %vm631_vm1, %v11132_v34 }
  0x2f   : > { %661 = vmatpush1.bf16.msra.mxu0 %v11153_v37  ;;  %754 = vmatpush1.bf16.msra.mxu1 %v11156_v38 }
  0x30   : > { %939 = vmatprep.subr.bf16.mxu0 %v10928_v0  ;;  %1032 = vmatprep.subr.bf16.mxu1 %v10933_v1 }
  0x32   : > { %677 = vmatmul.mubr.bf16.vlgmr.msra.gmra.mrb[0].mxu0 %v9589_v39  ;;  %770 = vmatmul.mubr.bf16.vlgmr.msra.gmra.mrb[0].mxu1 %v9589_v39  ;;  %v10593_v39 = vld [vmem:[%s15185_s1 + $0xe0] ss:$16 sps:$4 sm:$0xff]  }
  0x33   : > { %940 = vmatpush1.bf16.msra.mxu0 %v10939_v2  ;;  %1033 = vmatpush1.bf16.msra.mxu1 %v10944_v3 }
  0x34   : > { %941 = vmatprep.subr.bf16.mxu0 %v10950_v4  ;;  %1034 = vmatprep.subr.bf16.mxu1 %v10957_v5 }
  0x35   : > { %8016 = vmatprep.mubr.msk.bf16.mxu0 %vm612_vm0, %v9592_v40  ;;  %8023 = vmatprep.mubr.msk.bf16.mxu1 %vm612_vm0, %v9592_v40  ;;  %v10594_v40 = vld [vmem:[%s15185_s1 + $0xe8] ss:$16 sps:$4 sm:$0xff]  }
  0x37   : > { %942 = vmatpush1.bf16.msra.mxu0 %v10962_v6  ;;  %1035 = vmatpush1.bf16.msra.mxu1 %v10968_v7 }
  0x38   : > { %943 = vmatprep.subr.bf16.mxu0 %v10974_v8  ;;  %1036 = vmatprep.subr.bf16.mxu1 %v10979_v9 }
  0x3a   : > { %687 = vmatmul.mubr.bf16.gmra.mrb[4].mxu0 %v9594_v41  ;;  %780 = vmatmul.mubr.bf16.gmra.mrb[4].mxu1 %v9594_v41  ;;  %v10595_v41 = vld [vmem:[%s15185_s1 + $0x104] ss:$16 sps:$4 sm:$0x3f]  }
  0x3b   : > { %944 = vmatpush1.bf16.msra.mxu0 %v10984_v10  ;;  %1037 = vmatpush1.bf16.msra.mxu1 %v10989_v11 }
  0x3c   : > { %8017 = vmatprep.mubr.msk.bf16.mxu0 %vm612_vm0, %v9595_v42  ;;  %8024 = vmatprep.mubr.msk.bf16.mxu1 %vm612_vm0, %v9595_v42  ;;  %v10596_v42 = vld [vmem:[%s15185_s1 + $0x10c] ss:$16 sps:$4 sm:$0x3f]  }
  0x3d   : > { %945 = vmatprep.subr.bf16.mxu0 %v10996_v12  ;;  %1038 = vmatprep.subr.bf16.mxu1 %v11003_v13 }
  0x3f   : > { %946 = vmatpush1.bf16.msra.mxu0 %v11010_v14  ;;  %1039 = vmatpush1.bf16.msra.mxu1 %v11017_v15 }
  0x40   : > { %947 = vmatprep.subr.bf16.mxu0 %v11022_v16  ;;  %1040 = vmatprep.subr.bf16.mxu1 %v11029_v17 }
  0x42   : > { %697 = vmatmul.mubr.bf16.gmra.mrb[8].mxu0 %v9597_v43  ;;  %790 = vmatmul.mubr.bf16.gmra.mrb[8].mxu1 %v9597_v43  ;;  %v9642_v43 = vld [vmem:[%s11087_s28 + $0x110] ss:$8 sps:$4 sm:$0xff]  }
  0x43   : > { %8018 = vmatprep.mubr.msk.bf16.mxu0 %vm612_vm0, %v9598_v44  ;;  %8025 = vmatprep.mubr.msk.bf16.mxu1 %vm612_vm0, %v9598_v44  ;;  %v9645_v44 = vld [vmem:[%s11087_s28 + $0x124] ss:$8 sps:$4 sm:$0xff]  }
  0x44   : > { %948 = vmatpush1.bf16.msra.mxu0 %v11038_v18  ;;  %1041 = vmatpush1.bf16.msra.mxu1 %v11043_v19 }
  0x45   : > { %949 = vmatprep.subr.bf16.mxu0 %v11050_v20  ;;  %1042 = vmatprep.subr.bf16.mxu1 %v11057_v21 }
  0x48   : > { %950 = vmatpush1.bf16.msra.mxu0 %v11063_v22  ;;  %1043 = vmatpush1.bf16.msra.mxu1 %v11070_v23 }
  0x49   : > { %951 = vmatprep.subr.bf16.mxu0 %v11075_v24  ;;  %1044 = vmatprep.subr.bf16.mxu1 %v11082_v25 }
  0x4a   : > { %707 = vmatmul.mubr.bf16.gmra.mrb[12].mxu0 %v9600_v45  ;;  %800 = vmatmul.mubr.bf16.gmra.mrb[12].mxu1 %v9600_v45  ;;  %v9643_v45 = vld [vmem:[%s11087_s28 + $0x120] ss:$8 sps:$4 sm:$0xff]  }
  0x4b   : > { %8019 = vmatprep.mubr.msk.bf16.mxu0 %vm612_vm0, %v9601_v46  ;;  %8026 = vmatprep.mubr.msk.bf16.mxu1 %vm612_vm0, %v9601_v46  ;;  %v9646_v46 = vld [vmem:[%s11087_s28 + $0x134] ss:$8 sps:$4 sm:$0xff]  }
  0x4c   : > { %952 = vmatpush1.bf16.msra.mxu0 %v11092_v26  ;;  %1045 = vmatpush1.bf16.msra.mxu1 %v11097_v27 }
  0x4d   : > { %953 = vmatprep.subr.bf16.mxu0 %v11104_v28  ;;  %1046 = vmatprep.subr.bf16.mxu1 %v11111_v29 }
  0x50   : > { %954 = vmatpush1.bf16.msra.mxu0 %v11117_v31  ;;  %1047 = vmatpush1.bf16.msra.mxu1 %v11122_v32 }
  0x51   : > { %8052 = vmatprep.subr.msk.bf16.mxu0 %vm631_vm1, %v11127_v33  ;;  %8059 = vmatprep.subr.msk.bf16.mxu1 %vm631_vm1, %v11132_v34 }
  0x52   : > { %717 = vmatmul.mubr.bf16.gmra.mrb[16].mxu0 %v9603_v47  ;;  %810 = vmatmul.mubr.bf16.gmra.mrb[16].mxu1 %v9603_v47  ;;  %v9651_v47 = vld [vmem:[%s11087_s28 + $0x140] ss:$8 sps:$4 sm:$0xff]  }
  0x53   : > { %8020 = vmatprep.mubr.msk.bf16.mxu0 %vm612_vm0, %v9604_v48  ;;  %8027 = vmatprep.mubr.msk.bf16.mxu1 %vm612_vm0, %v9604_v48  ;;  %v9652_v48 = vld [vmem:[%s11087_s28 + $0x154] ss:$8 sps:$4 sm:$0xff]  }
  0x54   : > { %956 = vmatpush1.bf16.msra.mxu0 %v11153_v37  ;;  %1049 = vmatpush1.bf16.msra.mxu1 %v11156_v38 }
  0x55   : > { %1234 = vmatprep.subr.bf16.mxu0 %v10928_v0  ;;  %1327 = vmatprep.subr.bf16.mxu1 %v10933_v1 }
  0x5a   : > { %727 = vmatmul.mubr.bf16.gmra.mrb[20].mxu0 %v9606_v49  ;;  %820 = vmatmul.mubr.bf16.gmra.mrb[20].mxu1 %v9606_v49  ;;  %v9654_v49 = vld [vmem:[%s11087_s28 + $0x150] ss:$8 sps:$4 sm:$0xff]  }
  0x5b   : > { %8053 = vmatprep.mubr.msk.bf16.mxu0 %vm612_vm0, %v9609_v50  ;;  %8060 = vmatprep.mubr.msk.bf16.mxu1 %vm612_vm0, %v9609_v50  ;;  %v9655_v50 = vld [vmem:[%s11087_s28 + $0x164] ss:$8 sps:$4 sm:$0xff]  }
  0x62   : > { %972 = vmatmul.mubr.bf16.vlgmr.msra.gmra.mrb[24].mxu0 %v9607_v51  ;;  %1065 = vmatmul.mubr.bf16.vlgmr.msra.gmra.mrb[24].mxu1 %v9607_v51  ;;  %v9657_v51 = vld [vmem:[%s11087_s28 + $0x160] ss:$8 sps:$4 sm:$0xff]  }
  0x63   : > { %1235 = vmatpush1.bf16.msra.mxu0 %v10939_v2  ;;  %1328 = vmatpush1.bf16.msra.mxu1 %v10944_v3  ;;  %v9628_v2 = vld [vmem:[%s11087_s28 + $0xd4] ss:$8 sps:$4 sm:$0xff]   ;;  %v10565_v3 = vld [vmem:[%s15185_s1] ss:$16 sps:$4 sm:$0xff]  }
  0x64   : > { %1236 = vmatprep.subr.bf16.mxu0 %v10950_v4  ;;  %1329 = vmatprep.subr.bf16.mxu1 %v10957_v5  ;;  %v10568_v4 = vld [vmem:[%s15185_s1 + $0x2c] ss:$16 sps:$4 sm:$0xff]   ;;  %v9630_v5 = vld [vmem:[%s11087_s28 + $0xd0] ss:$8 sps:$4 sm:$0xff]  }
  0x65   : > { %8054 = vmatprep.mubr.msk.bf16.mxu0 %vm612_vm0, %v9610_v52  ;;  %8061 = vmatprep.mubr.msk.bf16.mxu1 %vm612_vm0, %v9610_v52  ;;  %v9658_v52 = vld [vmem:[%s11087_s28 + $0x174] ss:$8 sps:$4 sm:$0xff]  }
  0x67   : > { %1237 = vmatpush1.bf16.msra.mxu0 %v10962_v6  ;;  %1330 = vmatpush1.bf16.msra.mxu1 %v10968_v7  ;;  %v9631_v6 = vld [vmem:[%s11087_s28 + $0xe4] ss:$8 sps:$4 sm:$0xff]   ;;  %v10569_v7 = vld [vmem:[%s15185_s1 + $0x20] ss:$16 sps:$4 sm:$0xff]  }
  0x68   : > { %1238 = vmatprep.subr.bf16.mxu0 %v10974_v8  ;;  %1331 = vmatprep.subr.bf16.mxu1 %v10979_v9  ;;  %v10570_v8 = vld [vmem:[%s15185_s1 + $0x28] ss:$16 sps:$4 sm:$0xff]   ;;  %v10571_v9 = vld [vmem:[%s15185_s1 + $0x44] ss:$16 sps:$4 sm:$0xff]  }
  0x6a   : > { %982 = vmatmul.mubr.bf16.gmra.mrb[28].mxu0 %v9612_v53  ;;  %1075 = vmatmul.mubr.bf16.gmra.mrb[28].mxu1 %v9612_v53  ;;  %v9663_v53 = vld [vmem:[%s15187_s3 + $0x204] ss:$16 sps:$4 sm:$0xff]  }
  0x6b   : > { %1239 = vmatpush1.bf16.msra.mxu0 %v10984_v10  ;;  %1332 = vmatpush1.bf16.msra.mxu1 %v10989_v11  ;;  %v10572_v10 = vld [vmem:[%s15185_s1 + $0x4c] ss:$16 sps:$4 sm:$0xff]   ;;  %v10573_v11 = vld [vmem:[%s15185_s1 + $0x40] ss:$16 sps:$4 sm:$0xff]  }
  0x6c   : > { %8055 = vmatprep.mubr.msk.bf16.mxu0 %vm612_vm0, %v9613_v54  ;;  %8062 = vmatprep.mubr.msk.bf16.mxu1 %vm612_vm0, %v9613_v54  ;;  %v9666_v54 = vld [vmem:[%s15187_s3 + $0x20c] ss:$16 sps:$4 sm:$0xff]  }
  0x6d   : > { %1240 = vmatprep.subr.bf16.mxu0 %v10996_v12  ;;  %1333 = vmatprep.subr.bf16.mxu1 %v11003_v13  ;;  %v10574_v12 = vld [vmem:[%s15185_s1 + $0x48] ss:$16 sps:$4 sm:$0xff]  }
  0x6e   : > { %v9633_v13 = vld [vmem:[%s11087_s28 + $0xe0] ss:$8 sps:$4 sm:$0xff]  }
  0x6f   : > { %1241 = vmatpush1.bf16.msra.mxu0 %v11010_v14  ;;  %1334 = vmatpush1.bf16.msra.mxu1 %v11017_v15  ;;  %v10575_v14 = vld [vmem:[%s15185_s1 + $0x64] ss:$16 sps:$4 sm:$0xff]   ;;  %v10576_v15 = vld [vmem:[%s15185_s1 + $0x6c] ss:$16 sps:$4 sm:$0xff]  }
  0x70   : > { %1242 = vmatprep.subr.bf16.mxu0 %v11022_v16  ;;  %1335 = vmatprep.subr.bf16.mxu1 %v11029_v17  ;;  %v9634_v16 = vld [vmem:[%s11087_s28 + $0xf4] ss:$8 sps:$4 sm:$0xff]   ;;  %v10577_v17 = vld [vmem:[%s15185_s1 + $0x60] ss:$16 sps:$4 sm:$0xff]  }
  0x72   : > { %992 = vmatmul.mubr.bf16.gmra.mrb[32].mxu0 %v9615_v55  ;;  %1085 = vmatmul.mubr.bf16.gmra.mrb[32].mxu1 %v9615_v55  ;;  %v9661_v55 = vld [vmem:[%s15187_s3 + $0x200] ss:$16 sps:$4 sm:$0xff]  }
  0x73   : > { %8056 = vmatprep.mubr.msk.bf16.mxu0 %vm612_vm0, %v9616_v56  ;;  %8063 = vmatprep.mubr.msk.bf16.mxu1 %vm612_vm0, %v9616_v56  ;;  %v9664_v56 = vld [vmem:[%s15187_s3 + $0x208] ss:$16 sps:$4 sm:$0xff]  }
  0x74   : > { %1243 = vmatpush1.bf16.msra.mxu0 %v11038_v18  ;;  %1336 = vmatpush1.bf16.msra.mxu1 %v11043_v19  ;;  %v10578_v18 = vld [vmem:[%s15185_s1 + $0x68] ss:$16 sps:$4 sm:$0xff]   ;;  %v10579_v19 = vld [vmem:[%s15185_s1 + $0x84] ss:$16 sps:$4 sm:$0xff]  }
  0x75   : > { %1244 = vmatprep.subr.bf16.mxu0 %v11050_v20  ;;  %1337 = vmatprep.subr.bf16.mxu1 %v11057_v21  ;;  %v10580_v20 = vld [vmem:[%s15185_s1 + $0x8c] ss:$16 sps:$4 sm:$0xff]   ;;  %v10581_v21 = vld [vmem:[%s15185_s1 + $0x80] ss:$16 sps:$4 sm:$0xff]  }
  0x78   : > { %1245 = vmatpush1.bf16.msra.mxu0 %v11063_v22  ;;  %1338 = vmatpush1.bf16.msra.mxu1 %v11070_v23  ;;  %v10582_v22 = vld [vmem:[%s15185_s1 + $0x88] ss:$16 sps:$4 sm:$0xff]  }
  0x79   : > { %1246 = vmatprep.subr.bf16.mxu0 %v11075_v24  ;;  %1339 = vmatprep.subr.bf16.mxu1 %v11082_v25  ;;  %v9636_v23 = vld [vmem:[%s11087_s28 + $0xf0] ss:$8 sps:$4 sm:$0xff]   ;;  %v10583_v24 = vld [vmem:[%s15185_s1 + $0xa4] ss:$16 sps:$4 sm:$0xff]   ;;  %v10584_v25 = vld [vmem:[%s15185_s1 + $0xac] ss:$16 sps:$4 sm:$0xff]  }
  0x7a   : > { %1002 = vmatmul.mubr.bf16.gmra.mrb[36].mxu0 %v9618_v57  ;;  %1095 = vmatmul.mubr.bf16.gmra.mrb[36].mxu1 %v9618_v57  ;;  %v9660_v57 = vld [vmem:[%s11087_s28 + $0x170] ss:$8 sps:$4 sm:$0xff]  }
  0x7b   : > { %8057 = vmatprep.mubr.msk.bf16.mxu0 %vm612_vm0, %v9619_v58  ;;  %8064 = vmatprep.mubr.msk.bf16.mxu1 %vm612_vm0, %v9619_v58  ;;  %v9669_v58 = vld [vmem:[%s15187_s3 + $0x224] ss:$16 sps:$4 sm:$0xff]  }
  0x7c   : > { %1247 = vmatpush1.bf16.msra.mxu0 %v11092_v26  ;;  %1340 = vmatpush1.bf16.msra.mxu1 %v11097_v27  ;;  %v9637_v26 = vld [vmem:[%s11087_s28 + $0x104] ss:$8 sps:$4 sm:$0xff]   ;;  %v10585_v27 = vld [vmem:[%s15185_s1 + $0xa0] ss:$16 sps:$4 sm:$0xff]  }
  0x7d   : > { %1248 = vmatprep.subr.bf16.mxu0 %v11104_v28  ;;  %1341 = vmatprep.subr.bf16.mxu1 %v11111_v29  ;;  %v10586_v28 = vld [vmem:[%s15185_s1 + $0xa8] ss:$16 sps:$4 sm:$0xff]   ;;  %v10587_v29 = vld [vmem:[%s15185_s1 + $0xc4] ss:$16 sps:$4 sm:$0xff]  }
  0x80   : > { %1249 = vmatpush1.bf16.msra.mxu0 %v11117_v31  ;;  %1342 = vmatpush1.bf16.msra.mxu1 %v11122_v32  ;;  %v9639_v31 = vld [vmem:[%s11087_s28 + $0x100] ss:$8 sps:$4 sm:$0xff]  }
  0x81   : > { %8090 = vmatprep.subr.msk.bf16.mxu0 %vm631_vm1, %v11127_v33  ;;  %8097 = vmatprep.subr.msk.bf16.mxu1 %vm631_vm1, %v11132_v34  ;;  %v10589_v32 = vld [vmem:[%s15185_s1 + $0xc0] ss:$16 sps:$4 sm:$0xff]   ;;  %v10590_v33 = vld [vmem:[%s15185_s1 + $0xc8] ss:$16 sps:$4 sm:$0xff]   ;;  %v10591_v34 = vld [vmem:[%s15185_s1 + $0xe4] ss:$16 sps:$4 sm:$0xff]  }
  0x82   : > { %1012 = vmatmul.mubr.bf16.gmra.mrb[40].mxu0 %v9621_v59  ;;  %1105 = vmatmul.mubr.bf16.gmra.mrb[40].mxu1 %v9621_v59  ;;  %v9672_v59 = vld [vmem:[%s15187_s3 + $0x22c] ss:$16 sps:$4 sm:$0xff]  }
  0x83   : > { %8058 = vmatprep.mubr.msk.bf16.mxu0 %vm612_vm0, %v9622_v60  ;;  %8065 = vmatprep.mubr.msk.bf16.mxu1 %vm612_vm0, %v9622_v60  ;;  %v9667_v60 = vld [vmem:[%s15187_s3 + $0x220] ss:$16 sps:$4 sm:$0xff]  }
  0x84   : > { %1251 = vmatpush1.bf16.msra.mxu0 %v11153_v37  ;;  %1344 = vmatpush1.bf16.msra.mxu1 %v11156_v38 }
  0x85   : > { %1529 = vmatprep.subr.bf16.mxu0 %v10928_v0  ;;  %1622 = vmatprep.subr.bf16.mxu1 %v10933_v1  ;;  %v10566_v0 = vld [vmem:[%s15185_s1 + $0x8] ss:$16 sps:$4 sm:$0xff]   ;;  %v10567_v1 = vld [vmem:[%s15185_s1 + $0x24] ss:$16 sps:$4 sm:$0xff]  }
  0x8a   : > { %1022 = vmatmul.mubr.bf16.gmra.mrb[44].mxu0 %v9624_v61  ;;  %1115 = vmatmul.mubr.bf16.gmra.mrb[44].mxu1 %v9624_v61  ;;  %v9670_v61 = vld [vmem:[%s15187_s3 + $0x228] ss:$16 sps:$4 sm:$0xff]  }
  0x8b   : > { %8091 = vmatprep.mubr.msk.bf16.mxu0 %vm612_vm0, %v9627_v62  ;;  %8098 = vmatprep.mubr.msk.bf16.mxu1 %vm612_vm0, %v9627_v62  ;;  %v9673_v62 = vld [vmem:[%s15187_s3 + $0x240] ss:$16 sps:$4 sm:$0xff]  }
  0x92   : > { %1267 = vmatmul.mubr.bf16.vlgmr.msra.gmra.mrb[48].mxu0 %v9625_v63  ;;  %1360 = vmatmul.mubr.bf16.vlgmr.msra.gmra.mrb[48].mxu1 %v9625_v63  ;;  %v9675_v63 = vld [vmem:[%s15187_s3 + $0x244] ss:$16 sps:$4 sm:$0xff]  }
  0x93   : > { %1530 = vmatpush1.bf16.msra.mxu0 %v10565_v3  ;;  %1623 = vmatpush1.bf16.msra.mxu1 %v10566_v0  ;;  %v9678_v3 = vld [vmem:[%s15187_s3 + $0x24c] ss:$16 sps:$4 sm:$0xff]   ;;  %v9681_v0 = vld [vmem:[%s15187_s3 + $0x264] ss:$16 sps:$4 sm:$0xff]  }
  0x94   : > { %1531 = vmatprep.subr.bf16.mxu0 %v10567_v1  ;;  %1624 = vmatprep.subr.bf16.mxu1 %v10568_v4  ;;  %v9684_v1 = vld [vmem:[%s15187_s3 + $0x26c] ss:$16 sps:$4 sm:$0xff]   ;;  %v9679_v4 = vld [vmem:[%s15187_s3 + $0x260] ss:$16 sps:$4 sm:$0xff]  }
  0x95   : > { %8092 = vmatprep.mubr.msk.bf16.mxu0 %vm612_vm0, %v9628_v2  ;;  %8099 = vmatprep.mubr.msk.bf16.mxu1 %vm612_vm0, %v9628_v2  ;;  %v9676_v2 = vld [vmem:[%s15187_s3 + $0x248] ss:$16 sps:$4 sm:$0xff]  }
  0x97   : > { %1532 = vmatpush1.bf16.msra.mxu0 %v10569_v7  ;;  %1625 = vmatpush1.bf16.msra.mxu1 %v10570_v8  ;;  %v9687_v7 = vld [vmem:[%s15187_s3 + $0x284] ss:$16 sps:$4 sm:$0xff]   ;;  %v9688_v8 = vld [vmem:[%s15187_s3 + $0x288] ss:$16 sps:$4 sm:$0xff]  }
  0x98   : > { %1533 = vmatprep.subr.bf16.mxu0 %v10571_v9  ;;  %1626 = vmatprep.subr.bf16.mxu1 %v10572_v10  ;;  %v9690_v9 = vld [vmem:[%s15187_s3 + $0x28c] ss:$16 sps:$4 sm:$0xff]   ;;  %v9693_v10 = vld [vmem:[%s15187_s3 + $0x2a4] ss:$16 sps:$4 sm:$0xff]  }
  0x9a   : > { %1277 = vmatmul.mubr.bf16.gmra.mrb[52].mxu0 %v9630_v5  ;;  %1370 = vmatmul.mubr.bf16.gmra.mrb[52].mxu1 %v9630_v5  ;;  %v9682_v5 = vld [vmem:[%s15187_s3 + $0x268] ss:$16 sps:$4 sm:$0xff]  }
  0x9b   : > { %1534 = vmatpush1.bf16.msra.mxu0 %v10573_v11  ;;  %1627 = vmatpush1.bf16.msra.mxu1 %v10574_v12  ;;  %v9696_v11 = vld [vmem:[%s15187_s3 + $0x2ac] ss:$16 sps:$4 sm:$0xff]   ;;  %v9691_v12 = vld [vmem:[%s15187_s3 + $0x2a0] ss:$16 sps:$4 sm:$0xff]  }
  0x9c   : > { %8093 = vmatprep.mubr.msk.bf16.mxu0 %vm612_vm0, %v9631_v6  ;;  %8100 = vmatprep.mubr.msk.bf16.mxu1 %vm612_vm0, %v9631_v6  ;;  %v9685_v6 = vld [vmem:[%s15187_s3 + $0x280] ss:$16 sps:$4 sm:$0xff]  }
  0x9d   : > { %1535 = vmatprep.subr.bf16.mxu0 %v10575_v14  ;;  %1628 = vmatprep.subr.bf16.mxu1 %v10576_v15  ;;  %v9697_v14 = vld [vmem:[%s15187_s3 + $0x2c0] ss:$16 sps:$4 sm:$0xff]   ;;  %v9699_v15 = vld [vmem:[%s15187_s3 + $0x2c4] ss:$16 sps:$4 sm:$0xff]  }
  0x9f   : > { %1536 = vmatpush1.bf16.msra.mxu0 %v10577_v17  ;;  %1629 = vmatpush1.bf16.msra.mxu1 %v10578_v18  ;;  %v9702_v17 = vld [vmem:[%s15187_s3 + $0x2cc] ss:$16 sps:$4 sm:$0xff]   ;;  %v9705_v18 = vld [vmem:[%s15187_s3 + $0x2e4] ss:$16 sps:$4 sm:$0xff]  }
  0xa0   : > { %1537 = vmatprep.subr.bf16.mxu0 %v10579_v19  ;;  %1630 = vmatprep.subr.bf16.mxu1 %v10580_v20  ;;  %v9708_v19 = vld [vmem:[%s15187_s3 + $0x2ec] ss:$16 sps:$4 sm:$0xff]   ;;  %v9703_v20 = vld [vmem:[%s15187_s3 + $0x2e0] ss:$16 sps:$4 sm:$0xff]  }
  0xa2   : > { %1287 = vmatmul.mubr.bf16.gmra.mrb[56].mxu0 %v9633_v13  ;;  %1380 = vmatmul.mubr.bf16.gmra.mrb[56].mxu1 %v9633_v13  ;;  %v9694_v13 = vld [vmem:[%s15187_s3 + $0x2a8] ss:$16 sps:$4 sm:$0xff]  }
  0xa3   : > { %8094 = vmatprep.mubr.msk.bf16.mxu0 %vm612_vm0, %v9634_v16  ;;  %8101 = vmatprep.mubr.msk.bf16.mxu1 %vm612_vm0, %v9634_v16  ;;  %v9700_v16 = vld [vmem:[%s15187_s3 + $0x2c8] ss:$16 sps:$4 sm:$0xff]  }
  0xa4   : > { %1538 = vmatpush1.bf16.msra.mxu0 %v10581_v21  ;;  %1631 = vmatpush1.bf16.msra.mxu1 %v10582_v22  ;;  %v9706_v21 = vld [vmem:[%s15187_s3 + $0x2e8] ss:$16 sps:$4 sm:$0xff]   ;;  %v9709_v22 = vld [vmem:[%s15187_s3 + $0x300] ss:$16 sps:$4 sm:$0xff]  }
  0xa5   : > { %1539 = vmatprep.subr.bf16.mxu0 %v10583_v24  ;;  %1632 = vmatprep.subr.bf16.mxu1 %v10584_v25  ;;  %v9712_v24 = vld [vmem:[%s15187_s3 + $0x308] ss:$16 sps:$4 sm:$0xff]   ;;  %v9714_v25 = vld [vmem:[%s15187_s3 + $0x30c] ss:$16 sps:$4 sm:$0xff]  }
  0xa8   : > { %1540 = vmatpush1.bf16.msra.mxu0 %v10585_v27  ;;  %1633 = vmatpush1.bf16.msra.mxu1 %v10586_v28  ;;  %v9717_v28 = vld [vmem:[%s15187_s3 + $0x324] ss:$16 sps:$4 sm:$0xff]  }
  0xa9   : > { %1541 = vmatprep.subr.bf16.mxu0 %v10587_v29  ;;  %1634 = vmatprep.subr.bf16.mxu1 %v10588_v30  ;;  %v9720_v29 = vld [vmem:[%s15187_s3 + $0x32c] ss:$16 sps:$4 sm:$0xff]  }
  0xaa   : > { %1297 = vmatmul.mubr.bf16.gmra.mrb[60].mxu0 %v9636_v23  ;;  %1390 = vmatmul.mubr.bf16.gmra.mrb[60].mxu1 %v9636_v23  ;;  %v9711_v23 = vld [vmem:[%s15187_s3 + $0x304] ss:$16 sps:$4 sm:$0xff]  }
  0xab   : > { %8095 = vmatprep.mubr.msk.bf16.mxu0 %vm612_vm0, %v9637_v26  ;;  %8102 = vmatprep.mubr.msk.bf16.mxu1 %vm612_vm0, %v9637_v26 }
  0xac   : > { %1542 = vmatpush1.bf16.msra.mxu0 %v10589_v32  ;;  %1635 = vmatpush1.bf16.msra.mxu1 %v10590_v33  ;;  %v9715_v33 = vld [vmem:[%s15187_s3 + $0x320] ss:$16 sps:$4 sm:$0xff]  }
  0xad   : > { %1543 = vmatprep.subr.bf16.mxu0 %v10591_v34  ;;  %1636 = vmatprep.subr.bf16.mxu1 %v10592_v35  ;;  %v9718_v34 = vld [vmem:[%s15187_s3 + $0x328] ss:$16 sps:$4 sm:$0xff]  }
  0xb0   : > { %1544 = vmatpush1.bf16.msra.mxu0 %v10593_v39  ;;  %1637 = vmatpush1.bf16.msra.mxu1 %v10594_v40 }
  0xb1   : > { %8128 = vmatprep.subr.msk.bf16.mxu0 %vm631_vm1, %v10595_v41  ;;  %8135 = vmatprep.subr.msk.bf16.mxu1 %vm631_vm1, %v10596_v42 }
  0xb2   : > { %1307 = vmatmul.mubr.bf16.gmra.mrb[64].mxu0 %v9639_v31  ;;  %1400 = vmatmul.mubr.bf16.gmra.mrb[64].mxu1 %v9639_v31 }
  0xb3   : > { %8096 = vmatprep.mubr.msk.bf16.mxu0 %vm612_vm0, %v9640_v36  ;;  %8103 = vmatprep.mubr.msk.bf16.mxu1 %vm612_vm0, %v9640_v36 }
  0xb4   : > { %1546 = vmatpush1.bf16.msra.mxu0 %v11153_v37  ;;  %1639 = vmatpush1.bf16.msra.mxu1 %v11156_v38  ;;  %v9648_v37 = vld [vmem:[%s11087_s28 + $0x130] ss:$8 sps:$4 sm:$0xff]   ;;  %v9649_v38 = vld [vmem:[%s11087_s28 + $0x144] ss:$8 sps:$4 sm:$0xff]  }
  0xb5   : > { %2368 = vmatprep.subr.bf16.mxu0 %v9663_v53  ;;  %2441 = vmatprep.subr.bf16.mxu1 %v9666_v54  ;;  %v9727_v53 = vld [vmem:[%s15187_s3 + $0x360] ss:$16 sps:$4 sm:$0xff]   ;;  %v9730_v54 = vld [vmem:[%s15187_s3 + $0x368] ss:$16 sps:$4 sm:$0xff]  }
  0xba   : > { %1317 = vmatmul.mubr.bf16.gmra.mrb[68].mxu0 %v9642_v43  ;;  %1410 = vmatmul.mubr.bf16.gmra.mrb[68].mxu1 %v9642_v43 }
  0xbb   : > { %8129 = vmatprep.mubr.msk.bf16.mxu0 %vm612_vm0, %v9645_v44  ;;  %8136 = vmatprep.mubr.msk.bf16.mxu1 %vm612_vm0, %v9645_v44  ;;  %v9721_v44 = vld [vmem:[%s15187_s3 + $0x340] ss:$16 sps:$4 sm:$0xff]  }
  0xc2   : > { %1562 = vmatmul.mubr.bf16.vlgmr.msra.gmra.mrb[72].mxu0 %v9643_v45  ;;  %1655 = vmatmul.mubr.bf16.vlgmr.msra.gmra.mrb[72].mxu1 %v9643_v45  ;;  %v9723_v45 = vld [vmem:[%s15187_s3 + $0x344] ss:$16 sps:$4 sm:$0xff]  }
  0xc3   : > { %8130 = vmatprep.mubr.msk.bf16.mxu0 %vm612_vm0, %v9646_v46  ;;  %8137 = vmatprep.mubr.msk.bf16.mxu1 %vm612_vm0, %v9646_v46  ;;  %v9724_v46 = vld [vmem:[%s15187_s3 + $0x348] ss:$16 sps:$4 sm:$0xff]  }
  0xc4   : > { %2369 = vmatpush1.bf16.msra.mxu0 %v9661_v55  ;;  %2442 = vmatpush1.bf16.msra.mxu1 %v9664_v56 }
  0xc5   : > { %2370 = vmatprep.subr.bf16.mxu0 %v9669_v58  ;;  %2443 = vmatprep.subr.bf16.mxu1 %v9672_v59 }
  0xc8   : > { %2371 = vmatpush1.bf16.msra.mxu0 %v9667_v60  ;;  %2444 = vmatpush1.bf16.msra.mxu1 %v9670_v61 }
  0xc9   : > { %2372 = vmatprep.subr.bf16.mxu0 %v9675_v63  ;;  %2445 = vmatprep.subr.bf16.mxu1 %v9678_v3  ;;  %v9735_v63 = vld [vmem:[%s15187_s3 + $0x384] ss:$16 sps:$4 sm:$0xff]   ;;  %v9738_v3 = vld [vmem:[%s15187_s3 + $0x38c] ss:$16 sps:$4 sm:$0xff]  }
  0xca   : > { %1572 = vmatmul.mubr.bf16.gmra.mrb[76].mxu0 %v9648_v37  ;;  %1665 = vmatmul.mubr.bf16.gmra.mrb[76].mxu1 %v9648_v37  ;;  %v9726_v37 = vld [vmem:[%s15187_s3 + $0x34c] ss:$16 sps:$4 sm:$0xff]  }
  0xcb   : > { %8131 = vmatprep.mubr.msk.bf16.mxu0 %vm612_vm0, %v9649_v38  ;;  %8138 = vmatprep.mubr.msk.bf16.mxu1 %vm612_vm0, %v9649_v38 }
  0xcc   : > { %2373 = vmatpush1.bf16.msra.mxu0 %v9673_v62  ;;  %2446 = vmatpush1.bf16.msra.mxu1 %v9676_v2  ;;  %v9733_v62 = vld [vmem:[%s15187_s3 + $0x380] ss:$16 sps:$4 sm:$0xff]   ;;  %v9736_v2 = vld [vmem:[%s15187_s3 + $0x388] ss:$16 sps:$4 sm:$0xff]  }
  0xcd   : > { %2374 = vmatprep.subr.bf16.mxu0 %v9681_v0  ;;  %2447 = vmatprep.subr.bf16.mxu1 %v9684_v1 }
  0xd0   : > { %2375 = vmatpush1.bf16.msra.mxu0 %v9679_v4  ;;  %2448 = vmatpush1.bf16.msra.mxu1 %v9682_v5  ;;  %v9741_v4 = vld [vmem:[%s15187_s3 + $0x3a4] ss:$16 sps:$4 sm:$0xff]   ;;  %v9744_v5 = vld [vmem:[%s15187_s3 + $0x3ac] ss:$16 sps:$4 sm:$0xff]  }
  0xd1   : > { %2376 = vmatprep.subr.bf16.mxu0 %v9687_v7  ;;  %2449 = vmatprep.subr.bf16.mxu1 %v9690_v9  ;;  %v9739_v9 = vld [vmem:[%s15187_s3 + $0x3a0] ss:$16 sps:$4 sm:$0xff]  }
  0xd2   : > { %1582 = vmatmul.mubr.bf16.gmra.mrb[80].mxu0 %v9651_v47  ;;  %1675 = vmatmul.mubr.bf16.gmra.mrb[80].mxu1 %v9651_v47 }
  0xd3   : > { %8132 = vmatprep.mubr.msk.bf16.mxu0 %vm612_vm0, %v9652_v48  ;;  %8139 = vmatprep.mubr.msk.bf16.mxu1 %vm612_vm0, %v9652_v48  ;;  %v9729_v48 = vld [vmem:[%s15187_s3 + $0x364] ss:$16 sps:$4 sm:$0xff]  }
  0xd4   : > { %2377 = vmatpush1.bf16.msra.mxu0 %v9685_v6  ;;  %2450 = vmatpush1.bf16.msra.mxu1 %v9688_v8 }
  0xd5   : > { %2378 = vmatprep.subr.bf16.mxu0 %v9693_v10  ;;  %2451 = vmatprep.subr.bf16.mxu1 %v9696_v11  ;;  %v9742_v10 = vld [vmem:[%s15187_s3 + $0x3a8] ss:$16 sps:$4 sm:$0xff]  }
  0xd8   : > { %2379 = vmatpush1.bf16.msra.mxu0 %v9691_v12  ;;  %2452 = vmatpush1.bf16.msra.mxu1 %v9694_v13 }
  0xd9   : > { %2380 = vmatprep.subr.bf16.mxu0 %v9699_v15  ;;  %2453 = vmatprep.subr.bf16.mxu1 %v9702_v17 }
  0xda   : > { %1592 = vmatmul.mubr.bf16.gmra.mrb[84].mxu0 %v9654_v49  ;;  %1685 = vmatmul.mubr.bf16.gmra.mrb[84].mxu1 %v9654_v49  ;;  %v9732_v49 = vld [vmem:[%s15187_s3 + $0x36c] ss:$16 sps:$4 sm:$0xff]  }
  0xdb   : > { %8133 = vmatprep.mubr.msk.bf16.mxu0 %vm612_vm0, %v9655_v50  ;;  %8140 = vmatprep.mubr.msk.bf16.mxu1 %vm612_vm0, %v9655_v50 }
  0xdc   : > { %2381 = vmatpush1.bf16.msra.mxu0 %v9697_v14  ;;  %2454 = vmatpush1.bf16.msra.mxu1 %v9700_v16 }
  0xdd   : > { %2382 = vmatprep.subr.bf16.mxu0 %v9705_v18  ;;  %2455 = vmatprep.subr.bf16.mxu1 %v9708_v19  ;;  %v9747_v18 = vld [vmem:[%s15187_s3 + $0x3c4] ss:$16 sps:$4 sm:$0xff]   ;;  %v9750_v19 = vld [vmem:[%s15187_s3 + $0x3cc] ss:$16 sps:$4 sm:$0xff]  }
  0xe0   : > { %2383 = vmatpush1.bf16.msra.mxu0 %v9703_v20  ;;  %2456 = vmatpush1.bf16.msra.mxu1 %v9706_v21  ;;  %v9745_v20 = vld [vmem:[%s15187_s3 + $0x3c0] ss:$16 sps:$4 sm:$0xff]   ;;  %v9748_v21 = vld [vmem:[%s15187_s3 + $0x3c8] ss:$16 sps:$4 sm:$0xff]  }
  0xe1   : > { %2384 = vmatprep.subr.bf16.mxu0 %v9711_v23  ;;  %2457 = vmatprep.subr.bf16.mxu1 %v9714_v25  ;;  %v9756_v25 = vld [vmem:[%s15187_s3 + $0x3ec] ss:$16 sps:$4 sm:$0xff]  }
  0xe2   : > { %1602 = vmatmul.mubr.bf16.gmra.mrb[88].mxu0 %v9657_v51  ;;  %1695 = vmatmul.mubr.bf16.gmra.mrb[88].mxu1 %v9657_v51 }
  0xe3   : > { %8134 = vmatprep.mubr.msk.bf16.mxu0 %vm612_vm0, %v9658_v52  ;;  %8141 = vmatprep.mubr.msk.bf16.mxu1 %vm612_vm0, %v9658_v52 }
  0xe4   : > { %2385 = vmatpush1.bf16.msra.mxu0 %v9709_v22  ;;  %2458 = vmatpush1.bf16.msra.mxu1 %v9712_v24  ;;  %v9753_v24 = vld [vmem:[%s15187_s3 + $0x3e4] ss:$16 sps:$4 sm:$0xff]  }
  0xe5   : > { %2386 = vmatprep.subr.bf16.mxu0 %v9717_v28  ;;  %2459 = vmatprep.subr.bf16.mxu1 %v9720_v29 }
  0xe8   : > { %2387 = vmatpush1.bf16.msra.mxu0 %v9715_v33  ;;  %2460 = vmatpush1.bf16.msra.mxu1 %v9718_v34  ;;  %v9751_v34 = vld [vmem:[%s15187_s3 + $0x3e0] ss:$16 sps:$4 sm:$0xff]  }
  0xe9   : > { %2388 = vmatprep.subr.bf16.mxu0 %v9723_v45  ;;  %2461 = vmatprep.subr.bf16.mxu1 %v9726_v37 }
  0xea   : > { %1612 = vmatmul.mubr.bf16.gmra.mrb[92].mxu0 %v9660_v57  ;;  %1705 = vmatmul.mubr.bf16.gmra.mrb[92].mxu1 %v9660_v57 }
  0xec   : > { %2389 = vmatpush1.bf16.msra.mxu0 %v9721_v44  ;;  %2462 = vmatpush1.bf16.msra.mxu1 %v9724_v46  ;;  %v9754_v44 = vld [vmem:[%s15187_s3 + $0x3e8] ss:$16 sps:$4 sm:$0xff]  }
  0xed   : > { %2390 = vmatprep.subr.bf16.mxu0 %v9729_v48  ;;  %2463 = vmatprep.subr.bf16.mxu1 %v9732_v49 }
  0xf0   : > { %2391 = vmatpush1.bf16.msra.mxu0 %v9727_v53  ;;  %2464 = vmatpush1.bf16.msra.mxu1 %v9730_v54  ;;  %v1739_v54 = vld [vmem:[%s15186_s2] sm:$0x3] }
  0xf1   : > { %2392 = vmatprep.subr.bf16.mxu0 %v9735_v63  ;;  %2465 = vmatprep.subr.bf16.mxu1 %v9738_v3  ;;  %v9762_v63 = vld [vmem:[%s15187_s3 + $0xc] ss:$16 sps:$4 sm:$0xff]  }
  0xf4   : > { %2393 = vmatpush1.bf16.msra.mxu0 %v9733_v62  ;;  %2466 = vmatpush1.bf16.msra.mxu1 %v9736_v2  ;;  %v9759_v62 = vld [vmem:[%s15187_s3 + $0x4] ss:$16 sps:$4 sm:$0xff]  }
  0xf5   : > { %2394 = vmatprep.subr.bf16.mxu0 %v9741_v4  ;;  %2467 = vmatprep.subr.bf16.mxu1 %v9744_v5 }
  0xf8   : > { %2395 = vmatpush1.bf16.msra.mxu0 %v9739_v9  ;;  %2468 = vmatpush1.bf16.msra.mxu1 %v9742_v10 }
  0xf9   : > { %2396 = vmatprep.subr.bf16.mxu0 %v9747_v18  ;;  %2469 = vmatprep.subr.bf16.mxu1 %v9750_v19 }
  0xfc   : > { %2397 = vmatpush1.bf16.msra.mxu0 %v9745_v20  ;;  %2470 = vmatpush1.bf16.msra.mxu1 %v9748_v21 }
  0xfd   : > { %2398 = vmatprep.subr.bf16.mxu0 %v9753_v24  ;;  %2471 = vmatprep.subr.bf16.mxu1 %v9756_v25 }
 0x100   : > { %2399 = vmatpush1.bf16.msra.mxu0 %v9751_v34  ;;  %2472 = vmatpush1.bf16.msra.mxu1 %v9754_v44  ;;  %v1765_v34 = vlaneseq }
 0x101   : > { %2834 = vmatprep.subr.bf16.mxu0 %v9759_v62  ;;  %2907 = vmatprep.subr.bf16.mxu1 %v9762_v63 }
 0x102   : > { %v11759_v20 = vshrl.u32 %v1765_v34, 7 }
 0x104   : > { %15264 = vst [vmem:[#allocation2_spill] sm:$0xff] %v11759_v20  ;;  %v11776_v34 = vsub.s32 0, %v11759_v20  ;;  %v11782_v14 = vsub.s32 1, %v11759_v20 }
 0x105   : > { %v11539_v26 = vpop.f32.mrb[0].mxu0  ;;  %v11541_v27 = vpop.f32.mrb[0].mxu1 }
 0x106   : > { %v830_v30 = vmax.f32 %v11539_v26, %v11541_v27  ;;  %v11551_v31 = vpop.f32.mrb[1].mxu0  ;;  %v11553_v32 = vpop.f32.mrb[1].mxu1  ;;  %15268 = vst [vmem:[#allocation6_spill] sm:$0xff] %v11776_v34  ;;  %15269 = vst [vmem:[#allocation7_spill] sm:$0xff] %v11782_v14  ;;  %v11785_v61 = vrot.slane %v1739_v54, %v11776_v34  ;;  %v11788_v63 = vrot.slane %v1739_v54, %v11782_v14 }
 0x107   : > { %v11563_v36 = vpop.f32.mrb[2].mxu0  ;;  %v11565_v39 = vpop.f32.mrb[2].mxu1 }
 0x108   : > { %v11569_v41 = vpop.f32.mrb[3].mxu0  ;;  %v11571_v42 = vpop.f32.mrb[3].mxu1 }
 0x109   : > { %v15272_v26 = vmax.f32 %v11569_v41, %v11571_v42 }
 0x10d   : > { %v11587_v38 = vpop.f32.mrb[4].mxu0  ;;  %v11589_v47 = vpop.f32.mrb[4].mxu1 }
 0x10e   : > { %v11599_v51 = vpop.f32.mrb[5].mxu0  ;;  %v11601_v52 = vpop.f32.mrb[5].mxu1  ;;  %v15274_v41 = vmax.f32 %v11587_v38, %v11589_v47 }
 0x10f   : > { %v11611_v56 = vpop.f32.mrb[6].mxu0  ;;  %v11613_v57 = vpop.f32.mrb[6].mxu1 }
 0x110   : > { %v11617_v59 = vpop.f32.mrb[7].mxu0  ;;  %v11619_v60 = vpop.f32.mrb[7].mxu1 }
 0x111   : > { %v15277_v38 = vmax.f32 %v11617_v59, %v11619_v60 }
 0x115   : > { %v11635_v0 = vpop.f32.mrb[8].mxu0  ;;  %v11637_v1 = vpop.f32.mrb[8].mxu1 }
 0x116   : > { %v11647_v7 = vpop.f32.mrb[9].mxu0  ;;  %v11649_v8 = vpop.f32.mrb[9].mxu1  ;;  %v15279_v59 = vmax.f32 %v11635_v0, %v11637_v1 }
 0x117   : > { %v11659_v12 = vpop.f32.mrb[10].mxu0  ;;  %v11661_v13 = vpop.f32.mrb[10].mxu1 }
 0x118   : > { %v11665_v15 = vpop.f32.mrb[11].mxu0  ;;  %v11667_v16 = vpop.f32.mrb[11].mxu1 }
 0x119   : > { %v15283_v0 = vmax.f32 %v11665_v15, %v11667_v16 }
 0x11d   : > { %v11683_v22 = vpop.f32.mrb[12].mxu0  ;;  %v11685_v23 = vpop.f32.mrb[12].mxu1 }
 0x11e   : > { %v11695_v29 = vpop.f32.mrb[13].mxu0  ;;  %v11697_v33 = vpop.f32.mrb[13].mxu1  ;;  %v15285_v15 = vmax.f32 %v11683_v22, %v11685_v23 }
 0x11f   : > { %v11707_v46 = vpop.f32.mrb[14].mxu0  ;;  %v11709_v37 = vpop.f32.mrb[14].mxu1 }
 0x120   : > { %v11713_v49 = vpop.f32.mrb[15].mxu0  ;;  %v11715_v53 = vpop.f32.mrb[15].mxu1 }
 0x121   : > { %v15289_v22 = vmax.f32 %v11713_v49, %v11715_v53 }
 0x125   : > { %v11725_v2 = vpop.f32.mrb[16].mxu0  ;;  %v11727_v3 = vpop.f32.mrb[16].mxu1 }
 0x126   : > { %v11731_v5 = vpop.f32.mrb[17].mxu0  ;;  %v11733_v9 = vpop.f32.mrb[17].mxu1  ;;  %v15291_v49 = vmax.f32 %v11725_v2, %v11727_v3 }
 0x127   : > { %v11737_v18 = vpop.f32.mrb[18].mxu0  ;;  %v11739_v19 = vpop.f32.mrb[18].mxu1 }
 0x128   : > { %v11743_v21 = vpop.f32.mrb[19].mxu0  ;;  %v11745_v24 = vpop.f32.mrb[19].mxu1 }
 0x129   : > { %v15295_v2 = vmax.f32 %v11743_v21, %v11745_v24 }
 0x12d   : > { %v11749_v44 = vpop.f32.mrb[20].mxu0  ;;  %v11751_v62 = vpop.f32.mrb[20].mxu1 }
 0x12e   : > { %v11755_v10 = vpop.f32.mrb[21].mxu0  ;;  %v11757_v4 = vpop.f32.mrb[21].mxu1  ;;  %v15297_v21 = vmax.f32 %v11749_v44, %v11751_v62 }
 0x12f   : > { %v11763_v48 = vpop.f32.mrb[22].mxu0  ;;  %v11765_v25 = vpop.f32.mrb[22].mxu1 }
 0x130   : > { %15265 = vst [vmem:[#allocation3_spill] sm:$0xff] %v11765_v25  ;;  %v11769_v28 = vpop.f32.mrb[23].mxu0  ;;  %v11771_v17 = vpop.f32.mrb[23].mxu1 }
 0x131   : > { %15266 = vst [vmem:[#allocation4_spill] sm:$0xff] %v11769_v28  ;;  %15267 = vst [vmem:[#allocation5_spill] sm:$0xff] %v11771_v17 }
 0x135   : > { %v973_v11 = vpop.f32.mrb[24].mxu0  ;;  %v1066_v6 = vpop.f32.mrb[24].mxu1 }
 0x136   : > { %v1125_v45 = vmax.f32 %v973_v11, %v1066_v6  ;;  %v975_v58 = vpop.f32.mrb[25].mxu0  ;;  %v1068_v55 = vpop.f32.mrb[25].mxu1  ;;  %v15270_v6 = vmax.f32 %v11551_v31, %v11553_v32 }
 0x137   : > { %v1126_v50 = vmax.f32 %v975_v58, %v1068_v55  ;;  %v977_v43 = vpop.f32.mrb[26].mxu0  ;;  %v1070_v40 = vpop.f32.mrb[26].mxu1  ;;  %v15271_v55 = vmax.f32 %v11563_v36, %v11565_v39 }
 0x138   : > { %v1740_v35 = vmax.f32 %v830_v30, %v1125_v45  ;;  %v1127_v20 = vmax.f32 %v977_v43, %v1070_v40  ;;  %v979_v17 = vpop.f32.mrb[27].mxu0  ;;  %v1072_v28 = vpop.f32.mrb[27].mxu1  ;;  %v15302_v44 = vld [vmem:[#allocation4_spill] sm:$0xff]  ;;  %v15303_v62 = vld [vmem:[#allocation5_spill] sm:$0xff] }
 0x139   : > { %v1741_v11 = vmax.f32 %v15270_v6, %v1126_v50  ;;  %v1128_v34 = vmax.f32 %v979_v17, %v1072_v28 }
 0x13a   : > { %v1775_v25 = vadd.f32 %v11785_v61, %v1740_v35  ;;  %v1742_v58 = vmax.f32 %v15271_v55, %v1127_v20 }
 0x13b   : > { %v1776_v54 = vadd.f32 %v11788_v63, %v1741_v11  ;;  %v1743_v27 = vmax.f32 %v15272_v26, %v1128_v34 }
 0x13c   : > { %v1777_v30 = vadd.f32 %v11785_v61, %v1742_v58  ;;  %v1799_v32 = vmax.f32 %v1775_v25, 0.0  ;;  %v15275_v25 = vmax.f32 %v11599_v51, %v11601_v52 }
 0x13d   : > { %v1778_v40 = vadd.f32 %v11788_v63, %v1743_v27  ;;  %v983_v43 = vpop.f32.mrb[28].mxu0  ;;  %v1076_v31 = vpop.f32.mrb[28].mxu1  ;;  %v1800_v45 = vmax.f32 %v1776_v54, 0.0 }
 0x13e   : > { %v1801_v50 = vmax.f32 %v1777_v30, 0.0  ;;  %v1129_v17 = vmax.f32 %v983_v43, %v1076_v31  ;;  %v985_v35 = vpop.f32.mrb[29].mxu0  ;;  %v1078_v28 = vpop.f32.mrb[29].mxu1 }
 0x13f   : > { %v1802_v36 = vmax.f32 %v1778_v40, 0.0  ;;  %v1130_v39 = vmax.f32 %v985_v35, %v1078_v28  ;;  %v987_v20 = vpop.f32.mrb[30].mxu0  ;;  %v1080_v6 = vpop.f32.mrb[30].mxu1  ;;  %v15276_v40 = vmax.f32 %v11611_v56, %v11613_v57 }
 0x140   : > { %v11806_v11 = vpack.c.bf16 %v1801_v50, %v1799_v32  ;;  %v1744_v42 = vmax.f32 %v15274_v41, %v1129_v17  ;;  %v1131_v34 = vmax.f32 %v987_v20, %v1080_v6  ;;  %v989_v55 = vpop.f32.mrb[31].mxu0  ;;  %v1082_v58 = vpop.f32.mrb[31].mxu1 }
 0x141   : > { %v1745_v26 = vmax.f32 %v15275_v25, %v1130_v39  ;;  %v1132_v27 = vmax.f32 %v989_v55, %v1082_v58  ;;  %v11814_v30 = vpack.c.bf16 %v1802_v36, %v1800_v45  ;;  %v15281_v25 = vmax.f32 %v11647_v7, %v11649_v8 }
 0x142   : > { %15273 = vst [vmem:[#allocation8_spill] sm:$0xff] %v11806_v11  ;;  %v1779_v54 = vadd.f32 %v11785_v61, %v1744_v42  ;;  %v1746_v43 = vmax.f32 %v15276_v40, %v1131_v34  ;;  %v15282_v40 = vmax.f32 %v11659_v12, %v11661_v13 }
 0x143   : > { %v1780_v31 = vadd.f32 %v11788_v63, %v1745_v26  ;;  %v1747_v47 = vmax.f32 %v15277_v38, %v1132_v27 }
 0x144   : > { %v1781_v32 = vadd.f32 %v11785_v61, %v1746_v43  ;;  %v1803_v17 = vmax.f32 %v1779_v54, 0.0 }
 0x145   : > { %v1782_v51 = vadd.f32 %v11788_v63, %v1747_v47  ;;  %v993_v52 = vpop.f32.mrb[32].mxu0  ;;  %v1086_v50 = vpop.f32.mrb[32].mxu1  ;;  %v1804_v39 = vmax.f32 %v1780_v31, 0.0 }
 0x146   : > { %v1805_v35 = vmax.f32 %v1781_v32, 0.0  ;;  %v1133_v28 = vmax.f32 %v993_v52, %v1086_v50  ;;  %v995_v45 = vpop.f32.mrb[33].mxu0  ;;  %v1088_v36 = vpop.f32.mrb[33].mxu1 }
 0x147   : > { %v1806_v56 = vmax.f32 %v1782_v51, 0.0  ;;  %v1134_v57 = vmax.f32 %v995_v45, %v1088_v36  ;;  %v997_v20 = vpop.f32.mrb[34].mxu0  ;;  %v1090_v6 = vpop.f32.mrb[34].mxu1 }
 0x148   : > { %v11826_v41 = vpack.c.bf16 %v1805_v35, %v1803_v17  ;;  %v1748_v60 = vmax.f32 %v15279_v59, %v1133_v28  ;;  %v1135_v42 = vmax.f32 %v997_v20, %v1090_v6  ;;  %v999_v34 = vpop.f32.mrb[35].mxu0  ;;  %v1092_v55 = vpop.f32.mrb[35].mxu1  ;;  %v15287_v6 = vmax.f32 %v11695_v29, %v11697_v33 }
 0x149   : > { %v11831_v58 = vpack.c.bf16 %v1806_v56, %v1804_v39  ;;  %v1749_v26 = vmax.f32 %v15281_v25, %v1134_v57  ;;  %v1136_v27 = vmax.f32 %v999_v34, %v1092_v55  ;;  %v15288_v34 = vmax.f32 %v11707_v46, %v11709_v37 }
 0x14a   : > { %15278 = vst [vmem:[#allocation9_spill] sm:$0xff] %v11826_v41  ;;  %v1783_v54 = vadd.f32 %v11785_v61, %v1748_v60  ;;  %v1750_v43 = vmax.f32 %v15282_v40, %v1135_v42 }
 0x14b   : > { %15280 = vst [vmem:[#allocation10_spill] sm:$0xff] %v11831_v58  ;;  %v1784_v31 = vadd.f32 %v11788_v63, %v1749_v26  ;;  %v1751_v1 = vmax.f32 %v15283_v0, %v1136_v27 }
 0x14c   : > { %v1785_v38 = vadd.f32 %v11785_v61, %v1750_v43  ;;  %v1807_v8 = vmax.f32 %v1783_v54, 0.0 }
 0x14d   : > { %v1786_v47 = vadd.f32 %v11788_v63, %v1751_v1  ;;  %v1003_v32 = vpop.f32.mrb[36].mxu0  ;;  %v1096_v7 = vpop.f32.mrb[36].mxu1  ;;  %v1808_v35 = vmax.f32 %v1784_v31, 0.0 }
 0x14e   : > { %v1809_v51 = vmax.f32 %v1785_v38, 0.0  ;;  %v1137_v52 = vmax.f32 %v1003_v32, %v1096_v7  ;;  %v1005_v50 = vpop.f32.mrb[37].mxu0  ;;  %v1098_v17 = vpop.f32.mrb[37].mxu1 }
 0x14f   : > { %v1810_v12 = vmax.f32 %v1786_v47, 0.0  ;;  %v1138_v13 = vmax.f32 %v1005_v50, %v1098_v17  ;;  %v1007_v28 = vpop.f32.mrb[38].mxu0  ;;  %v1100_v45 = vpop.f32.mrb[38].mxu1  ;;  %v15293_v50 = vmax.f32 %v11731_v5, %v11733_v9 }
 0x150   : > { %v11846_v36 = vpack.c.bf16 %v1809_v51, %v1807_v8  ;;  %v1752_v16 = vmax.f32 %v15285_v15, %v1137_v52  ;;  %v1139_v39 = vmax.f32 %v1007_v28, %v1100_v45  ;;  %v1009_v56 = vpop.f32.mrb[39].mxu0  ;;  %v1102_v57 = vpop.f32.mrb[39].mxu1 }
 0x151   : > { %v11851_v20 = vpack.c.bf16 %v1810_v12, %v1808_v35  ;;  %v1753_v59 = vmax.f32 %v15287_v6, %v1138_v13  ;;  %v1140_v60 = vmax.f32 %v1009_v56, %v1102_v57  ;;  %v15294_v13 = vmax.f32 %v11737_v18, %v11739_v19 }
 0x152   : > { %15284 = vst [vmem:[#allocation11_spill] sm:$0xff] %v11846_v36  ;;  %v1787_v42 = vadd.f32 %v11785_v61, %v1752_v16  ;;  %v1754_v55 = vmax.f32 %v15288_v34, %v1139_v39 }
 0x153   : > { %15286 = vst [vmem:[#allocation12_spill] sm:$0xff] %v11851_v20  ;;  %v1788_v25 = vadd.f32 %v11788_v63, %v1753_v59  ;;  %v1755_v23 = vmax.f32 %v15289_v22, %v1140_v60 }
 0x154   : > { %v1789_v26 = vadd.f32 %v11785_v61, %v1754_v55  ;;  %v1811_v33 = vmax.f32 %v1787_v42, 0.0 }
 0x155   : > { %v1790_v27 = vadd.f32 %v11788_v63, %v1755_v23  ;;  %v1013_v54 = vpop.f32.mrb[40].mxu0  ;;  %v1106_v29 = vpop.f32.mrb[40].mxu1  ;;  %v1812_v1 = vmax.f32 %v1788_v25, 0.0 }
 0x156   : > { %v1813_v40 = vmax.f32 %v1789_v26, 0.0  ;;  %v1141_v43 = vmax.f32 %v1013_v54, %v1106_v29  ;;  %v1015_v31 = vpop.f32.mrb[41].mxu0  ;;  %v1108_v0 = vpop.f32.mrb[41].mxu1 }
 0x157   : > { %v1814_v46 = vmax.f32 %v1790_v27, 0.0  ;;  %v1142_v37 = vmax.f32 %v1015_v31, %v1108_v0  ;;  %v1017_v38 = vpop.f32.mrb[42].mxu0  ;;  %v1110_v47 = vpop.f32.mrb[42].mxu1  ;;  %v15299_v27 = vmax.f32 %v11755_v10, %v11757_v4 }
 0x158   : > { %v11866_v32 = vpack.c.bf16 %v1813_v40, %v1811_v33  ;;  %v1756_v53 = vmax.f32 %v15291_v49, %v1141_v43  ;;  %v1143_v7 = vmax.f32 %v1017_v38, %v1110_v47  ;;  %v1019_v8 = vpop.f32.mrb[43].mxu0  ;;  %v1112_v51 = vpop.f32.mrb[43].mxu1  ;;  %v15300_v40 = vld [vmem:[#allocation3_spill] sm:$0xff] }
 0x159   : > { %v11871_v52 = vpack.c.bf16 %v1814_v46, %v1812_v1  ;;  %v1757_v17 = vmax.f32 %v15293_v50, %v1142_v37  ;;  %v1144_v35 = vmax.f32 %v1019_v8, %v1112_v51  ;;  %v15301_v43 = vmax.f32 %v11763_v48, %v15300_v40 }
 0x15a   : > { %15290 = vst [vmem:[#allocation13_spill] sm:$0xff] %v11866_v32  ;;  %v1791_v12 = vadd.f32 %v11785_v61, %v1756_v53  ;;  %v1758_v28 = vmax.f32 %v15294_v13, %v1143_v7  ;;  %v15304_v1 = vmax.f32 %v15302_v44, %v15303_v62 }
 0x15b   : > { %15292 = vst [vmem:[#allocation14_spill] sm:$0xff] %v11871_v52  ;;  %v1792_v45 = vadd.f32 %v11788_v63, %v1757_v17  ;;  %v1759_v3 = vmax.f32 %v15295_v2, %v1144_v35 }
 0x15c   : > { %v1793_v15 = vadd.f32 %v11785_v61, %v1758_v28  ;;  %v1815_v9 = vmax.f32 %v1791_v12, 0.0 }
 0x15d   : > { %v1794_v16 = vadd.f32 %v11788_v63, %v1759_v3  ;;  %v1023_v39 = vpop.f32.mrb[44].mxu0  ;;  %v1116_v5 = vpop.f32.mrb[44].mxu1  ;;  %v1816_v60 = vmax.f32 %v1792_v45, 0.0 }
 0x15e   : > { %v1817_v56 = vmax.f32 %v1793_v15, 0.0  ;;  %v1145_v57 = vmax.f32 %v1023_v39, %v1116_v5  ;;  %v1025_v6 = vpop.f32.mrb[45].mxu0  ;;  %v1118_v59 = vpop.f32.mrb[45].mxu1 }
 0x15f   : > { %v1818_v18 = vmax.f32 %v1794_v16, 0.0  ;;  %v1146_v19 = vmax.f32 %v1025_v6, %v1118_v59  ;;  %v1027_v42 = vpop.f32.mrb[46].mxu0  ;;  %v1120_v34 = vpop.f32.mrb[46].mxu1 }
 0x160   : > { %v11886_v55 = vpack.c.bf16 %v1817_v56, %v1815_v9  ;;  %v1760_v24 = vmax.f32 %v15297_v21, %v1145_v57  ;;  %v1147_v25 = vmax.f32 %v1027_v42, %v1120_v34  ;;  %v1029_v22 = vpop.f32.mrb[47].mxu0  ;;  %v1122_v23 = vpop.f32.mrb[47].mxu1 }
 0x161   : > { %v11891_v26 = vpack.c.bf16 %v1818_v18, %v1816_v60  ;;  %v1761_v54 = vmax.f32 %v15299_v27, %v1146_v19  ;;  %v1148_v29 = vmax.f32 %v1029_v22, %v1122_v23 }
 0x162   : > { %15296 = vst [vmem:[#allocation15_spill] sm:$0xff] %v11886_v55  ;;  %v1795_v33 = vadd.f32 %v11785_v61, %v1760_v24  ;;  %v1762_v31 = vmax.f32 %v15301_v43, %v1147_v25 }
 0x163   : > { %15298 = vst [vmem:[#allocation16_spill] sm:$0xff] %v11891_v26  ;;  %v1796_v0 = vadd.f32 %v11788_v63, %v1761_v54  ;;  %v1763_v46 = vmax.f32 %v15304_v1, %v1148_v29 }
 0x164   : > { %v1797_v37 = vadd.f32 %v11785_v61, %v1762_v31  ;;  %v1819_v10 = vmax.f32 %v1795_v33, 0.0 }
 0x165   : > { %v1798_v38 = vadd.f32 %v11788_v63, %v1763_v46  ;;  %v11906_v47 = vpop.f32.mrb[48].mxu0  ;;  %v11908_v4 = vpop.f32.mrb[48].mxu1  ;;  %v1820_v8 = vmax.f32 %v1796_v0, 0.0 }
 0x166   : > { %v1821_v49 = vmax.f32 %v1797_v37, 0.0  ;;  %v11912_v53 = vpop.f32.mrb[49].mxu0  ;;  %v11914_v7 = vpop.f32.mrb[49].mxu1  ;;  %v15311_v41 = vmax.f32 %v11906_v47, %v11908_v4 }
 0x167   : > { %v1822_v51 = vmax.f32 %v1798_v38, 0.0  ;;  %v11918_v17 = vpop.f32.mrb[50].mxu0  ;;  %v11920_v35 = vpop.f32.mrb[50].mxu1 }
 0x168   : > { %v11922_v12 = vpack.c.bf16 %v1821_v49, %v1819_v10  ;;  %v11926_v28 = vpop.f32.mrb[51].mxu0  ;;  %v11928_v45 = vpop.f32.mrb[51].mxu1 }
 0x169   : > { %v11930_v2 = vpack.c.bf16 %v1822_v51, %v1820_v8  ;;  %v15314_v47 = vmax.f32 %v11926_v28, %v11928_v45 }
 0x16a   : > { %15305 = vst [vmem:[#allocation3_spill] sm:$0xff] %v11922_v12 }
 0x16b   : > { %15306 = vst [vmem:[#allocation4_spill] sm:$0xff] %v11930_v2 }
 0x16d   : > { %v11934_v15 = vpop.f32.mrb[52].mxu0  ;;  %v11936_v16 = vpop.f32.mrb[52].mxu1 }
 0x16e   : > { %v11940_v5 = vpop.f32.mrb[53].mxu0  ;;  %v11942_v9 = vpop.f32.mrb[53].mxu1  ;;  %v15315_v28 = vmax.f32 %v11934_v15, %v11936_v16 }
 0x16f   : > { %v11946_v57 = vpop.f32.mrb[54].mxu0  ;;  %v11948_v6 = vpop.f32.mrb[54].mxu1 }
 0x170   : > { %v11952_v60 = vpop.f32.mrb[55].mxu0  ;;  %v11954_v18 = vpop.f32.mrb[55].mxu1  ;;  %v15317_v16 = vmax.f32 %v11946_v57, %v11948_v6  ;;  %v9763_v6 = vld [vmem:[%s15187_s3 + $0x20] ss:$16 sps:$4 sm:$0xff]  }
 0x175   : > { %v11958_v42 = vpop.f32.mrb[56].mxu0  ;;  %v11960_v34 = vpop.f32.mrb[56].mxu1 }
 0x176   : > { %v11964_v24 = vpop.f32.mrb[57].mxu0  ;;  %v11966_v25 = vpop.f32.mrb[57].mxu1 }
 0x177   : > { %v11970_v23 = vpop.f32.mrb[58].mxu0  ;;  %v11972_v27 = vpop.f32.mrb[58].mxu1 }
 0x178   : > { %v11976_v29 = vpop.f32.mrb[59].mxu0  ;;  %v11978_v33 = vpop.f32.mrb[59].mxu1 }
 0x17d   : > { %v11982_v43 = vpop.f32.mrb[60].mxu0  ;;  %v11984_v31 = vpop.f32.mrb[60].mxu1 }
 0x17e   : > { %v11988_v44 = vpop.f32.mrb[61].mxu0  ;;  %v11990_v62 = vpop.f32.mrb[61].mxu1 }
 0x17f   : > { %v11994_v46 = vpop.f32.mrb[62].mxu0  ;;  %v11996_v37 = vpop.f32.mrb[62].mxu1 }
 0x180   : > { %v12000_v10 = vpop.f32.mrb[63].mxu0  ;;  %v12002_v49 = vpop.f32.mrb[63].mxu1 }
 0x185   : > { %v12006_v51 = vpop.f32.mrb[64].mxu0  ;;  %v12008_v0 = vpop.f32.mrb[64].mxu1 }
 0x186   : > { %v12012_v40 = vpop.f32.mrb[65].mxu0  ;;  %v12014_v54 = vpop.f32.mrb[65].mxu1 }
 0x187   : > { %v12018_v22 = vpop.f32.mrb[66].mxu0  ;;  %v12020_v21 = vpop.f32.mrb[66].mxu1 }
 0x188   : > { %v12024_v19 = vpop.f32.mrb[67].mxu0  ;;  %v12026_v59 = vpop.f32.mrb[67].mxu1 }
 0x18d   : > { %v12030_v56 = vpop.f32.mrb[68].mxu0  ;;  %v12032_v39 = vpop.f32.mrb[68].mxu1 }
 0x18e   : > { %v12036_v3 = vpop.f32.mrb[69].mxu0  ;;  %v12038_v13 = vpop.f32.mrb[69].mxu1 }
 0x18f   : > { %15307 = vst [vmem:[#allocation5_spill] sm:$0xff] %v12038_v13  ;;  %v12042_v50 = vpop.f32.mrb[70].mxu0  ;;  %v12044_v48 = vpop.f32.mrb[70].mxu1 }
 0x190   : > { %15308 = vst [vmem:[#allocation17_spill] sm:$0xff] %v12042_v50  ;;  %15309 = vst [vmem:[#allocation18_spill] sm:$0xff] %v12044_v48  ;;  %v12048_v14 = vpop.f32.mrb[71].mxu0  ;;  %v12050_v12 = vpop.f32.mrb[71].mxu1  ;;  %v15312_v50 = vmax.f32 %v11912_v53, %v11914_v7 }
 0x191   : > { %15310 = vst [vmem:[#allocation19_spill] sm:$0xff] %v12050_v12 }
 0x195   : > { %v1563_v2 = vpop.f32.mrb[72].mxu0  ;;  %v1656_v55 = vpop.f32.mrb[72].mxu1 }
 0x196   : > { %v1715_v26 = vmax.f32 %v1563_v2, %v1656_v55  ;;  %v1565_v32 = vpop.f32.mrb[73].mxu0  ;;  %v1658_v52 = vpop.f32.mrb[73].mxu1  ;;  %v15313_v55 = vmax.f32 %v11918_v17, %v11920_v35 }
 0x197   : > { %v1716_v8 = vmax.f32 %v1565_v32, %v1658_v52  ;;  %v1567_v36 = vpop.f32.mrb[74].mxu0  ;;  %v1660_v20 = vpop.f32.mrb[74].mxu1 }
 0x198   : > { %v1835_v58 = vmax.f32 %v15311_v41, %v1715_v26  ;;  %v1717_v1 = vmax.f32 %v1567_v36, %v1660_v20  ;;  %v1569_v11 = vpop.f32.mrb[75].mxu0  ;;  %v1662_v48 = vpop.f32.mrb[75].mxu1 }
 0x199   : > { %v1836_v13 = vmax.f32 %v15312_v50, %v1716_v8  ;;  %v1718_v38 = vmax.f32 %v1569_v11, %v1662_v48 }
 0x19a   : > { %v1859_v12 = vadd.f32 %v1835_v58, %v11785_v61  ;;  %v1837_v32 = vmax.f32 %v15313_v55, %v1717_v1 }
 0x19b   : > { %v1860_v52 = vadd.f32 %v1836_v13, %v11788_v63  ;;  %v1838_v41 = vmax.f32 %v15314_v47, %v1718_v38 }
 0x19c   : > { %v1861_v36 = vadd.f32 %v1837_v32, %v11785_v61  ;;  %v1883_v53 = vmax.f32 %v1859_v12, 0.0  ;;  %v15316_v12 = vmax.f32 %v11940_v5, %v11942_v9  ;;  %v9765_v5 = vld [vmem:[%s15187_s3 + $0x24] ss:$16 sps:$4 sm:$0xff]   ;;  %v9768_v9 = vld [vmem:[%s15187_s3 + $0x2c] ss:$16 sps:$4 sm:$0xff]  }
 0x19d   : > { %v1862_v20 = vadd.f32 %v1838_v41, %v11788_v63  ;;  %v1573_v26 = vpop.f32.mrb[76].mxu0  ;;  %v1666_v4 = vpop.f32.mrb[76].mxu1  ;;  %v1884_v50 = vmax.f32 %v1860_v52, 0.0  ;;  %v9757_v41 = vld [vmem:[%s15187_s3] ss:$16 sps:$4 sm:$0xff]  }
 0x19e   : > { %v1885_v11 = vmax.f32 %v1861_v36, 0.0  ;;  %v1719_v48 = vmax.f32 %v1573_v26, %v1666_v4  ;;  %v1575_v58 = vpop.f32.mrb[77].mxu0  ;;  %v1668_v7 = vpop.f32.mrb[77].mxu1  ;;  %v9760_v36 = vld [vmem:[%s15187_s3 + $0x8] ss:$16 sps:$4 sm:$0xff]   ;;  %v15318_v4 = vmax.f32 %v11952_v60, %v11954_v18 }
 0x19f   : > { %v1886_v17 = vmax.f32 %v1862_v20, 0.0  ;;  %v1720_v35 = vmax.f32 %v1575_v58, %v1668_v7  ;;  %v1577_v2 = vpop.f32.mrb[78].mxu0  ;;  %v1670_v13 = vpop.f32.mrb[78].mxu1  ;;  %v9771_v58 = vld [vmem:[%s15187_s3 + $0x44] ss:$16 sps:$4 sm:$0xff]  }
 0x1a0   : > { %v12070_v1 = vpack.c.bf16 %v1885_v11, %v1883_v53  ;;  %v1839_v45 = vmax.f32 %v15315_v28, %v1719_v48  ;;  %v1721_v38 = vmax.f32 %v1577_v2, %v1670_v13  ;;  %v1579_v8 = vpop.f32.mrb[79].mxu0  ;;  %v1672_v55 = vpop.f32.mrb[79].mxu1  ;;  %v9766_v48 = vld [vmem:[%s15187_s3 + $0x28] ss:$16 sps:$4 sm:$0xff]   ;;  %v9774_v13 = vld [vmem:[%s15187_s3 + $0x4c] ss:$16 sps:$4 sm:$0xff]  }
 0x1a1   : > { %v12075_v32 = vpack.c.bf16 %v1886_v17, %v1884_v50  ;;  %v1840_v47 = vmax.f32 %v15316_v12, %v1720_v35  ;;  %v1722_v52 = vmax.f32 %v1579_v8, %v1672_v55 }
 0x1a2   : > { %v1863_v15 = vadd.f32 %v1839_v45, %v11785_v61  ;;  %v1841_v20 = vmax.f32 %v15317_v16, %v1721_v38 }
 0x1a3   : > { %v1864_v26 = vadd.f32 %v1840_v47, %v11788_v63  ;;  %v1842_v53 = vmax.f32 %v15318_v4, %v1722_v52  ;;  %2400 = vmatprep.mubr.bf16.mxu0 %v12075_v32  ;;  %2473 = vmatprep.mubr.bf16.mxu1 %v12075_v32  ;;  %v15319_v47 = vmax.f32 %v11958_v42, %v11960_v34  ;;  %v9772_v42 = vld [vmem:[%s15187_s3 + $0x48] ss:$16 sps:$4 sm:$0xff]  }
 0x1a4   : > { %v1865_v57 = vadd.f32 %v1841_v20, %v11785_v61  ;;  %2401 = vmatmul.mubr.bf16.vlgmr.msra.gmra.mrb[96].mxu0 %v12070_v1  ;;  %2474 = vmatmul.mubr.bf16.vlgmr.msra.gmra.mrb[96].mxu1 %v12070_v1  ;;  %v1887_v7 = vmax.f32 %v1863_v15, 0.0  ;;  %v15320_v20 = vmax.f32 %v11964_v24, %v11966_v25  ;;  %v15321_v4 = vmax.f32 %v11970_v23, %v11972_v27  ;;  %v9777_v24 = vld [vmem:[%s15187_s3 + $0x64] ss:$16 sps:$4 sm:$0xff]   ;;  %v9780_v25 = vld [vmem:[%s15187_s3 + $0x6c] ss:$16 sps:$4 sm:$0xff]  }
 0x1a5   : > { %v1866_v11 = vadd.f32 %v1842_v53, %v11788_v63  ;;  %2835 = vmatpush1.bf16.msra.mxu0 %v9757_v41  ;;  %2908 = vmatpush1.bf16.msra.mxu1 %v9760_v36  ;;  %v1583_v60 = vpop.f32.mrb[80].mxu0  ;;  %v1676_v18 = vpop.f32.mrb[80].mxu1  ;;  %v1888_v28 = vmax.f32 %v1864_v26, 0.0  ;;  %v9769_v26 = vld [vmem:[%s15187_s3 + $0x40] ss:$16 sps:$4 sm:$0xff]  }
 0x1a6   : > { %v1889_v50 = vmax.f32 %v1865_v57, 0.0  ;;  %v1723_v17 = vmax.f32 %v1583_v60, %v1676_v18  ;;  %v1585_v35 = vpop.f32.mrb[81].mxu0  ;;  %v1678_v2 = vpop.f32.mrb[81].mxu1  ;;  %2836 = vmatprep.subr.bf16.mxu0 %v9765_v5  ;;  %2909 = vmatprep.subr.bf16.mxu1 %v9768_v9  ;;  %v9775_v27 = vld [vmem:[%s15187_s3 + $0x60] ss:$16 sps:$4 sm:$0xff]  }
 0x1a7   : > { %v1890_v45 = vmax.f32 %v1866_v11, 0.0  ;;  %v1724_v38 = vmax.f32 %v1585_v35, %v1678_v2  ;;  %v1587_v8 = vpop.f32.mrb[82].mxu0  ;;  %v1680_v55 = vpop.f32.mrb[82].mxu1  ;;  %v9778_v18 = vld [vmem:[%s15187_s3 + $0x68] ss:$16 sps:$4 sm:$0xff]  }
 0x1a8   : > { %v12118_v12 = vpack.c.bf16 %v1889_v50, %v1887_v7  ;;  %v1843_v52 = vmax.f32 %v15319_v47, %v1723_v17  ;;  %v1725_v41 = vmax.f32 %v1587_v8, %v1680_v55  ;;  %v1589_v36 = vpop.f32.mrb[83].mxu0  ;;  %v1682_v15 = vpop.f32.mrb[83].mxu1  ;;  %v9786_v2 = vld [vmem:[%s15187_s3 + $0x8c] ss:$16 sps:$4 sm:$0xff]   ;;  %v15323_v47 = vmax.f32 %v11982_v43, %v11984_v31  ;;  %v9784_v43 = vld [vmem:[%s15187_s3 + $0x88] ss:$16 sps:$4 sm:$0xff]  }
 0x1a9   : > { %v12123_v16 = vpack.c.bf16 %v1890_v45, %v1888_v28  ;;  %v1844_v5 = vmax.f32 %v15320_v20, %v1724_v38  ;;  %v1726_v9 = vmax.f32 %v1589_v36, %v1682_v15  ;;  %2837 = vmatpush1.bf16.msra.mxu0 %v9763_v6  ;;  %2910 = vmatpush1.bf16.msra.mxu1 %v9766_v48  ;;  %v9783_v48 = vld [vmem:[%s15187_s3 + $0x84] ss:$16 sps:$4 sm:$0xff]  }
 0x1aa   : > { %v1867_v34 = vadd.f32 %v1843_v52, %v11785_v61  ;;  %v1845_v53 = vmax.f32 %v15321_v4, %v1725_v41  ;;  %2838 = vmatprep.subr.bf16.mxu0 %v9771_v58  ;;  %2911 = vmatprep.subr.bf16.mxu1 %v9774_v13  ;;  %v15322_v6 = vmax.f32 %v11976_v29, %v11978_v33 }
 0x1ab   : > { %v1868_v57 = vadd.f32 %v1844_v5, %v11788_v63  ;;  %2410 = vmatprep.mubr.bf16.mxu0 %v12123_v16  ;;  %2483 = vmatprep.mubr.bf16.mxu1 %v12123_v16  ;;  %v15324_v5 = vmax.f32 %v11988_v44, %v11990_v62  ;;  %v9789_v44 = vld [vmem:[%s15187_s3 + $0xa4] ss:$16 sps:$4 sm:$0xff]   ;;  %v9792_v62 = vld [vmem:[%s15187_s3 + $0xac] ss:$16 sps:$4 sm:$0xff]  }
 0x1ac   : > { %v1846_v11 = vmax.f32 %v15322_v6, %v1726_v9  ;;  %v1869_v23 = vadd.f32 %v1845_v53, %v11785_v61  ;;  %2411 = vmatmul.mubr.bf16.gmra.mrb[100].mxu0 %v12118_v12  ;;  %2484 = vmatmul.mubr.bf16.gmra.mrb[100].mxu1 %v12118_v12  ;;  %v1891_v58 = vmax.f32 %v1867_v34, 0.0  ;;  %v15325_v34 = vmax.f32 %v11994_v46, %v11996_v37  ;;  %v9787_v37 = vld [vmem:[%s15187_s3 + $0xa0] ss:$16 sps:$4 sm:$0xff]   ;;  %v9790_v6 = vld [vmem:[%s15187_s3 + $0xa8] ss:$16 sps:$4 sm:$0xff]  }
 0x1ad   : > { %2839 = vmatpush1.bf16.msra.mxu0 %v9769_v26  ;;  %2912 = vmatpush1.bf16.msra.mxu1 %v9772_v42  ;;  %v1593_v29 = vpop.f32.mrb[84].mxu0  ;;  %v1686_v33 = vpop.f32.mrb[84].mxu1  ;;  %v1892_v13 = vmax.f32 %v1868_v57, 0.0  ;;  %v9781_v42 = vld [vmem:[%s15187_s3 + $0x80] ss:$16 sps:$4 sm:$0xff]  }
 0x1ae   : > { %v1870_v60 = vadd.f32 %v1846_v11, %v11788_v63  ;;  %v1893_v7 = vmax.f32 %v1869_v23, 0.0  ;;  %v1727_v50 = vmax.f32 %v1593_v29, %v1686_v33  ;;  %v1595_v17 = vpop.f32.mrb[85].mxu0  ;;  %v1688_v35 = vpop.f32.mrb[85].mxu1  ;;  %2840 = vmatprep.subr.bf16.mxu0 %v9777_v24  ;;  %2913 = vmatprep.subr.bf16.mxu1 %v9780_v25  ;;  %v15326_v24 = vmax.f32 %v12000_v10, %v12002_v49  ;;  %v9795_v11 = vld [vmem:[%s15187_s3 + $0xc4] ss:$16 sps:$4 sm:$0xff]  }
 0x1af   : > { %v1728_v45 = vmax.f32 %v1595_v17, %v1688_v35  ;;  %v1597_v38 = vpop.f32.mrb[86].mxu0  ;;  %v1690_v8 = vpop.f32.mrb[86].mxu1 }
 0x1b0   : > { %v1894_v28 = vmax.f32 %v1870_v60, 0.0  ;;  %v12166_v55 = vpack.c.bf16 %v1893_v7, %v1891_v58  ;;  %v1847_v52 = vmax.f32 %v15323_v47, %v1727_v50  ;;  %v1729_v41 = vmax.f32 %v1597_v38, %v1690_v8  ;;  %v1599_v36 = vpop.f32.mrb[87].mxu0  ;;  %v1692_v15 = vpop.f32.mrb[87].mxu1 }
 0x1b1   : > { %v1848_v9 = vmax.f32 %v15324_v5, %v1728_v45  ;;  %v1730_v26 = vmax.f32 %v1599_v36, %v1692_v15  ;;  %2841 = vmatpush1.bf16.msra.mxu0 %v9775_v27  ;;  %2914 = vmatpush1.bf16.msra.mxu1 %v9778_v18  ;;  %v9798_v18 = vld [vmem:[%s15187_s3 + $0xcc] ss:$16 sps:$4 sm:$0xff]   ;;  %v15328_v47 = vmax.f32 %v12012_v40, %v12014_v54  ;;  %v9793_v36 = vld [vmem:[%s15187_s3 + $0xc0] ss:$16 sps:$4 sm:$0xff]  }
 0x1b2   : > { %v12171_v20 = vpack.c.bf16 %v1894_v28, %v1892_v13  ;;  %v1871_v31 = vadd.f32 %v1847_v52, %v11785_v61  ;;  %v1849_v4 = vmax.f32 %v15325_v34, %v1729_v41  ;;  %2842 = vmatprep.subr.bf16.mxu0 %v9783_v48  ;;  %2915 = vmatprep.subr.bf16.mxu1 %v9786_v2  ;;  %v9807_v34 = vld [vmem:[%s15187_s3 + $0x104] ss:$16 sps:$4 sm:$0xff]  }
 0x1b3   : > { %v1872_v53 = vadd.f32 %v1848_v9, %v11788_v63  ;;  %v1850_v25 = vmax.f32 %v15326_v24, %v1730_v26  ;;  %v15327_v2 = vmax.f32 %v12006_v51, %v12008_v0  ;;  %v9796_v0 = vld [vmem:[%s15187_s3 + $0xc8] ss:$16 sps:$4 sm:$0xff]   ;;  %v15329_v15 = vmax.f32 %v12018_v22, %v12020_v21  ;;  %v9801_v26 = vld [vmem:[%s15187_s3 + $0xe4] ss:$16 sps:$4 sm:$0xff]   ;;  %v9804_v21 = vld [vmem:[%s15187_s3 + $0xec] ss:$16 sps:$4 sm:$0xff]  }
 0x1b4   : > { %2420 = vmatprep.mubr.bf16.mxu0 %v12171_v20  ;;  %2493 = vmatprep.mubr.bf16.mxu1 %v12171_v20  ;;  %v1873_v46 = vadd.f32 %v1849_v4, %v11785_v61  ;;  %v1895_v23 = vmax.f32 %v1871_v31, 0.0  ;;  %v15330_v40 = vmax.f32 %v12024_v19, %v12026_v59  ;;  %v9799_v59 = vld [vmem:[%s15187_s3 + $0xe0] ss:$16 sps:$4 sm:$0xff]   ;;  %v9802_v31 = vld [vmem:[%s15187_s3 + $0xe8] ss:$16 sps:$4 sm:$0xff]  }
 0x1b5   : > { %2421 = vmatmul.mubr.bf16.gmra.mrb[104].mxu0 %v12166_v55  ;;  %2494 = vmatmul.mubr.bf16.gmra.mrb[104].mxu1 %v12166_v55  ;;  %v1874_v57 = vadd.f32 %v1850_v25, %v11788_v63  ;;  %v1603_v10 = vpop.f32.mrb[88].mxu0  ;;  %v1696_v49 = vpop.f32.mrb[88].mxu1  ;;  %v1896_v48 = vmax.f32 %v1872_v53, 0.0  ;;  %v9810_v25 = vld [vmem:[%s15187_s3 + $0x10c] ss:$16 sps:$4 sm:$0xff]  }
 0x1b6   : > { %2843 = vmatpush1.bf16.msra.mxu0 %v9781_v42  ;;  %2916 = vmatpush1.bf16.msra.mxu1 %v9784_v43  ;;  %v1897_v27 = vmax.f32 %v1873_v46, 0.0  ;;  %v1731_v60 = vmax.f32 %v1603_v10, %v1696_v49  ;;  %v1605_v29 = vpop.f32.mrb[89].mxu0  ;;  %v1698_v33 = vpop.f32.mrb[89].mxu1 }
 0x1b7   : > { %2844 = vmatprep.subr.bf16.mxu0 %v9789_v44  ;;  %2917 = vmatprep.subr.bf16.mxu1 %v9792_v62  ;;  %v1898_v58 = vmax.f32 %v1874_v57, 0.0  ;;  %v1732_v7 = vmax.f32 %v1605_v29, %v1698_v33  ;;  %v1607_v50 = vpop.f32.mrb[90].mxu0  ;;  %v1700_v17 = vpop.f32.mrb[90].mxu1  ;;  %v15332_v33 = vld [vmem:[#allocation5_spill] sm:$0xff] }
 0x1b8   : > { %v12214_v35 = vpack.c.bf16 %v1897_v27, %v1895_v23  ;;  %v1851_v13 = vmax.f32 %v15327_v2, %v1731_v60  ;;  %v1733_v28 = vmax.f32 %v1607_v50, %v1700_v17  ;;  %v1609_v45 = vpop.f32.mrb[91].mxu0  ;;  %v1702_v38 = vpop.f32.mrb[91].mxu1  ;;  %v15334_v50 = vld [vmem:[#allocation17_spill] sm:$0xff]  ;;  %v15335_v17 = vld [vmem:[#allocation18_spill] sm:$0xff] }
 0x1b9   : > { %v12219_v8 = vpack.c.bf16 %v1898_v58, %v1896_v48  ;;  %v1852_v52 = vmax.f32 %v15328_v47, %v1732_v7  ;;  %v1734_v41 = vmax.f32 %v1609_v45, %v1702_v38  ;;  %v9805_v7 = vld [vmem:[%s15187_s3 + $0x100] ss:$16 sps:$4 sm:$0xff]   ;;  %v15336_v2 = vmax.f32 %v15334_v50, %v15335_v17  ;;  %v15337_v38 = vld [vmem:[#allocation19_spill] sm:$0xff]  ;;  %v9867_v50 = vld [vmem:[%s15187_s3 + $0x444] ss:$16 sps:$4 sm:$0xff]  }
 0x1ba   : > { %2845 = vmatpush1.bf16.msra.mxu0 %v9787_v37  ;;  %2918 = vmatpush1.bf16.msra.mxu1 %v9790_v6  ;;  %v1875_v51 = vadd.f32 %v1851_v13, %v11785_v61  ;;  %v1853_v5 = vmax.f32 %v15329_v15, %v1733_v28  ;;  %v9816_v28 = vld [vmem:[%s15187_s3 + $0x12c] ss:$16 sps:$4 sm:$0xff]   ;;  %v15338_v47 = vmax.f32 %v12048_v14, %v15337_v38  ;;  %v15344_v38 = vld [vmem:[#allocation12_spill] sm:$0xff] }
 0x1bb   : > { %2846 = vmatprep.subr.bf16.mxu0 %v9795_v11  ;;  %2919 = vmatprep.subr.bf16.mxu1 %v9798_v18  ;;  %v1876_v54 = vadd.f32 %v1852_v52, %v11788_v63  ;;  %v1854_v9 = vmax.f32 %v15330_v40, %v1734_v41  ;;  %v15331_v11 = vmax.f32 %v12030_v56, %v12032_v39  ;;  %v9808_v39 = vld [vmem:[%s15187_s3 + $0x108] ss:$16 sps:$4 sm:$0xff]   ;;  %v9822_v14 = vld [vmem:[%s15187_s3 + $0x14c] ss:$16 sps:$4 sm:$0xff]  }
 0x1bc   : > { %2430 = vmatprep.mubr.bf16.mxu0 %v12219_v8  ;;  %2503 = vmatprep.mubr.bf16.mxu1 %v12219_v8  ;;  %v1877_v22 = vadd.f32 %v1853_v5, %v11785_v61  ;;  %v1899_v4 = vmax.f32 %v1875_v51, 0.0  ;;  %v15333_v18 = vmax.f32 %v12036_v3, %v15332_v33  ;;  %v9813_v3 = vld [vmem:[%s15187_s3 + $0x124] ss:$16 sps:$4 sm:$0xff]   ;;  %v9814_v51 = vld [vmem:[%s15187_s3 + $0x128] ss:$16 sps:$4 sm:$0xff]  }
 0x1bd   : > { %2431 = vmatmul.mubr.bf16.gmra.mrb[108].mxu0 %v12214_v35  ;;  %2504 = vmatmul.mubr.bf16.gmra.mrb[108].mxu1 %v12214_v35  ;;  %v1878_v19 = vadd.f32 %v1854_v9, %v11788_v63  ;;  %v1613_v42 = vpop.f32.mrb[92].mxu0  ;;  %v1706_v43 = vpop.f32.mrb[92].mxu1  ;;  %v1900_v46 = vmax.f32 %v1876_v54, 0.0  ;;  %v9817_v9 = vld [vmem:[%s15187_s3 + $0x140] ss:$16 sps:$4 sm:$0xff]  }
 0x1be   : > { %2847 = vmatpush1.bf16.msra.mxu0 %v9793_v36  ;;  %2920 = vmatpush1.bf16.msra.mxu1 %v9796_v0  ;;  %v1901_v44 = vmax.f32 %v1877_v22, 0.0  ;;  %v1735_v62 = vmax.f32 %v1613_v42, %v1706_v43  ;;  %v1615_v53 = vpop.f32.mrb[93].mxu0  ;;  %v1708_v24 = vpop.f32.mrb[93].mxu1  ;;  %v9811_v0 = vld [vmem:[%s15187_s3 + $0x120] ss:$16 sps:$4 sm:$0xff]  }
 0x1bf   : > { %2866 = vmatprep.mubr.bf16.mxu0 %v11814_v30  ;;  %2939 = vmatprep.mubr.bf16.mxu1 %v11814_v30  ;;  %v1902_v37 = vmax.f32 %v1878_v19, 0.0  ;;  %v1736_v57 = vmax.f32 %v1615_v53, %v1708_v24  ;;  %v1617_v10 = vpop.f32.mrb[94].mxu0  ;;  %v1710_v49 = vpop.f32.mrb[94].mxu1  ;;  %v9825_v22 = vld [vmem:[%s15187_s3 + $0x164] ss:$16 sps:$4 sm:$0xff]  }
 0x1c0   : > { %2848 = vmatprep.subr.bf16.mxu0 %v9801_v26  ;;  %2921 = vmatprep.subr.bf16.mxu1 %v9804_v21  ;;  %v12264_v6 = vpack.c.bf16 %v1901_v44, %v1899_v4  ;;  %v1855_v23 = vmax.f32 %v15331_v11, %v1735_v62  ;;  %v1737_v30 = vmax.f32 %v1617_v10, %v1710_v49  ;;  %v1619_v27 = vpop.f32.mrb[95].mxu0  ;;  %v1712_v60 = vpop.f32.mrb[95].mxu1  ;;  %v9820_v26 = vld [vmem:[%s15187_s3 + $0x148] ss:$16 sps:$4 sm:$0xff]   ;;  %v9823_v19 = vld [vmem:[%s15187_s3 + $0x160] ss:$16 sps:$4 sm:$0xff]  }
 0x1c1   : > { %v12269_v29 = vpack.c.bf16 %v1902_v37, %v1900_v46  ;;  %v1856_v48 = vmax.f32 %v15333_v18, %v1736_v57  ;;  %v1738_v58 = vmax.f32 %v1619_v27, %v1712_v60  ;;  %v9826_v42 = vld [vmem:[%s15187_s3 + $0x168] ss:$16 sps:$4 sm:$0xff]   ;;  %v9831_v43 = vld [vmem:[%s15187_s3 + $0x184] ss:$16 sps:$4 sm:$0xff]   ;;  %v9840_v62 = vld [vmem:[%s15187_s3 + $0x1ac] ss:$16 sps:$4 sm:$0xff]  }
 0x1c2   : > { %2849 = vmatpush1.bf16.msra.mxu0 %v9799_v59  ;;  %2922 = vmatpush1.bf16.msra.mxu1 %v9802_v31  ;;  %v1879_v56 = vadd.f32 %v1855_v23, %v11785_v61  ;;  %v1857_v13 = vmax.f32 %v15336_v2, %v1737_v30  ;;  %v9828_v59 = vld [vmem:[%s15187_s3 + $0x16c] ss:$16 sps:$4 sm:$0xff]   ;;  %v9832_v4 = vld [vmem:[%s15187_s3 + $0x188] ss:$16 sps:$4 sm:$0xff]   ;;  %v9837_v44 = vld [vmem:[%s15187_s3 + $0x1a4] ss:$16 sps:$4 sm:$0xff]  }
 0x1c3   : > { %2850 = vmatprep.subr.bf16.mxu0 %v9807_v34  ;;  %2923 = vmatprep.subr.bf16.mxu1 %v9810_v25  ;;  %v1880_v45 = vadd.f32 %v1856_v48, %v11788_v63  ;;  %v1858_v52 = vmax.f32 %v15338_v47, %v1738_v58  ;;  %v9834_v31 = vld [vmem:[%s15187_s3 + $0x18c] ss:$16 sps:$4 sm:$0xff]   ;;  %v9829_v34 = vld [vmem:[%s15187_s3 + $0x180] ss:$16 sps:$4 sm:$0xff]   ;;  %v9838_v24 = vld [vmem:[%s15187_s3 + $0x1a8] ss:$16 sps:$4 sm:$0xff]  }
 0x1c4   : > { %v1881_v41 = vadd.f32 %v1857_v13, %v11785_v61  ;;  %v1903_v15 = vmax.f32 %v1879_v56, 0.0  ;;  %v9819_v61 = vld [vmem:[%s15187_s3 + $0x144] ss:$16 sps:$4 sm:$0xff]   ;;  %v9835_v53 = vld [vmem:[%s15187_s3 + $0x1a0] ss:$16 sps:$4 sm:$0xff]  }
 0x1c5   : > { %v1882_v36 = vadd.f32 %v1858_v52, %v11788_v63  ;;  %v1904_v63 = vmax.f32 %v1880_v45, 0.0  ;;  %v9843_v25 = vld [vmem:[%s15187_s3 + $0x1c4] ss:$16 sps:$4 sm:$0xff]   ;;  %v9846_v46 = vld [vmem:[%s15187_s3 + $0x1cc] ss:$16 sps:$4 sm:$0xff]  }
 0x1c6   : > { %2851 = vmatpush1.bf16.msra.mxu0 %v9805_v7  ;;  %2924 = vmatpush1.bf16.msra.mxu1 %v9808_v39  ;;  %v1905_v5 = vmax.f32 %v1881_v41, 0.0  ;;  %v9841_v37 = vld [vmem:[%s15187_s3 + $0x1c0] ss:$16 sps:$4 sm:$0xff]   ;;  %v9844_v57 = vld [vmem:[%s15187_s3 + $0x1c8] ss:$16 sps:$4 sm:$0xff]  }
 0x1c7   : > { %2852 = vmatprep.subr.bf16.mxu0 %v9813_v3  ;;  %2925 = vmatprep.subr.bf16.mxu1 %v9816_v28  ;;  %v1906_v54 = vmax.f32 %v1882_v36, 0.0  ;;  %v9849_v10 = vld [vmem:[%s15187_s3 + $0x1e4] ss:$16 sps:$4 sm:$0xff]   ;;  %v9852_v49 = vld [vmem:[%s15187_s3 + $0x1ec] ss:$16 sps:$4 sm:$0xff]  }
 0x1c8   : > { %v12308_v40 = vpack.c.bf16 %v1905_v5, %v1903_v15  ;;  %v9847_v11 = vld [vmem:[%s15187_s3 + $0x1e0] ss:$16 sps:$4 sm:$0xff]   ;;  %v9850_v23 = vld [vmem:[%s15187_s3 + $0x1e8] ss:$16 sps:$4 sm:$0xff]   ;;  %v9855_v30 = vld [vmem:[%s15187_s3 + $0x404] ss:$16 sps:$4 sm:$0xff]  }
 0x1c9   : > { %v12316_v21 = vpack.c.bf16 %v1906_v54, %v1904_v63  ;;  %v9858_v27 = vld [vmem:[%s15187_s3 + $0x40c] ss:$16 sps:$4 sm:$0xff]   ;;  %v9853_v60 = vld [vmem:[%s15187_s3 + $0x400] ss:$16 sps:$4 sm:$0xff]   ;;  %v9856_v33 = vld [vmem:[%s15187_s3 + $0x408] ss:$16 sps:$4 sm:$0xff]  }
 0x1ca   : > { %15339 = vst [vmem:[#allocation5_spill] sm:$0xff] %v12308_v40  ;;  %2853 = vmatpush1.bf16.msra.mxu0 %v9811_v0  ;;  %2926 = vmatpush1.bf16.msra.mxu1 %v9814_v51  ;;  %v9861_v18 = vld [vmem:[%s15187_s3 + $0x424] ss:$16 sps:$4 sm:$0xff]   ;;  %v9864_v48 = vld [vmem:[%s15187_s3 + $0x42c] ss:$16 sps:$4 sm:$0xff]  }
 0x1cb   : > { %15340 = vst [vmem:[#allocation17_spill] sm:$0xff] %v12316_v21  ;;  %2854 = vmatprep.subr.bf16.mxu0 %v9819_v61  ;;  %2927 = vmatprep.subr.bf16.mxu1 %v9822_v14  ;;  %v15341_v58 = vld [vmem:[#allocation8_spill] sm:$0xff]  ;;  %v15342_v7 = vld [vmem:[#allocation10_spill] sm:$0xff]  ;;  %v9862_v56 = vld [vmem:[%s15187_s3 + $0x428] ss:$16 sps:$4 sm:$0xff]  }
 0x1cc   : > { %v9859_v39 = vld [vmem:[%s15187_s3 + $0x420] ss:$16 sps:$4 sm:$0xff]   ;;  %v9870_v17 = vld [vmem:[%s15187_s3 + $0x44c] ss:$16 sps:$4 sm:$0xff]   ;;  %v9868_v13 = vld [vmem:[%s15187_s3 + $0x448] ss:$16 sps:$4 sm:$0xff]  }
 0x1cd   : > { %v9865_v2 = vld [vmem:[%s15187_s3 + $0x440] ss:$16 sps:$4 sm:$0xff]   ;;  %v9873_v3 = vld [vmem:[%s15187_s3 + $0x464] ss:$16 sps:$4 sm:$0xff]   ;;  %v9876_v28 = vld [vmem:[%s15187_s3 + $0x46c] ss:$16 sps:$4 sm:$0xff]  }
 0x1ce   : > { %2855 = vmatpush1.bf16.msra.mxu0 %v9817_v9  ;;  %2928 = vmatpush1.bf16.msra.mxu1 %v9820_v26  ;;  %v15343_v45 = vld [vmem:[#allocation9_spill] sm:$0xff]  ;;  %v9871_v47 = vld [vmem:[%s15187_s3 + $0x460] ss:$16 sps:$4 sm:$0xff]   ;;  %v9879_v41 = vld [vmem:[%s15187_s3 + $0x484] ss:$16 sps:$4 sm:$0xff]  }
 0x1cf   : > { %2856 = vmatprep.subr.bf16.mxu0 %v9825_v22  ;;  %2929 = vmatprep.subr.bf16.mxu1 %v9828_v59  ;;  %v9874_v52 = vld [vmem:[%s15187_s3 + $0x468] ss:$16 sps:$4 sm:$0xff]   ;;  %v9882_v36 = vld [vmem:[%s15187_s3 + $0x48c] ss:$16 sps:$4 sm:$0xff]   ;;  %v9877_v0 = vld [vmem:[%s15187_s3 + $0x480] ss:$16 sps:$4 sm:$0xff]  }
 0x1d0   : > { %v9880_v51 = vld [vmem:[%s15187_s3 + $0x488] ss:$16 sps:$4 sm:$0xff]   ;;  %v9885_v15 = vld [vmem:[%s15187_s3 + $0x4a4] ss:$16 sps:$4 sm:$0xff]   ;;  %v9888_v5 = vld [vmem:[%s15187_s3 + $0x4ac] ss:$16 sps:$4 sm:$0xff]  }
 0x1d1   : > { %v15345_v61 = vld [vmem:[#allocation11_spill] sm:$0xff]  ;;  %v15346_v14 = vld [vmem:[#allocation14_spill] sm:$0xff] }
 0x1d2   : > { %2857 = vmatpush1.bf16.msra.mxu0 %v9823_v19  ;;  %2930 = vmatpush1.bf16.msra.mxu1 %v9826_v42  ;;  %v9883_v63 = vld [vmem:[%s15187_s3 + $0x4a0] ss:$16 sps:$4 sm:$0xff]   ;;  %v9886_v54 = vld [vmem:[%s15187_s3 + $0x4a8] ss:$16 sps:$4 sm:$0xff]   ;;  %v9891_v9 = vld [vmem:[%s15187_s3 + $0x4c4] ss:$16 sps:$4 sm:$0xff]  }
 0x1d3   : > { %2858 = vmatprep.subr.bf16.mxu0 %v9831_v43  ;;  %2931 = vmatprep.subr.bf16.mxu1 %v9834_v31  ;;  %v9894_v26 = vld [vmem:[%s15187_s3 + $0x4cc] ss:$16 sps:$4 sm:$0xff]   ;;  %v9889_v22 = vld [vmem:[%s15187_s3 + $0x4c0] ss:$16 sps:$4 sm:$0xff]   ;;  %v9892_v59 = vld [vmem:[%s15187_s3 + $0x4c8] ss:$16 sps:$4 sm:$0xff]  }
 0x1d4   : > { %v9897_v19 = vld [vmem:[%s15187_s3 + $0x4e4] ss:$16 sps:$4 sm:$0xff]   ;;  %v9900_v42 = vld [vmem:[%s15187_s3 + $0x4ec] ss:$16 sps:$4 sm:$0xff]   ;;  %v9895_v31 = vld [vmem:[%s15187_s3 + $0x4e0] ss:$16 sps:$4 sm:$0xff]  }
 0x1d5   : > { %v15347_v43 = vld [vmem:[#allocation13_spill] sm:$0xff]  ;;  %v13093_v40 = vld [vmem:[%s15187_s3 + $0x980] ss:$16 sps:$4 sm:$0xff]  }
 0x1d6   : > { %2859 = vmatpush1.bf16.msra.mxu0 %v9829_v34  ;;  %2932 = vmatpush1.bf16.msra.mxu1 %v9832_v4  ;;  %v9898_v34 = vld [vmem:[%s15187_s3 + $0x4e8] ss:$16 sps:$4 sm:$0xff]   ;;  %v9903_v4 = vld [vmem:[%s15187_s3 + $0x504] ss:$16 sps:$4 sm:$0xff]   ;;  %15354 = vst [vmem:[#allocation9_spill] sm:$0xff] %v13093_v40 }
 0x1d7   : > { %2860 = vmatprep.subr.bf16.mxu0 %v9837_v44  ;;  %2933 = vmatprep.subr.bf16.mxu1 %v9840_v62  ;;  %v9906_v44 = vld [vmem:[%s15187_s3 + $0x50c] ss:$16 sps:$4 sm:$0xff]   ;;  %v9901_v62 = vld [vmem:[%s15187_s3 + $0x500] ss:$16 sps:$4 sm:$0xff]   ;;  %v13098_v21 = vld [vmem:[%s15187_s3 + $0x988] ss:$16 sps:$4 sm:$0xff]  }
 0x1d8   : > { %15355 = vst [vmem:[#allocation12_spill] sm:$0xff] %v13098_v21 }
 0x1da   : > { %2861 = vmatpush1.bf16.msra.mxu0 %v9835_v53  ;;  %2934 = vmatpush1.bf16.msra.mxu1 %v9838_v24  ;;  %v9904_v53 = vld [vmem:[%s15187_s3 + $0x508] ss:$16 sps:$4 sm:$0xff]   ;;  %v9909_v24 = vld [vmem:[%s15187_s3 + $0x524] ss:$16 sps:$4 sm:$0xff]  }
 0x1db   : > { %2862 = vmatprep.subr.bf16.mxu0 %v9843_v25  ;;  %2935 = vmatprep.subr.bf16.mxu1 %v9846_v46  ;;  %v9912_v25 = vld [vmem:[%s15187_s3 + $0x52c] ss:$16 sps:$4 sm:$0xff]   ;;  %v9907_v46 = vld [vmem:[%s15187_s3 + $0x520] ss:$16 sps:$4 sm:$0xff]  }
 0x1de   : > { %2863 = vmatpush1.bf16.msra.mxu0 %v9841_v37  ;;  %2936 = vmatpush1.bf16.msra.mxu1 %v9844_v57  ;;  %v9910_v37 = vld [vmem:[%s15187_s3 + $0x528] ss:$16 sps:$4 sm:$0xff]   ;;  %v9915_v57 = vld [vmem:[%s15187_s3 + $0x544] ss:$16 sps:$4 sm:$0xff]  }
 0x1df   : > { %2864 = vmatprep.subr.bf16.mxu0 %v9849_v10  ;;  %2937 = vmatprep.subr.bf16.mxu1 %v9852_v49  ;;  %v9918_v10 = vld [vmem:[%s15187_s3 + $0x54c] ss:$16 sps:$4 sm:$0xff]   ;;  %v9913_v49 = vld [vmem:[%s15187_s3 + $0x540] ss:$16 sps:$4 sm:$0xff]  }
 0x1e2   : > { %2865 = vmatpush1.bf16.msra.mxu0 %v9847_v11  ;;  %2938 = vmatpush1.bf16.msra.mxu1 %v9850_v23  ;;  %v9916_v11 = vld [vmem:[%s15187_s3 + $0x548] ss:$16 sps:$4 sm:$0xff]   ;;  %v9921_v23 = vld [vmem:[%s15187_s3 + $0x564] ss:$16 sps:$4 sm:$0xff]  }
 0x1e3   : > { %3365 = vmatprep.subr.bf16.mxu0 %v9855_v30  ;;  %3438 = vmatprep.subr.bf16.mxu1 %v9858_v27  ;;  %v9924_v30 = vld [vmem:[%s15187_s3 + $0x56c] ss:$16 sps:$4 sm:$0xff]   ;;  %v9919_v27 = vld [vmem:[%s15187_s3 + $0x560] ss:$16 sps:$4 sm:$0xff]  }
 0x1e5   : > { %2867 = vmatmul.mubr.bf16.vlgmr.msra.gmra.mrb[96].mxu0 %v15341_v58  ;;  %2940 = vmatmul.mubr.bf16.vlgmr.msra.gmra.mrb[96].mxu1 %v15341_v58  ;;  %v9928_v58 = vld [vmem:[%s15187_s3 + $0x588] ss:$16 sps:$4 sm:$0xff]  }
 0x1e6   : > { %2876 = vmatprep.mubr.bf16.mxu0 %v15342_v7  ;;  %2949 = vmatprep.mubr.bf16.mxu1 %v15342_v7 }
 0x1e7   : > { %3366 = vmatpush1.bf16.msra.mxu0 %v9853_v60  ;;  %3439 = vmatpush1.bf16.msra.mxu1 %v9856_v33  ;;  %v9922_v60 = vld [vmem:[%s15187_s3 + $0x568] ss:$16 sps:$4 sm:$0xff]   ;;  %v9927_v33 = vld [vmem:[%s15187_s3 + $0x584] ss:$16 sps:$4 sm:$0xff]  }
 0x1e8   : > { %3367 = vmatprep.subr.bf16.mxu0 %v9861_v18  ;;  %3440 = vmatprep.subr.bf16.mxu1 %v9864_v48  ;;  %v9930_v18 = vld [vmem:[%s15187_s3 + $0x58c] ss:$16 sps:$4 sm:$0xff]   ;;  %v9925_v48 = vld [vmem:[%s15187_s3 + $0x580] ss:$16 sps:$4 sm:$0xff]  }
 0x1eb   : > { %3368 = vmatpush1.bf16.msra.mxu0 %v9859_v39  ;;  %3441 = vmatpush1.bf16.msra.mxu1 %v9862_v56  ;;  %v9933_v39 = vld [vmem:[%s15187_s3 + $0x5a4] ss:$16 sps:$4 sm:$0xff]   ;;  %v9936_v56 = vld [vmem:[%s15187_s3 + $0x5ac] ss:$16 sps:$4 sm:$0xff]  }
 0x1ec   : > { %3369 = vmatprep.subr.bf16.mxu0 %v9867_v50  ;;  %3442 = vmatprep.subr.bf16.mxu1 %v9870_v17  ;;  %v9931_v50 = vld [vmem:[%s15187_s3 + $0x5a0] ss:$16 sps:$4 sm:$0xff]   ;;  %v9934_v17 = vld [vmem:[%s15187_s3 + $0x5a8] ss:$16 sps:$4 sm:$0xff]  }
 0x1ed   : > { %2877 = vmatmul.mubr.bf16.gmra.mrb[100].mxu0 %v15343_v45  ;;  %2950 = vmatmul.mubr.bf16.gmra.mrb[100].mxu1 %v15343_v45 }
 0x1ee   : > { %2886 = vmatprep.mubr.bf16.mxu0 %v15344_v38  ;;  %2959 = vmatprep.mubr.bf16.mxu1 %v15344_v38 }
 0x1ef   : > { %3370 = vmatpush1.bf16.msra.mxu0 %v9865_v2  ;;  %3443 = vmatpush1.bf16.msra.mxu1 %v9868_v13  ;;  %v9939_v2 = vld [vmem:[%s15187_s3 + $0x5c4] ss:$16 sps:$4 sm:$0xff]   ;;  %v9942_v13 = vld [vmem:[%s15187_s3 + $0x5cc] ss:$16 sps:$4 sm:$0xff]  }
 0x1f0   : > { %3371 = vmatprep.subr.bf16.mxu0 %v9873_v3  ;;  %3444 = vmatprep.subr.bf16.mxu1 %v9876_v28  ;;  %v9937_v3 = vld [vmem:[%s15187_s3 + $0x5c0] ss:$16 sps:$4 sm:$0xff]   ;;  %v9940_v28 = vld [vmem:[%s15187_s3 + $0x5c8] ss:$16 sps:$4 sm:$0xff]  }
 0x1f3   : > { %3372 = vmatpush1.bf16.msra.mxu0 %v9871_v47  ;;  %3445 = vmatpush1.bf16.msra.mxu1 %v9874_v52  ;;  %v9945_v47 = vld [vmem:[%s15187_s3 + $0x5e4] ss:$16 sps:$4 sm:$0xff]   ;;  %v9948_v52 = vld [vmem:[%s15187_s3 + $0x5ec] ss:$16 sps:$4 sm:$0xff]  }
 0x1f4   : > { %3373 = vmatprep.subr.bf16.mxu0 %v9879_v41  ;;  %3446 = vmatprep.subr.bf16.mxu1 %v9882_v36  ;;  %v9943_v41 = vld [vmem:[%s15187_s3 + $0x5e0] ss:$16 sps:$4 sm:$0xff]   ;;  %v9946_v36 = vld [vmem:[%s15187_s3 + $0x5e8] ss:$16 sps:$4 sm:$0xff]  }
 0x1f5   : > { %2887 = vmatmul.mubr.bf16.gmra.mrb[104].mxu0 %v15345_v61  ;;  %2960 = vmatmul.mubr.bf16.gmra.mrb[104].mxu1 %v15345_v61 }
 0x1f6   : > { %2896 = vmatprep.mubr.bf16.mxu0 %v15346_v14  ;;  %2969 = vmatprep.mubr.bf16.mxu1 %v15346_v14 }
 0x1f7   : > { %3374 = vmatpush1.bf16.msra.mxu0 %v9877_v0  ;;  %3447 = vmatpush1.bf16.msra.mxu1 %v9880_v51  ;;  %v9951_v0 = vld [vmem:[%s15187_s3 + $0x604] ss:$16 sps:$4 sm:$0xff]   ;;  %v9954_v51 = vld [vmem:[%s15187_s3 + $0x60c] ss:$16 sps:$4 sm:$0xff]  }
 0x1f8   : > { %3375 = vmatprep.subr.bf16.mxu0 %v9885_v15  ;;  %3448 = vmatprep.subr.bf16.mxu1 %v9888_v5  ;;  %v9949_v15 = vld [vmem:[%s15187_s3 + $0x600] ss:$16 sps:$4 sm:$0xff]   ;;  %v9952_v5 = vld [vmem:[%s15187_s3 + $0x608] ss:$16 sps:$4 sm:$0xff]  }
 0x1fb   : > { %3376 = vmatpush1.bf16.msra.mxu0 %v9883_v63  ;;  %3449 = vmatpush1.bf16.msra.mxu1 %v9886_v54  ;;  %v9957_v63 = vld [vmem:[%s15187_s3 + $0x624] ss:$16 sps:$4 sm:$0xff]   ;;  %v9960_v54 = vld [vmem:[%s15187_s3 + $0x62c] ss:$16 sps:$4 sm:$0xff]  }
 0x1fc   : > { %3377 = vmatprep.subr.bf16.mxu0 %v9891_v9  ;;  %3450 = vmatprep.subr.bf16.mxu1 %v9894_v26  ;;  %v9955_v9 = vld [vmem:[%s15187_s3 + $0x620] ss:$16 sps:$4 sm:$0xff]   ;;  %v9958_v26 = vld [vmem:[%s15187_s3 + $0x628] ss:$16 sps:$4 sm:$0xff]  }
 0x1fd   : > { %2897 = vmatmul.mubr.bf16.gmra.mrb[108].mxu0 %v15347_v43  ;;  %2970 = vmatmul.mubr.bf16.gmra.mrb[108].mxu1 %v15347_v43 }
 0x1fe   : > { %3397 = vmatprep.mubr.bf16.mxu0 %v15342_v7  ;;  %3470 = vmatprep.mubr.bf16.mxu1 %v15342_v7 }
 0x1ff   : > { %3378 = vmatpush1.bf16.msra.mxu0 %v9889_v22  ;;  %3451 = vmatpush1.bf16.msra.mxu1 %v9892_v59  ;;  %v9963_v22 = vld [vmem:[%s15187_s3 + $0x644] ss:$16 sps:$4 sm:$0xff]   ;;  %v9966_v59 = vld [vmem:[%s15187_s3 + $0x64c] ss:$16 sps:$4 sm:$0xff]  }
 0x200   : > { %3379 = vmatprep.subr.bf16.mxu0 %v9897_v19  ;;  %3452 = vmatprep.subr.bf16.mxu1 %v9900_v42  ;;  %v9961_v19 = vld [vmem:[%s15187_s3 + $0x640] ss:$16 sps:$4 sm:$0xff]   ;;  %v9964_v42 = vld [vmem:[%s15187_s3 + $0x648] ss:$16 sps:$4 sm:$0xff]  }
 0x203   : > { %3380 = vmatpush1.bf16.msra.mxu0 %v9895_v31  ;;  %3453 = vmatpush1.bf16.msra.mxu1 %v9898_v34  ;;  %v9969_v31 = vld [vmem:[%s15187_s3 + $0x664] ss:$16 sps:$4 sm:$0xff]   ;;  %v9972_v34 = vld [vmem:[%s15187_s3 + $0x66c] ss:$16 sps:$4 sm:$0xff]  }
 0x204   : > { %3381 = vmatprep.subr.bf16.mxu0 %v9903_v4  ;;  %3454 = vmatprep.subr.bf16.mxu1 %v9906_v44  ;;  %v9967_v4 = vld [vmem:[%s15187_s3 + $0x660] ss:$16 sps:$4 sm:$0xff]   ;;  %v9970_v44 = vld [vmem:[%s15187_s3 + $0x668] ss:$16 sps:$4 sm:$0xff]  }
 0x207   : > { %3382 = vmatpush1.bf16.msra.mxu0 %v9901_v62  ;;  %3455 = vmatpush1.bf16.msra.mxu1 %v9904_v53  ;;  %v9975_v62 = vld [vmem:[%s15187_s3 + $0x684] ss:$16 sps:$4 sm:$0xff]   ;;  %v9978_v53 = vld [vmem:[%s15187_s3 + $0x68c] ss:$16 sps:$4 sm:$0xff]  }
 0x208   : > { %3383 = vmatprep.subr.bf16.mxu0 %v9909_v24  ;;  %3456 = vmatprep.subr.bf16.mxu1 %v9912_v25  ;;  %v9973_v24 = vld [vmem:[%s15187_s3 + $0x680] ss:$16 sps:$4 sm:$0xff]   ;;  %v9976_v25 = vld [vmem:[%s15187_s3 + $0x688] ss:$16 sps:$4 sm:$0xff]  }
 0x20b   : > { %3384 = vmatpush1.bf16.msra.mxu0 %v9907_v46  ;;  %3457 = vmatpush1.bf16.msra.mxu1 %v9910_v37  ;;  %v9981_v46 = vld [vmem:[%s15187_s3 + $0x6a4] ss:$16 sps:$4 sm:$0xff]   ;;  %v9984_v37 = vld [vmem:[%s15187_s3 + $0x6ac] ss:$16 sps:$4 sm:$0xff]  }
 0x20c   : > { %3385 = vmatprep.subr.bf16.mxu0 %v9915_v57  ;;  %3458 = vmatprep.subr.bf16.mxu1 %v9918_v10  ;;  %v15348_v57 = vld [vmem:[#allocation16_spill] sm:$0xff] }
 0x20d   : > { %v9979_v10 = vld [vmem:[%s15187_s3 + $0x6a0] ss:$16 sps:$4 sm:$0xff]  }
 0x20f   : > { %3386 = vmatpush1.bf16.msra.mxu0 %v9913_v49  ;;  %3459 = vmatpush1.bf16.msra.mxu1 %v9916_v11  ;;  %v9982_v49 = vld [vmem:[%s15187_s3 + $0x6a8] ss:$16 sps:$4 sm:$0xff]   ;;  %v9987_v11 = vld [vmem:[%s15187_s3 + $0x6c4] ss:$16 sps:$4 sm:$0xff]  }
 0x210   : > { %3387 = vmatprep.subr.bf16.mxu0 %v9921_v23  ;;  %3460 = vmatprep.subr.bf16.mxu1 %v9924_v30  ;;  %v9990_v23 = vld [vmem:[%s15187_s3 + $0x6cc] ss:$16 sps:$4 sm:$0xff]   ;;  %v9985_v30 = vld [vmem:[%s15187_s3 + $0x6c0] ss:$16 sps:$4 sm:$0xff]  }
 0x213   : > { %3388 = vmatpush1.bf16.msra.mxu0 %v9919_v27  ;;  %3461 = vmatpush1.bf16.msra.mxu1 %v9922_v60  ;;  %v9988_v27 = vld [vmem:[%s15187_s3 + $0x6c8] ss:$16 sps:$4 sm:$0xff]   ;;  %v9993_v60 = vld [vmem:[%s15187_s3 + $0x6e4] ss:$16 sps:$4 sm:$0xff]  }
 0x214   : > { %3389 = vmatprep.subr.bf16.mxu0 %v9927_v33  ;;  %3462 = vmatprep.subr.bf16.mxu1 %v9930_v18  ;;  %v9996_v33 = vld [vmem:[%s15187_s3 + $0x6ec] ss:$16 sps:$4 sm:$0xff]  }
 0x215   : > { %v15349_v18 = vld [vmem:[#allocation15_spill] sm:$0xff] }
 0x217   : > { %3390 = vmatpush1.bf16.msra.mxu0 %v9925_v48  ;;  %3463 = vmatpush1.bf16.msra.mxu1 %v9928_v58  ;;  %v9991_v48 = vld [vmem:[%s15187_s3 + $0x6e0] ss:$16 sps:$4 sm:$0xff]   ;;  %v9994_v58 = vld [vmem:[%s15187_s3 + $0x6e8] ss:$16 sps:$4 sm:$0xff]  }
 0x218   : > { %3391 = vmatprep.subr.bf16.mxu0 %v9933_v39  ;;  %3464 = vmatprep.subr.bf16.mxu1 %v9936_v56  ;;  %v9999_v39 = vld [vmem:[%s15187_s3 + $0x704] ss:$16 sps:$4 sm:$0xff]   ;;  %v10002_v56 = vld [vmem:[%s15187_s3 + $0x70c] ss:$16 sps:$4 sm:$0xff]  }
 0x21b   : > { %3392 = vmatpush1.bf16.msra.mxu0 %v9931_v50  ;;  %3465 = vmatpush1.bf16.msra.mxu1 %v9934_v17  ;;  %v9997_v50 = vld [vmem:[%s15187_s3 + $0x700] ss:$16 sps:$4 sm:$0xff]   ;;  %v10000_v17 = vld [vmem:[%s15187_s3 + $0x708] ss:$16 sps:$4 sm:$0xff]  }
 0x21c   : > { %3393 = vmatprep.subr.bf16.mxu0 %v9939_v2  ;;  %3466 = vmatprep.subr.bf16.mxu1 %v9942_v13  ;;  %v10005_v2 = vld [vmem:[%s15187_s3 + $0x724] ss:$16 sps:$4 sm:$0xff]   ;;  %v10008_v13 = vld [vmem:[%s15187_s3 + $0x72c] ss:$16 sps:$4 sm:$0xff]  }
 0x21f   : > { %3394 = vmatpush1.bf16.msra.mxu0 %v9937_v3  ;;  %3467 = vmatpush1.bf16.msra.mxu1 %v9940_v28  ;;  %v10003_v3 = vld [vmem:[%s15187_s3 + $0x720] ss:$16 sps:$4 sm:$0xff]   ;;  %v10006_v28 = vld [vmem:[%s15187_s3 + $0x728] ss:$16 sps:$4 sm:$0xff]  }
 0x220   : > { %3395 = vmatprep.subr.bf16.mxu0 %v9945_v47  ;;  %3468 = vmatprep.subr.bf16.mxu1 %v9948_v52  ;;  %v10011_v47 = vld [vmem:[%s15187_s3 + $0x744] ss:$16 sps:$4 sm:$0xff]   ;;  %v10014_v52 = vld [vmem:[%s15187_s3 + $0x74c] ss:$16 sps:$4 sm:$0xff]  }
 0x223   : > { %3396 = vmatpush1.bf16.msra.mxu0 %v9943_v41  ;;  %3469 = vmatpush1.bf16.msra.mxu1 %v9946_v36  ;;  %v10009_v41 = vld [vmem:[%s15187_s3 + $0x740] ss:$16 sps:$4 sm:$0xff]   ;;  %v10012_v36 = vld [vmem:[%s15187_s3 + $0x748] ss:$16 sps:$4 sm:$0xff]  }
 0x224   : > { %3928 = vmatprep.subr.bf16.mxu0 %v9951_v0  ;;  %4001 = vmatprep.subr.bf16.mxu1 %v9954_v51  ;;  %v10017_v0 = vld [vmem:[%s15187_s3 + $0x764] ss:$16 sps:$4 sm:$0xff]   ;;  %v10020_v51 = vld [vmem:[%s15187_s3 + $0x76c] ss:$16 sps:$4 sm:$0xff]  }
 0x226   : > { %3398 = vmatmul.mubr.bf16.vlgmr.msra.gmra.mrb[96].mxu0 %v15343_v45  ;;  %3471 = vmatmul.mubr.bf16.vlgmr.msra.gmra.mrb[96].mxu1 %v15343_v45 }
 0x227   : > { %3407 = vmatprep.mubr.bf16.mxu0 %v15344_v38  ;;  %3480 = vmatprep.mubr.bf16.mxu1 %v15344_v38 }
 0x228   : > { %3929 = vmatpush1.bf16.msra.mxu0 %v9949_v15  ;;  %4002 = vmatpush1.bf16.msra.mxu1 %v9952_v5  ;;  %v10015_v15 = vld [vmem:[%s15187_s3 + $0x760] ss:$16 sps:$4 sm:$0xff]   ;;  %v10018_v5 = vld [vmem:[%s15187_s3 + $0x768] ss:$16 sps:$4 sm:$0xff]  }
 0x229   : > { %3930 = vmatprep.subr.bf16.mxu0 %v9957_v63  ;;  %4003 = vmatprep.subr.bf16.mxu1 %v9960_v54  ;;  %v10023_v63 = vld [vmem:[%s15187_s3 + $0x784] ss:$16 sps:$4 sm:$0xff]   ;;  %v10026_v54 = vld [vmem:[%s15187_s3 + $0x78c] ss:$16 sps:$4 sm:$0xff]  }
 0x22c   : > { %3931 = vmatpush1.bf16.msra.mxu0 %v9955_v9  ;;  %4004 = vmatpush1.bf16.msra.mxu1 %v9958_v26  ;;  %v10021_v9 = vld [vmem:[%s15187_s3 + $0x780] ss:$16 sps:$4 sm:$0xff]   ;;  %v10024_v26 = vld [vmem:[%s15187_s3 + $0x788] ss:$16 sps:$4 sm:$0xff]  }
 0x22d   : > { %3932 = vmatprep.subr.bf16.mxu0 %v9963_v22  ;;  %4005 = vmatprep.subr.bf16.mxu1 %v9966_v59  ;;  %v10029_v22 = vld [vmem:[%s15187_s3 + $0x7a4] ss:$16 sps:$4 sm:$0xff]   ;;  %v10032_v59 = vld [vmem:[%s15187_s3 + $0x7ac] ss:$16 sps:$4 sm:$0xff]  }
 0x22e   : > { %3408 = vmatmul.mubr.bf16.gmra.mrb[100].mxu0 %v15345_v61  ;;  %3481 = vmatmul.mubr.bf16.gmra.mrb[100].mxu1 %v15345_v61 }
 0x22f   : > { %3417 = vmatprep.mubr.bf16.mxu0 %v15346_v14  ;;  %3490 = vmatprep.mubr.bf16.mxu1 %v15346_v14 }
 0x230   : > { %3933 = vmatpush1.bf16.msra.mxu0 %v9961_v19  ;;  %4006 = vmatpush1.bf16.msra.mxu1 %v9964_v42  ;;  %v10027_v19 = vld [vmem:[%s15187_s3 + $0x7a0] ss:$16 sps:$4 sm:$0xff]   ;;  %v10030_v42 = vld [vmem:[%s15187_s3 + $0x7a8] ss:$16 sps:$4 sm:$0xff]  }
 0x231   : > { %3934 = vmatprep.subr.bf16.mxu0 %v9969_v31  ;;  %4007 = vmatprep.subr.bf16.mxu1 %v9972_v34  ;;  %v10035_v31 = vld [vmem:[%s15187_s3 + $0x7c4] ss:$16 sps:$4 sm:$0xff]   ;;  %v10038_v34 = vld [vmem:[%s15187_s3 + $0x7cc] ss:$16 sps:$4 sm:$0xff]  }
 0x234   : > { %3935 = vmatpush1.bf16.msra.mxu0 %v9967_v4  ;;  %4008 = vmatpush1.bf16.msra.mxu1 %v9970_v44  ;;  %v10033_v4 = vld [vmem:[%s15187_s3 + $0x7c0] ss:$16 sps:$4 sm:$0xff]   ;;  %v10036_v44 = vld [vmem:[%s15187_s3 + $0x7c8] ss:$16 sps:$4 sm:$0xff]  }
 0x235   : > { %3936 = vmatprep.subr.bf16.mxu0 %v9975_v62  ;;  %4009 = vmatprep.subr.bf16.mxu1 %v9978_v53  ;;  %v10041_v62 = vld [vmem:[%s15187_s3 + $0x7e4] ss:$16 sps:$4 sm:$0xff]   ;;  %v10044_v53 = vld [vmem:[%s15187_s3 + $0x7ec] ss:$16 sps:$4 sm:$0xff]  }
 0x236   : > { %3418 = vmatmul.mubr.bf16.gmra.mrb[104].mxu0 %v15347_v43  ;;  %3491 = vmatmul.mubr.bf16.gmra.mrb[104].mxu1 %v15347_v43 }
 0x237   : > { %3427 = vmatprep.mubr.bf16.mxu0 %v15348_v57  ;;  %3500 = vmatprep.mubr.bf16.mxu1 %v15348_v57 }
 0x238   : > { %3937 = vmatpush1.bf16.msra.mxu0 %v9973_v24  ;;  %4010 = vmatpush1.bf16.msra.mxu1 %v9976_v25  ;;  %v10039_v24 = vld [vmem:[%s15187_s3 + $0x7e0] ss:$16 sps:$4 sm:$0xff]   ;;  %v10042_v25 = vld [vmem:[%s15187_s3 + $0x7e8] ss:$16 sps:$4 sm:$0xff]  }
 0x239   : > { %3938 = vmatprep.subr.bf16.mxu0 %v9981_v46  ;;  %4011 = vmatprep.subr.bf16.mxu1 %v9984_v37  ;;  %v10047_v46 = vld [vmem:[%s15187_s3 + $0x804] ss:$16 sps:$4 sm:$0xff]   ;;  %v10050_v37 = vld [vmem:[%s15187_s3 + $0x80c] ss:$16 sps:$4 sm:$0xff]  }
 0x23c   : > { %3939 = vmatpush1.bf16.msra.mxu0 %v9979_v10  ;;  %4012 = vmatpush1.bf16.msra.mxu1 %v9982_v49  ;;  %v10045_v10 = vld [vmem:[%s15187_s3 + $0x800] ss:$16 sps:$4 sm:$0xff]   ;;  %v10048_v49 = vld [vmem:[%s15187_s3 + $0x808] ss:$16 sps:$4 sm:$0xff]  }
 0x23d   : > { %3940 = vmatprep.subr.bf16.mxu0 %v9987_v11  ;;  %4013 = vmatprep.subr.bf16.mxu1 %v9990_v23  ;;  %v10053_v11 = vld [vmem:[%s15187_s3 + $0x824] ss:$16 sps:$4 sm:$0xff]   ;;  %v10056_v23 = vld [vmem:[%s15187_s3 + $0x82c] ss:$16 sps:$4 sm:$0xff]  }
 0x23e   : > { %3428 = vmatmul.mubr.bf16.gmra.mrb[108].mxu0 %v15349_v18  ;;  %3501 = vmatmul.mubr.bf16.gmra.mrb[108].mxu1 %v15349_v18 }
 0x23f   : > { %3960 = vmatprep.mubr.bf16.mxu0 %v12123_v16  ;;  %4033 = vmatprep.mubr.bf16.mxu1 %v12123_v16 }
 0x240   : > { %3941 = vmatpush1.bf16.msra.mxu0 %v9985_v30  ;;  %4014 = vmatpush1.bf16.msra.mxu1 %v9988_v27  ;;  %v12819_v30 = vld [vmem:[%s15187_s3 + $0x820] ss:$16 sps:$4 sm:$0xff]   ;;  %v12824_v27 = vld [vmem:[%s15187_s3 + $0x828] ss:$16 sps:$4 sm:$0xff]  }
 0x241   : > { %3942 = vmatprep.subr.bf16.mxu0 %v9993_v60  ;;  %4015 = vmatprep.subr.bf16.mxu1 %v9996_v33  ;;  %v12829_v60 = vld [vmem:[%s15187_s3 + $0x844] ss:$16 sps:$4 sm:$0xff]   ;;  %v12834_v33 = vld [vmem:[%s15187_s3 + $0x84c] ss:$16 sps:$4 sm:$0xff]  }
 0x244   : > { %3943 = vmatpush1.bf16.msra.mxu0 %v9991_v48  ;;  %4016 = vmatpush1.bf16.msra.mxu1 %v9994_v58  ;;  %v12841_v48 = vld [vmem:[%s15187_s3 + $0x840] ss:$16 sps:$4 sm:$0xff]   ;;  %v12846_v58 = vld [vmem:[%s15187_s3 + $0x848] ss:$16 sps:$4 sm:$0xff]  }
 0x245   : > { %3944 = vmatprep.subr.bf16.mxu0 %v9999_v39  ;;  %4017 = vmatprep.subr.bf16.mxu1 %v10002_v56  ;;  %v12853_v39 = vld [vmem:[%s15187_s3 + $0x864] ss:$16 sps:$4 sm:$0xff]   ;;  %v12858_v56 = vld [vmem:[%s15187_s3 + $0x86c] ss:$16 sps:$4 sm:$0xff]  }
 0x248   : > { %3945 = vmatpush1.bf16.msra.mxu0 %v9997_v50  ;;  %4018 = vmatpush1.bf16.msra.mxu1 %v10000_v17  ;;  %v12869_v50 = vld [vmem:[%s15187_s3 + $0x860] ss:$16 sps:$4 sm:$0xff]   ;;  %v12874_v17 = vld [vmem:[%s15187_s3 + $0x868] ss:$16 sps:$4 sm:$0xff]  }
 0x249   : > { %3946 = vmatprep.subr.bf16.mxu0 %v10005_v2  ;;  %4019 = vmatprep.subr.bf16.mxu1 %v10008_v13  ;;  %v12881_v2 = vld [vmem:[%s15187_s3 + $0x884] ss:$16 sps:$4 sm:$0xff]   ;;  %v12886_v13 = vld [vmem:[%s15187_s3 + $0x88c] ss:$16 sps:$4 sm:$0xff]  }
 0x24c   : > { %3947 = vmatpush1.bf16.msra.mxu0 %v10003_v3  ;;  %4020 = vmatpush1.bf16.msra.mxu1 %v10006_v28  ;;  %v12893_v3 = vld [vmem:[%s15187_s3 + $0x880] ss:$16 sps:$4 sm:$0xff]   ;;  %v12898_v28 = vld [vmem:[%s15187_s3 + $0x888] ss:$16 sps:$4 sm:$0xff]  }
 0x24d   : > { %3948 = vmatprep.subr.bf16.mxu0 %v10011_v47  ;;  %4021 = vmatprep.subr.bf16.mxu1 %v10014_v52  ;;  %v12905_v47 = vld [vmem:[%s15187_s3 + $0x8a4] ss:$16 sps:$4 sm:$0xff]   ;;  %v12910_v52 = vld [vmem:[%s15187_s3 + $0x8ac] ss:$16 sps:$4 sm:$0xff]  }
 0x250   : > { %3949 = vmatpush1.bf16.msra.mxu0 %v10009_v41  ;;  %4022 = vmatpush1.bf16.msra.mxu1 %v10012_v36  ;;  %v12921_v41 = vld [vmem:[%s15187_s3 + $0x8a0] ss:$16 sps:$4 sm:$0xff]   ;;  %v12926_v36 = vld [vmem:[%s15187_s3 + $0x8a8] ss:$16 sps:$4 sm:$0xff]  }
 0x251   : > { %3950 = vmatprep.subr.bf16.mxu0 %v10017_v0  ;;  %4023 = vmatprep.subr.bf16.mxu1 %v10020_v51  ;;  %v12933_v0 = vld [vmem:[%s15187_s3 + $0x8c4] ss:$16 sps:$4 sm:$0xff]   ;;  %v12938_v51 = vld [vmem:[%s15187_s3 + $0x8cc] ss:$16 sps:$4 sm:$0xff]  }
 0x254   : > { %3951 = vmatpush1.bf16.msra.mxu0 %v10015_v15  ;;  %4024 = vmatpush1.bf16.msra.mxu1 %v10018_v5  ;;  %v12945_v15 = vld [vmem:[%s15187_s3 + $0x8c0] ss:$16 sps:$4 sm:$0xff]   ;;  %v12950_v5 = vld [vmem:[%s15187_s3 + $0x8c8] ss:$16 sps:$4 sm:$0xff]  }
 0x255   : > { %3952 = vmatprep.subr.bf16.mxu0 %v10023_v63  ;;  %4025 = vmatprep.subr.bf16.mxu1 %v10026_v54  ;;  %v12957_v63 = vld [vmem:[%s15187_s3 + $0x8e4] ss:$16 sps:$4 sm:$0xff]   ;;  %v12962_v54 = vld [vmem:[%s15187_s3 + $0x8ec] ss:$16 sps:$4 sm:$0xff]  }
 0x258   : > { %3953 = vmatpush1.bf16.msra.mxu0 %v10021_v9  ;;  %4026 = vmatpush1.bf16.msra.mxu1 %v10024_v26  ;;  %v12973_v9 = vld [vmem:[%s15187_s3 + $0x8e0] ss:$16 sps:$4 sm:$0xff]   ;;  %v12978_v26 = vld [vmem:[%s15187_s3 + $0x8e8] ss:$16 sps:$4 sm:$0xff]  }
 0x259   : > { %3954 = vmatprep.subr.bf16.mxu0 %v10029_v22  ;;  %4027 = vmatprep.subr.bf16.mxu1 %v10032_v59  ;;  %v12985_v22 = vld [vmem:[%s15187_s3 + $0x904] ss:$16 sps:$4 sm:$0xff]   ;;  %v12990_v59 = vld [vmem:[%s15187_s3 + $0x90c] ss:$16 sps:$4 sm:$0xff]  }
 0x25c   : > { %3955 = vmatpush1.bf16.msra.mxu0 %v10027_v19  ;;  %4028 = vmatpush1.bf16.msra.mxu1 %v10030_v42  ;;  %v12997_v19 = vld [vmem:[%s15187_s3 + $0x900] ss:$16 sps:$4 sm:$0xff]   ;;  %v13002_v42 = vld [vmem:[%s15187_s3 + $0x908] ss:$16 sps:$4 sm:$0xff]  }
 0x25d   : > { %3956 = vmatprep.subr.bf16.mxu0 %v10035_v31  ;;  %4029 = vmatprep.subr.bf16.mxu1 %v10038_v34  ;;  %v13009_v31 = vld [vmem:[%s15187_s3 + $0x924] ss:$16 sps:$4 sm:$0xff]   ;;  %v13014_v34 = vld [vmem:[%s15187_s3 + $0x92c] ss:$16 sps:$4 sm:$0xff]  }
 0x260   : > { %3957 = vmatpush1.bf16.msra.mxu0 %v10033_v4  ;;  %4030 = vmatpush1.bf16.msra.mxu1 %v10036_v44  ;;  %v13021_v4 = vld [vmem:[%s15187_s3 + $0x920] ss:$16 sps:$4 sm:$0xff]   ;;  %v13026_v44 = vld [vmem:[%s15187_s3 + $0x928] ss:$16 sps:$4 sm:$0xff]  }
 0x261   : > { %3958 = vmatprep.subr.bf16.mxu0 %v10041_v62  ;;  %4031 = vmatprep.subr.bf16.mxu1 %v10044_v53  ;;  %v13033_v62 = vld [vmem:[%s15187_s3 + $0x944] ss:$16 sps:$4 sm:$0xff]   ;;  %v13038_v53 = vld [vmem:[%s15187_s3 + $0x94c] ss:$16 sps:$4 sm:$0xff]  }
 0x264   : > { %3959 = vmatpush1.bf16.msra.mxu0 %v10039_v24  ;;  %4032 = vmatpush1.bf16.msra.mxu1 %v10042_v25  ;;  %v13045_v24 = vld [vmem:[%s15187_s3 + $0x940] ss:$16 sps:$4 sm:$0xff]   ;;  %v13050_v25 = vld [vmem:[%s15187_s3 + $0x948] ss:$16 sps:$4 sm:$0xff]  }
 0x265   : > { %4491 = vmatprep.subr.bf16.mxu0 %v10047_v46  ;;  %4564 = vmatprep.subr.bf16.mxu1 %v10050_v37  ;;  %v13057_v46 = vld [vmem:[%s15187_s3 + $0x964] ss:$16 sps:$4 sm:$0xff]   ;;  %v13062_v37 = vld [vmem:[%s15187_s3 + $0x96c] ss:$16 sps:$4 sm:$0xff]  }
 0x267   : > { %3961 = vmatmul.mubr.bf16.vlgmr.msra.gmra.mrb[96].mxu0 %v12118_v12  ;;  %4034 = vmatmul.mubr.bf16.vlgmr.msra.gmra.mrb[96].mxu1 %v12118_v12 }
 0x268   : > { %3970 = vmatprep.mubr.bf16.mxu0 %v12171_v20  ;;  %4043 = vmatprep.mubr.bf16.mxu1 %v12171_v20 }
 0x269   : > { %4492 = vmatpush1.bf16.msra.mxu0 %v10045_v10  ;;  %4565 = vmatpush1.bf16.msra.mxu1 %v10048_v49  ;;  %v13069_v10 = vld [vmem:[%s15187_s3 + $0x960] ss:$16 sps:$4 sm:$0xff]   ;;  %v13074_v49 = vld [vmem:[%s15187_s3 + $0x968] ss:$16 sps:$4 sm:$0xff]  }
 0x26a   : > { %4493 = vmatprep.subr.bf16.mxu0 %v10053_v11  ;;  %4566 = vmatprep.subr.bf16.mxu1 %v10056_v23  ;;  %15350 = vst [vmem:[#allocation18_spill] sm:$0xff] %v13069_v10  ;;  %15351 = vst [vmem:[#allocation19_spill] sm:$0xff] %v13074_v49  ;;  %v13081_v11 = vld [vmem:[%s15187_s3 + $0x984] ss:$16 sps:$4 sm:$0xff]   ;;  %v13086_v23 = vld [vmem:[%s15187_s3 + $0x98c] ss:$16 sps:$4 sm:$0xff]  }
 0x26b   : > { %15352 = vst [vmem:[#allocation8_spill] sm:$0xff] %v13081_v11  ;;  %15353 = vst [vmem:[#allocation10_spill] sm:$0xff] %v13086_v23 }
 0x26d   : > { %4494 = vmatpush1.bf16.msra.mxu0 %v12819_v30  ;;  %4567 = vmatpush1.bf16.msra.mxu1 %v12824_v27 }
 0x26e   : > { %4495 = vmatprep.subr.bf16.mxu0 %v12829_v60  ;;  %4568 = vmatprep.subr.bf16.mxu1 %v12834_v33 }
 0x26f   : > { %3971 = vmatmul.mubr.bf16.gmra.mrb[100].mxu0 %v12166_v55  ;;  %4044 = vmatmul.mubr.bf16.gmra.mrb[100].mxu1 %v12166_v55 }
 0x270   : > { %3980 = vmatprep.mubr.bf16.mxu0 %v12219_v8  ;;  %4053 = vmatprep.mubr.bf16.mxu1 %v12219_v8 }
 0x271   : > { %4496 = vmatpush1.bf16.msra.mxu0 %v12841_v48  ;;  %4569 = vmatpush1.bf16.msra.mxu1 %v12846_v58 }
 0x272   : > { %4497 = vmatprep.subr.bf16.mxu0 %v12853_v39  ;;  %4570 = vmatprep.subr.bf16.mxu1 %v12858_v56 }
 0x275   : > { %4498 = vmatpush1.bf16.msra.mxu0 %v12869_v50  ;;  %4571 = vmatpush1.bf16.msra.mxu1 %v12874_v17 }
 0x276   : > { %4499 = vmatprep.subr.bf16.mxu0 %v12881_v2  ;;  %4572 = vmatprep.subr.bf16.mxu1 %v12886_v13 }
 0x277   : > { %3981 = vmatmul.mubr.bf16.gmra.mrb[104].mxu0 %v12214_v35  ;;  %4054 = vmatmul.mubr.bf16.gmra.mrb[104].mxu1 %v12214_v35 }
 0x278   : > { %3990 = vmatprep.mubr.bf16.mxu0 %v12269_v29  ;;  %4063 = vmatprep.mubr.bf16.mxu1 %v12269_v29 }
 0x279   : > { %4500 = vmatpush1.bf16.msra.mxu0 %v12893_v3  ;;  %4573 = vmatpush1.bf16.msra.mxu1 %v12898_v28 }
 0x27a   : > { %4501 = vmatprep.subr.bf16.mxu0 %v12905_v47  ;;  %4574 = vmatprep.subr.bf16.mxu1 %v12910_v52 }
 0x27d   : > { %4502 = vmatpush1.bf16.msra.mxu0 %v12921_v41  ;;  %4575 = vmatpush1.bf16.msra.mxu1 %v12926_v36 }
 0x27e   : > { %4503 = vmatprep.subr.bf16.mxu0 %v12933_v0  ;;  %4576 = vmatprep.subr.bf16.mxu1 %v12938_v51 }
 0x27f   : > { %3991 = vmatmul.mubr.bf16.gmra.mrb[108].mxu0 %v12264_v6  ;;  %4064 = vmatmul.mubr.bf16.gmra.mrb[108].mxu1 %v12264_v6 }
 0x280   : > { %4523 = vmatprep.mubr.bf16.mxu0 %v15344_v38  ;;  %4596 = vmatprep.mubr.bf16.mxu1 %v15344_v38 }
 0x281   : > { %4504 = vmatpush1.bf16.msra.mxu0 %v12945_v15  ;;  %4577 = vmatpush1.bf16.msra.mxu1 %v12950_v5 }
 0x282   : > { %4505 = vmatprep.subr.bf16.mxu0 %v12957_v63  ;;  %4578 = vmatprep.subr.bf16.mxu1 %v12962_v54 }
 0x285   : > { %4506 = vmatpush1.bf16.msra.mxu0 %v12973_v9  ;;  %4579 = vmatpush1.bf16.msra.mxu1 %v12978_v26 }
 0x286   : > { %4507 = vmatprep.subr.bf16.mxu0 %v12985_v22  ;;  %4580 = vmatprep.subr.bf16.mxu1 %v12990_v59 }
 0x289   : > { %4508 = vmatpush1.bf16.msra.mxu0 %v12997_v19  ;;  %4581 = vmatpush1.bf16.msra.mxu1 %v13002_v42 }
 0x28a   : > { %4509 = vmatprep.subr.bf16.mxu0 %v13009_v31  ;;  %4582 = vmatprep.subr.bf16.mxu1 %v13014_v34 }
 0x28d   : > { %4510 = vmatpush1.bf16.msra.mxu0 %v13021_v4  ;;  %4583 = vmatpush1.bf16.msra.mxu1 %v13026_v44 }
 0x28e   : > { %4511 = vmatprep.subr.bf16.mxu0 %v13033_v62  ;;  %4584 = vmatprep.subr.bf16.mxu1 %v13038_v53 }
 0x291   : > { %4512 = vmatpush1.bf16.msra.mxu0 %v13045_v24  ;;  %4585 = vmatpush1.bf16.msra.mxu1 %v13050_v25 }
 0x292   : > { %4513 = vmatprep.subr.bf16.mxu0 %v13057_v46  ;;  %4586 = vmatprep.subr.bf16.mxu1 %v13062_v37 }
 0x295   : > { %4514 = vmatpush1.bf16.msra.mxu0 %v13069_v10  ;;  %4587 = vmatpush1.bf16.msra.mxu1 %v13074_v49  ;;  %v13105_v10 = vld [vmem:[%s15187_s3 + $0x9a4] ss:$16 sps:$4 sm:$0xff]   ;;  %v13110_v49 = vld [vmem:[%s15187_s3 + $0x9ac] ss:$16 sps:$4 sm:$0xff]  }
 0x296   : > { %4515 = vmatprep.subr.bf16.mxu0 %v13081_v11  ;;  %4588 = vmatprep.subr.bf16.mxu1 %v13086_v23  ;;  %15356 = vst [vmem:[#allocation11_spill] sm:$0xff] %v13105_v10  ;;  %15357 = vst [vmem:[#allocation14_spill] sm:$0xff] %v13110_v49  ;;  %v13117_v11 = vld [vmem:[%s15187_s3 + $0x9a0] ss:$16 sps:$4 sm:$0xff]   ;;  %v13122_v23 = vld [vmem:[%s15187_s3 + $0x9a8] ss:$16 sps:$4 sm:$0xff]  }
 0x297   : > { %15358 = vst [vmem:[#allocation13_spill] sm:$0xff] %v13117_v11  ;;  %15359 = vst [vmem:[#allocation16_spill] sm:$0xff] %v13122_v23 }
 0x299   : > { %4516 = vmatpush1.bf16.msra.mxu0 %v13093_v40  ;;  %4589 = vmatpush1.bf16.msra.mxu1 %v13098_v21  ;;  %v13129_v40 = vld [vmem:[%s15187_s3 + $0x9c4] ss:$16 sps:$4 sm:$0xff]   ;;  %v13134_v21 = vld [vmem:[%s15187_s3 + $0x9cc] ss:$16 sps:$4 sm:$0xff]  }
 0x29a   : > { %4517 = vmatprep.subr.bf16.mxu0 %v13105_v10  ;;  %4590 = vmatprep.subr.bf16.mxu1 %v13110_v49  ;;  %15360 = vst [vmem:[#allocation15_spill] sm:$0xff] %v13129_v40  ;;  %15361 = vst [vmem:[#allocation20_spill] sm:$0xff] %v13134_v21  ;;  %v13141_v10 = vld [vmem:[%s15187_s3 + $0x9c0] ss:$16 sps:$4 sm:$0xff]   ;;  %v13146_v49 = vld [vmem:[%s15187_s3 + $0x9c8] ss:$16 sps:$4 sm:$0xff]  }
 0x29b   : > { %15362 = vst [vmem:[#allocation21_spill] sm:$0xff] %v13141_v10  ;;  %15363 = vst [vmem:[#allocation22_spill] sm:$0xff] %v13146_v49 }
 0x29d   : > { %4518 = vmatpush1.bf16.msra.mxu0 %v13117_v11  ;;  %4591 = vmatpush1.bf16.msra.mxu1 %v13122_v23  ;;  %v13153_v11 = vld [vmem:[%s15187_s3 + $0x9e4] ss:$16 sps:$4 sm:$0xff]   ;;  %v13158_v23 = vld [vmem:[%s15187_s3 + $0x9ec] ss:$16 sps:$4 sm:$0xff]  }
 0x29e   : > { %4519 = vmatprep.subr.bf16.mxu0 %v13129_v40  ;;  %4592 = vmatprep.subr.bf16.mxu1 %v13134_v21  ;;  %15364 = vst [vmem:[#allocation23_spill] sm:$0xff] %v13153_v11  ;;  %15365 = vst [vmem:[#allocation24_spill] sm:$0xff] %v13158_v23  ;;  %v13165_v40 = vld [vmem:[%s15187_s3 + $0x9e0] ss:$16 sps:$4 sm:$0xff]   ;;  %v13170_v21 = vld [vmem:[%s15187_s3 + $0x9e8] ss:$16 sps:$4 sm:$0xff]  }
 0x29f   : > { %15366 = vst [vmem:[#allocation25_spill] sm:$0xff] %v13165_v40  ;;  %15367 = vst [vmem:[#allocation26_spill] sm:$0xff] %v13170_v21 }
 0x2a1   : > { %4520 = vmatpush1.bf16.msra.mxu0 %v13141_v10  ;;  %4593 = vmatpush1.bf16.msra.mxu1 %v13146_v49  ;;  %v10597_v49 = vld [vmem:[%s15187_s3 + $0x204] ss:$16 sps:$4 sm:$0xff]   ;;  %v10598_v10 = vld [vmem:[%s15187_s3 + $0x20c] ss:$16 sps:$4 sm:$0xff]  }
 0x2a2   : > { %4521 = vmatprep.subr.bf16.mxu0 %v13153_v11  ;;  %4594 = vmatprep.subr.bf16.mxu1 %v13158_v23  ;;  %v10603_v23 = vld [vmem:[%s15187_s3 + $0x220] ss:$16 sps:$4 sm:$0xff]  }
 0x2a3   : > { %v10619_v11 = vld [vmem:[%s15187_s3 + $0x2a0] ss:$16 sps:$4 sm:$0xff]  }
 0x2a5   : > { %4522 = vmatpush1.bf16.msra.mxu0 %v13165_v40  ;;  %4595 = vmatpush1.bf16.msra.mxu1 %v13170_v21  ;;  %v10599_v21 = vld [vmem:[%s15187_s3 + $0x200] ss:$16 sps:$4 sm:$0xff]   ;;  %v10602_v40 = vld [vmem:[%s15187_s3 + $0x22c] ss:$16 sps:$4 sm:$0xff]  }
 0x2a6   : > { %4685 = vmatprep.subr.bf16.mxu0 %v10597_v49  ;;  %4758 = vmatprep.subr.bf16.mxu1 %v10598_v10  ;;  %v10600_v49 = vld [vmem:[%s15187_s3 + $0x208] ss:$16 sps:$4 sm:$0xff]   ;;  %v10601_v10 = vld [vmem:[%s15187_s3 + $0x224] ss:$16 sps:$4 sm:$0xff]  }
 0x2a8   : > { %4524 = vmatmul.mubr.bf16.vlgmr.msra.gmra.mrb[96].mxu0 %v15345_v61  ;;  %4597 = vmatmul.mubr.bf16.vlgmr.msra.gmra.mrb[96].mxu1 %v15345_v61 }
 0x2a9   : > { %4533 = vmatprep.mubr.bf16.mxu0 %v15346_v14  ;;  %4606 = vmatprep.mubr.bf16.mxu1 %v15346_v14 }
 0x2aa   : > { %4686 = vmatpush1.bf16.msra.mxu0 %v10599_v21  ;;  %4759 = vmatpush1.bf16.msra.mxu1 %v10600_v49  ;;  %v10604_v21 = vld [vmem:[%s15187_s3 + $0x228] ss:$16 sps:$4 sm:$0xff]   ;;  %v10605_v49 = vld [vmem:[%s15187_s3 + $0x244] ss:$16 sps:$4 sm:$0xff]  }
 0x2ab   : > { %4687 = vmatprep.subr.bf16.mxu0 %v10601_v10  ;;  %4760 = vmatprep.subr.bf16.mxu1 %v10602_v40  ;;  %v10606_v10 = vld [vmem:[%s15187_s3 + $0x24c] ss:$16 sps:$4 sm:$0xff]   ;;  %v10607_v40 = vld [vmem:[%s15187_s3 + $0x240] ss:$16 sps:$4 sm:$0xff]  }
 0x2ae   : > { %4688 = vmatpush1.bf16.msra.mxu0 %v10603_v23  ;;  %4761 = vmatpush1.bf16.msra.mxu1 %v10604_v21  ;;  %v10608_v23 = vld [vmem:[%s15187_s3 + $0x248] ss:$16 sps:$4 sm:$0xff]   ;;  %v10609_v21 = vld [vmem:[%s15187_s3 + $0x264] ss:$16 sps:$4 sm:$0xff]  }
 0x2af   : > { %4689 = vmatprep.subr.bf16.mxu0 %v10605_v49  ;;  %4762 = vmatprep.subr.bf16.mxu1 %v10606_v10  ;;  %v10610_v49 = vld [vmem:[%s15187_s3 + $0x26c] ss:$16 sps:$4 sm:$0xff]   ;;  %v10611_v10 = vld [vmem:[%s15187_s3 + $0x260] ss:$16 sps:$4 sm:$0xff]  }
 0x2b0   : > { %4534 = vmatmul.mubr.bf16.gmra.mrb[100].mxu0 %v15347_v43  ;;  %4607 = vmatmul.mubr.bf16.gmra.mrb[100].mxu1 %v15347_v43 }
 0x2b1   : > { %4543 = vmatprep.mubr.bf16.mxu0 %v15348_v57  ;;  %4616 = vmatprep.mubr.bf16.mxu1 %v15348_v57 }
 0x2b2   : > { %4690 = vmatpush1.bf16.msra.mxu0 %v10607_v40  ;;  %4763 = vmatpush1.bf16.msra.mxu1 %v10608_v23  ;;  %v10612_v40 = vld [vmem:[%s15187_s3 + $0x268] ss:$16 sps:$4 sm:$0xff]   ;;  %v10613_v23 = vld [vmem:[%s15187_s3 + $0x284] ss:$16 sps:$4 sm:$0xff]  }
 0x2b3   : > { %4691 = vmatprep.subr.bf16.mxu0 %v10609_v21  ;;  %4764 = vmatprep.subr.bf16.mxu1 %v10610_v49  ;;  %v10614_v21 = vld [vmem:[%s15187_s3 + $0x28c] ss:$16 sps:$4 sm:$0xff]   ;;  %v15368_v49 = vld [vmem:[#allocation4_spill] sm:$0xff] }
 0x2b6   : > { %4692 = vmatpush1.bf16.msra.mxu0 %v10611_v10  ;;  %4765 = vmatpush1.bf16.msra.mxu1 %v10612_v40  ;;  %v10615_v10 = vld [vmem:[%s15187_s3 + $0x280] ss:$16 sps:$4 sm:$0xff]   ;;  %v10616_v40 = vld [vmem:[%s15187_s3 + $0x288] ss:$16 sps:$4 sm:$0xff]  }
 0x2b7   : > { %4693 = vmatprep.subr.bf16.mxu0 %v10613_v23  ;;  %4766 = vmatprep.subr.bf16.mxu1 %v10614_v21  ;;  %v10617_v23 = vld [vmem:[%s15187_s3 + $0x2a4] ss:$16 sps:$4 sm:$0xff]   ;;  %v10618_v21 = vld [vmem:[%s15187_s3 + $0x2ac] ss:$16 sps:$4 sm:$0xff]  }
 0x2b8   : > { %4544 = vmatmul.mubr.bf16.gmra.mrb[104].mxu0 %v15349_v18  ;;  %4617 = vmatmul.mubr.bf16.gmra.mrb[104].mxu1 %v15349_v18 }
 0x2b9   : > { %4553 = vmatprep.mubr.bf16.mxu0 %v15368_v49  ;;  %4626 = vmatprep.mubr.bf16.mxu1 %v15368_v49 }
 0x2ba   : > { %4694 = vmatpush1.bf16.msra.mxu0 %v10615_v10  ;;  %4767 = vmatpush1.bf16.msra.mxu1 %v10616_v40  ;;  %v10620_v10 = vld [vmem:[%s15187_s3 + $0x2a8] ss:$16 sps:$4 sm:$0xff]   ;;  %v10621_v40 = vld [vmem:[%s15187_s3 + $0x2c4] ss:$16 sps:$4 sm:$0xff]  }
 0x2bb   : > { %4695 = vmatprep.subr.bf16.mxu0 %v10617_v23  ;;  %4768 = vmatprep.subr.bf16.mxu1 %v10618_v21  ;;  %v10622_v23 = vld [vmem:[%s15187_s3 + $0x2cc] ss:$16 sps:$4 sm:$0xff]  }
 0x2bc   : > { %v15369_v21 = vld [vmem:[#allocation3_spill] sm:$0xff] }
 0x2be   : > { %4696 = vmatpush1.bf16.msra.mxu0 %v10619_v11  ;;  %4769 = vmatpush1.bf16.msra.mxu1 %v10620_v10  ;;  %v10623_v11 = vld [vmem:[%s15187_s3 + $0x2c0] ss:$16 sps:$4 sm:$0xff]   ;;  %v10624_v10 = vld [vmem:[%s15187_s3 + $0x2c8] ss:$16 sps:$4 sm:$0xff]  }
 0x2bf   : > { %4697 = vmatprep.subr.bf16.mxu0 %v10621_v40  ;;  %4770 = vmatprep.subr.bf16.mxu1 %v10622_v23  ;;  %v10625_v40 = vld [vmem:[%s15187_s3 + $0x2e4] ss:$16 sps:$4 sm:$0xff]   ;;  %v10626_v23 = vld [vmem:[%s15187_s3 + $0x2ec] ss:$16 sps:$4 sm:$0xff]  }
 0x2c0   : > { %4554 = vmatmul.mubr.bf16.gmra.mrb[108].mxu0 %v15369_v21  ;;  %4627 = vmatmul.mubr.bf16.gmra.mrb[108].mxu1 %v15369_v21 }
 0x2c1   : > { %4717 = vmatprep.mubr.bf16.mxu0 %v15342_v7  ;;  %4790 = vmatprep.mubr.bf16.mxu1 %v15342_v7  ;;  %v10627_v7 = vld [vmem:[%s15187_s3 + $0x2e0] ss:$16 sps:$4 sm:$0xff]  }
 0x2c2   : > { %4698 = vmatpush1.bf16.msra.mxu0 %v10623_v11  ;;  %4771 = vmatpush1.bf16.msra.mxu1 %v10624_v10  ;;  %v10628_v11 = vld [vmem:[%s15187_s3 + $0x2e8] ss:$16 sps:$4 sm:$0xff]   ;;  %v10629_v10 = vld [vmem:[%s15187_s3 + $0x304] ss:$16 sps:$4 sm:$0xff]  }
 0x2c3   : > { %4699 = vmatprep.subr.bf16.mxu0 %v10625_v40  ;;  %4772 = vmatprep.subr.bf16.mxu1 %v10626_v23  ;;  %v10630_v40 = vld [vmem:[%s15187_s3 + $0x30c] ss:$16 sps:$4 sm:$0xff]   ;;  %v10631_v23 = vld [vmem:[%s15187_s3 + $0x300] ss:$16 sps:$4 sm:$0xff]  }
 0x2c6   : > { %4700 = vmatpush1.bf16.msra.mxu0 %v10627_v7  ;;  %4773 = vmatpush1.bf16.msra.mxu1 %v10628_v11  ;;  %v10632_v7 = vld [vmem:[%s15187_s3 + $0x308] ss:$16 sps:$4 sm:$0xff]   ;;  %v10633_v11 = vld [vmem:[%s15187_s3 + $0x324] ss:$16 sps:$4 sm:$0xff]  }
 0x2c7   : > { %4701 = vmatprep.subr.bf16.mxu0 %v10629_v10  ;;  %4774 = vmatprep.subr.bf16.mxu1 %v10630_v40  ;;  %v10634_v10 = vld [vmem:[%s15187_s3 + $0x32c] ss:$16 sps:$4 sm:$0xff]   ;;  %v10635_v40 = vld [vmem:[%s15187_s3 + $0x320] ss:$16 sps:$4 sm:$0xff]  }
 0x2ca   : > { %4702 = vmatpush1.bf16.msra.mxu0 %v10631_v23  ;;  %4775 = vmatpush1.bf16.msra.mxu1 %v10632_v7  ;;  %v10636_v23 = vld [vmem:[%s15187_s3 + $0x328] ss:$16 sps:$4 sm:$0xff]   ;;  %v10637_v7 = vld [vmem:[%s15187_s3 + $0x344] ss:$16 sps:$4 sm:$0xff]  }
 0x2cb   : > { %4703 = vmatprep.subr.bf16.mxu0 %v10633_v11  ;;  %4776 = vmatprep.subr.bf16.mxu1 %v10634_v10  ;;  %v10638_v11 = vld [vmem:[%s15187_s3 + $0x34c] ss:$16 sps:$4 sm:$0xff]   ;;  %v10639_v10 = vld [vmem:[%s15187_s3 + $0x340] ss:$16 sps:$4 sm:$0xff]  }
 0x2ce   : > { %4704 = vmatpush1.bf16.msra.mxu0 %v10635_v40  ;;  %4777 = vmatpush1.bf16.msra.mxu1 %v10636_v23  ;;  %v10640_v40 = vld [vmem:[%s15187_s3 + $0x348] ss:$16 sps:$4 sm:$0xff]   ;;  %v10641_v23 = vld [vmem:[%s15187_s3 + $0x364] ss:$16 sps:$4 sm:$0xff]  }
 0x2cf   : > { %4705 = vmatprep.subr.bf16.mxu0 %v10637_v7  ;;  %4778 = vmatprep.subr.bf16.mxu1 %v10638_v11  ;;  %v10642_v7 = vld [vmem:[%s15187_s3 + $0x36c] ss:$16 sps:$4 sm:$0xff]   ;;  %v10643_v11 = vld [vmem:[%s15187_s3 + $0x360] ss:$16 sps:$4 sm:$0xff]  }
 0x2d2   : > { %4706 = vmatpush1.bf16.msra.mxu0 %v10639_v10  ;;  %4779 = vmatpush1.bf16.msra.mxu1 %v10640_v40  ;;  %v10644_v10 = vld [vmem:[%s15187_s3 + $0x368] ss:$16 sps:$4 sm:$0xff]   ;;  %v10645_v40 = vld [vmem:[%s15187_s3 + $0x384] ss:$16 sps:$4 sm:$0xff]  }
 0x2d3   : > { %4707 = vmatprep.subr.bf16.mxu0 %v10641_v23  ;;  %4780 = vmatprep.subr.bf16.mxu1 %v10642_v7  ;;  %v10646_v23 = vld [vmem:[%s15187_s3 + $0x38c] ss:$16 sps:$4 sm:$0xff]   ;;  %v10647_v7 = vld [vmem:[%s15187_s3 + $0x380] ss:$16 sps:$4 sm:$0xff]  }
 0x2d6   : > { %4708 = vmatpush1.bf16.msra.mxu0 %v10643_v11  ;;  %4781 = vmatpush1.bf16.msra.mxu1 %v10644_v10  ;;  %v10648_v11 = vld [vmem:[%s15187_s3 + $0x388] ss:$16 sps:$4 sm:$0xff]   ;;  %v10649_v10 = vld [vmem:[%s15187_s3 + $0x3a4] ss:$16 sps:$4 sm:$0xff]  }
 0x2d7   : > { %4709 = vmatprep.subr.bf16.mxu0 %v10645_v40  ;;  %4782 = vmatprep.subr.bf16.mxu1 %v10646_v23  ;;  %v10650_v40 = vld [vmem:[%s15187_s3 + $0x3ac] ss:$16 sps:$4 sm:$0xff]   ;;  %v10651_v23 = vld [vmem:[%s15187_s3 + $0x3a0] ss:$16 sps:$4 sm:$0xff]  }
 0x2da   : > { %4710 = vmatpush1.bf16.msra.mxu0 %v10647_v7  ;;  %4783 = vmatpush1.bf16.msra.mxu1 %v10648_v11  ;;  %v10652_v7 = vld [vmem:[%s15187_s3 + $0x3a8] ss:$16 sps:$4 sm:$0xff]   ;;  %v10653_v11 = vld [vmem:[%s15187_s3 + $0x3c4] ss:$16 sps:$4 sm:$0xff]  }
 0x2db   : > { %4711 = vmatprep.subr.bf16.mxu0 %v10649_v10  ;;  %4784 = vmatprep.subr.bf16.mxu1 %v10650_v40  ;;  %v10654_v10 = vld [vmem:[%s15187_s3 + $0x3cc] ss:$16 sps:$4 sm:$0xff]   ;;  %v10655_v40 = vld [vmem:[%s15187_s3 + $0x3c0] ss:$16 sps:$4 sm:$0xff]  }
 0x2de   : > { %4712 = vmatpush1.bf16.msra.mxu0 %v10651_v23  ;;  %4785 = vmatpush1.bf16.msra.mxu1 %v10652_v7  ;;  %v10656_v23 = vld [vmem:[%s15187_s3 + $0x3c8] ss:$16 sps:$4 sm:$0xff]   ;;  %v10657_v7 = vld [vmem:[%s15187_s3 + $0x3e4] ss:$16 sps:$4 sm:$0xff]  }
 0x2df   : > { %4713 = vmatprep.subr.bf16.mxu0 %v10653_v11  ;;  %4786 = vmatprep.subr.bf16.mxu1 %v10654_v10  ;;  %v10658_v11 = vld [vmem:[%s15187_s3 + $0x3ec] ss:$16 sps:$4 sm:$0xff]   ;;  %v10659_v10 = vld [vmem:[%s15187_s3 + $0x3e0] ss:$16 sps:$4 sm:$0xff]  }
 0x2e2   : > { %4714 = vmatpush1.bf16.msra.mxu0 %v10655_v40  ;;  %4787 = vmatpush1.bf16.msra.mxu1 %v10656_v23  ;;  %v10660_v40 = vld [vmem:[%s15187_s3 + $0x3e8] ss:$16 sps:$4 sm:$0xff]   ;;  %v10661_v23 = vld [vmem:[%s15187_s3 + $0x4] ss:$16 sps:$4 sm:$0xff]  }
 0x2e3   : > { %4715 = vmatprep.subr.bf16.mxu0 %v10657_v7  ;;  %4788 = vmatprep.subr.bf16.mxu1 %v10658_v11  ;;  %v10662_v7 = vld [vmem:[%s15187_s3 + $0xc] ss:$16 sps:$4 sm:$0xff]   ;;  %v10663_v11 = vld [vmem:[%s15187_s3] ss:$16 sps:$4 sm:$0xff]  }
 0x2e6   : > { %4716 = vmatpush1.bf16.msra.mxu0 %v10659_v10  ;;  %4789 = vmatpush1.bf16.msra.mxu1 %v10660_v40  ;;  %v10664_v10 = vld [vmem:[%s15187_s3 + $0x8] ss:$16 sps:$4 sm:$0xff]   ;;  %v10665_v40 = vld [vmem:[%s15187_s3 + $0x24] ss:$16 sps:$4 sm:$0xff]  }
 0x2e7   : > { %4831 = vmatprep.subr.bf16.mxu0 %v10661_v23  ;;  %4904 = vmatprep.subr.bf16.mxu1 %v10662_v7  ;;  %v10667_v23 = vld [vmem:[%s15187_s3 + $0x20] ss:$16 sps:$4 sm:$0xff]   ;;  %v10668_v7 = vld [vmem:[%s15187_s3 + $0x28] ss:$16 sps:$4 sm:$0xff]  }
 0x2e9   : > { %4718 = vmatmul.mubr.bf16.vlgmr.msra.gmra.mrb[112].mxu0 %v15343_v45  ;;  %4791 = vmatmul.mubr.bf16.vlgmr.msra.gmra.mrb[112].mxu1 %v15343_v45  ;;  %v10666_v45 = vld [vmem:[%s15187_s3 + $0x2c] ss:$16 sps:$4 sm:$0xff]  }
 0x2ea   : > { %4727 = vmatprep.mubr.bf16.mxu0 %v15344_v38  ;;  %4800 = vmatprep.mubr.bf16.mxu1 %v15344_v38 }
 0x2eb   : > { %4832 = vmatpush1.bf16.msra.mxu0 %v10663_v11  ;;  %4905 = vmatpush1.bf16.msra.mxu1 %v10664_v10  ;;  %v10669_v11 = vld [vmem:[%s15187_s3 + $0x44] ss:$16 sps:$4 sm:$0xff]   ;;  %v10670_v10 = vld [vmem:[%s15187_s3 + $0x4c] ss:$16 sps:$4 sm:$0xff]  }
 0x2ec   : > { %4833 = vmatprep.subr.bf16.mxu0 %v10665_v40  ;;  %4906 = vmatprep.subr.bf16.mxu1 %v10666_v45  ;;  %v10671_v40 = vld [vmem:[%s15187_s3 + $0x40] ss:$16 sps:$4 sm:$0xff]   ;;  %v10672_v45 = vld [vmem:[%s15187_s3 + $0x48] ss:$16 sps:$4 sm:$0xff]  }
 0x2ef   : > { %4834 = vmatpush1.bf16.msra.mxu0 %v10667_v23  ;;  %4907 = vmatpush1.bf16.msra.mxu1 %v10668_v7  ;;  %v10673_v23 = vld [vmem:[%s15187_s3 + $0x64] ss:$16 sps:$4 sm:$0xff]   ;;  %v10674_v7 = vld [vmem:[%s15187_s3 + $0x6c] ss:$16 sps:$4 sm:$0xff]  }
 0x2f0   : > { %4835 = vmatprep.subr.bf16.mxu0 %v10669_v11  ;;  %4908 = vmatprep.subr.bf16.mxu1 %v10670_v10  ;;  %v10675_v11 = vld [vmem:[%s15187_s3 + $0x60] ss:$16 sps:$4 sm:$0xff]   ;;  %v10676_v10 = vld [vmem:[%s15187_s3 + $0x68] ss:$16 sps:$4 sm:$0xff]  }
 0x2f1   : > { %4728 = vmatmul.mubr.bf16.gmra.mrb[116].mxu0 %v15345_v61  ;;  %4801 = vmatmul.mubr.bf16.gmra.mrb[116].mxu1 %v15345_v61 }
 0x2f2   : > { %4737 = vmatprep.mubr.bf16.mxu0 %v15346_v14  ;;  %4810 = vmatprep.mubr.bf16.mxu1 %v15346_v14 }
 0x2f3   : > { %4836 = vmatpush1.bf16.msra.mxu0 %v10671_v40  ;;  %4909 = vmatpush1.bf16.msra.mxu1 %v10672_v45  ;;  %v10677_v40 = vld [vmem:[%s15187_s3 + $0x84] ss:$16 sps:$4 sm:$0xff]   ;;  %v10678_v45 = vld [vmem:[%s15187_s3 + $0x8c] ss:$16 sps:$4 sm:$0xff]  }
 0x2f4   : > { %4837 = vmatprep.subr.bf16.mxu0 %v10673_v23  ;;  %4910 = vmatprep.subr.bf16.mxu1 %v10674_v7  ;;  %v10679_v23 = vld [vmem:[%s15187_s3 + $0x80] ss:$16 sps:$4 sm:$0xff]   ;;  %v10680_v7 = vld [vmem:[%s15187_s3 + $0x88] ss:$16 sps:$4 sm:$0xff]  }
 0x2f7   : > { %4838 = vmatpush1.bf16.msra.mxu0 %v10675_v11  ;;  %4911 = vmatpush1.bf16.msra.mxu1 %v10676_v10  ;;  %v10681_v11 = vld [vmem:[%s15187_s3 + $0xa4] ss:$16 sps:$4 sm:$0xff]   ;;  %v10682_v10 = vld [vmem:[%s15187_s3 + $0xac] ss:$16 sps:$4 sm:$0xff]  }
 0x2f8   : > { %4839 = vmatprep.subr.bf16.mxu0 %v10677_v40  ;;  %4912 = vmatprep.subr.bf16.mxu1 %v10678_v45  ;;  %v10683_v40 = vld [vmem:[%s15187_s3 + $0xa0] ss:$16 sps:$4 sm:$0xff]   ;;  %v10684_v45 = vld [vmem:[%s15187_s3 + $0xa8] ss:$16 sps:$4 sm:$0xff]  }
 0x2f9   : > { %4738 = vmatmul.mubr.bf16.gmra.mrb[120].mxu0 %v15347_v43  ;;  %4811 = vmatmul.mubr.bf16.gmra.mrb[120].mxu1 %v15347_v43 }
 0x2fa   : > { %4747 = vmatprep.mubr.bf16.mxu0 %v15348_v57  ;;  %4820 = vmatprep.mubr.bf16.mxu1 %v15348_v57 }
 0x2fb   : > { %4840 = vmatpush1.bf16.msra.mxu0 %v10679_v23  ;;  %4913 = vmatpush1.bf16.msra.mxu1 %v10680_v7  ;;  %v10685_v23 = vld [vmem:[%s15187_s3 + $0xc4] ss:$16 sps:$4 sm:$0xff]   ;;  %v10686_v7 = vld [vmem:[%s15187_s3 + $0xcc] ss:$16 sps:$4 sm:$0xff]  }
 0x2fc   : > { %4841 = vmatprep.subr.bf16.mxu0 %v10681_v11  ;;  %4914 = vmatprep.subr.bf16.mxu1 %v10682_v10  ;;  %v10687_v11 = vld [vmem:[%s15187_s3 + $0xc0] ss:$16 sps:$4 sm:$0xff]   ;;  %v10688_v10 = vld [vmem:[%s15187_s3 + $0xc8] ss:$16 sps:$4 sm:$0xff]  }
 0x2ff   : > { %4842 = vmatpush1.bf16.msra.mxu0 %v10683_v40  ;;  %4915 = vmatpush1.bf16.msra.mxu1 %v10684_v45  ;;  %v10689_v40 = vld [vmem:[%s15187_s3 + $0xe4] ss:$16 sps:$4 sm:$0xff]   ;;  %v10690_v45 = vld [vmem:[%s15187_s3 + $0xec] ss:$16 sps:$4 sm:$0xff]  }
 0x300   : > { %4843 = vmatprep.subr.bf16.mxu0 %v10685_v23  ;;  %4916 = vmatprep.subr.bf16.mxu1 %v10686_v7  ;;  %v10692_v23 = vld [vmem:[%s15187_s3 + $0xe8] ss:$16 sps:$4 sm:$0xff]   ;;  %v10693_v7 = vld [vmem:[%s15187_s3 + $0x104] ss:$16 sps:$4 sm:$0xff]  }
 0x301   : > { %4748 = vmatmul.mubr.bf16.gmra.mrb[124].mxu0 %v15349_v18  ;;  %4821 = vmatmul.mubr.bf16.gmra.mrb[124].mxu1 %v15349_v18 }
 0x302   : > { %4863 = vmatprep.mubr.bf16.mxu0 %v12075_v32  ;;  %4936 = vmatprep.mubr.bf16.mxu1 %v12075_v32  ;;  %v10691_v32 = vld [vmem:[%s15187_s3 + $0xe0] ss:$16 sps:$4 sm:$0xff]  }
 0x303   : > { %4844 = vmatpush1.bf16.msra.mxu0 %v10687_v11  ;;  %4917 = vmatpush1.bf16.msra.mxu1 %v10688_v10  ;;  %v10694_v11 = vld [vmem:[%s15187_s3 + $0x10c] ss:$16 sps:$4 sm:$0xff]   ;;  %v10695_v10 = vld [vmem:[%s15187_s3 + $0x100] ss:$16 sps:$4 sm:$0xff]  }
 0x304   : > { %4845 = vmatprep.subr.bf16.mxu0 %v10689_v40  ;;  %4918 = vmatprep.subr.bf16.mxu1 %v10690_v45  ;;  %v10696_v40 = vld [vmem:[%s15187_s3 + $0x108] ss:$16 sps:$4 sm:$0xff]   ;;  %v10697_v45 = vld [vmem:[%s15187_s3 + $0x124] ss:$16 sps:$4 sm:$0xff]  }
 0x307   : > { %4846 = vmatpush1.bf16.msra.mxu0 %v10691_v32  ;;  %4919 = vmatpush1.bf16.msra.mxu1 %v10692_v23  ;;  %v10698_v32 = vld [vmem:[%s15187_s3 + $0x12c] ss:$16 sps:$4 sm:$0xff]   ;;  %v10699_v23 = vld [vmem:[%s15187_s3 + $0x120] ss:$16 sps:$4 sm:$0xff]  }
 0x308   : > { %4847 = vmatprep.subr.bf16.mxu0 %v10693_v7  ;;  %4920 = vmatprep.subr.bf16.mxu1 %v10694_v11  ;;  %v10700_v7 = vld [vmem:[%s15187_s3 + $0x128] ss:$16 sps:$4 sm:$0xff]   ;;  %v10701_v11 = vld [vmem:[%s15187_s3 + $0x144] ss:$16 sps:$4 sm:$0xff]  }
 0x30b   : > { %4848 = vmatpush1.bf16.msra.mxu0 %v10695_v10  ;;  %4921 = vmatpush1.bf16.msra.mxu1 %v10696_v40  ;;  %v10702_v10 = vld [vmem:[%s15187_s3 + $0x14c] ss:$16 sps:$4 sm:$0xff]   ;;  %v10703_v40 = vld [vmem:[%s15187_s3 + $0x140] ss:$16 sps:$4 sm:$0xff]  }
 0x30c   : > { %4849 = vmatprep.subr.bf16.mxu0 %v10697_v45  ;;  %4922 = vmatprep.subr.bf16.mxu1 %v10698_v32  ;;  %v10704_v45 = vld [vmem:[%s15187_s3 + $0x148] ss:$16 sps:$4 sm:$0xff]   ;;  %v10705_v32 = vld [vmem:[%s15187_s3 + $0x164] ss:$16 sps:$4 sm:$0xff]  }
 0x30f   : > { %4850 = vmatpush1.bf16.msra.mxu0 %v10699_v23  ;;  %4923 = vmatpush1.bf16.msra.mxu1 %v10700_v7  ;;  %v10706_v23 = vld [vmem:[%s15187_s3 + $0x16c] ss:$16 sps:$4 sm:$0xff]   ;;  %v10707_v7 = vld [vmem:[%s15187_s3 + $0x160] ss:$16 sps:$4 sm:$0xff]  }
 0x310   : > { %4851 = vmatprep.subr.bf16.mxu0 %v10701_v11  ;;  %4924 = vmatprep.subr.bf16.mxu1 %v10702_v10  ;;  %v10708_v11 = vld [vmem:[%s15187_s3 + $0x168] ss:$16 sps:$4 sm:$0xff]   ;;  %v10709_v10 = vld [vmem:[%s15187_s3 + $0x184] ss:$16 sps:$4 sm:$0xff]  }
 0x313   : > { %4852 = vmatpush1.bf16.msra.mxu0 %v10703_v40  ;;  %4925 = vmatpush1.bf16.msra.mxu1 %v10704_v45  ;;  %v10710_v40 = vld [vmem:[%s15187_s3 + $0x18c] ss:$16 sps:$4 sm:$0xff]   ;;  %v10711_v45 = vld [vmem:[%s15187_s3 + $0x180] ss:$16 sps:$4 sm:$0xff]  }
 0x314   : > { %4853 = vmatprep.subr.bf16.mxu0 %v10705_v32  ;;  %4926 = vmatprep.subr.bf16.mxu1 %v10706_v23  ;;  %v10712_v32 = vld [vmem:[%s15187_s3 + $0x188] ss:$16 sps:$4 sm:$0xff]   ;;  %v10713_v23 = vld [vmem:[%s15187_s3 + $0x1a4] ss:$16 sps:$4 sm:$0xff]  }
 0x317   : > { %4854 = vmatpush1.bf16.msra.mxu0 %v10707_v7  ;;  %4927 = vmatpush1.bf16.msra.mxu1 %v10708_v11  ;;  %v10714_v7 = vld [vmem:[%s15187_s3 + $0x1ac] ss:$16 sps:$4 sm:$0xff]   ;;  %v10715_v11 = vld [vmem:[%s15187_s3 + $0x1a0] ss:$16 sps:$4 sm:$0xff]  }
 0x318   : > { %4855 = vmatprep.subr.bf16.mxu0 %v10709_v10  ;;  %4928 = vmatprep.subr.bf16.mxu1 %v10710_v40  ;;  %v10716_v10 = vld [vmem:[%s15187_s3 + $0x1a8] ss:$16 sps:$4 sm:$0xff]   ;;  %v10717_v40 = vld [vmem:[%s15187_s3 + $0x1c4] ss:$16 sps:$4 sm:$0xff]  }
 0x31b   : > { %4856 = vmatpush1.bf16.msra.mxu0 %v10711_v45  ;;  %4929 = vmatpush1.bf16.msra.mxu1 %v10712_v32  ;;  %v10718_v45 = vld [vmem:[%s15187_s3 + $0x1cc] ss:$16 sps:$4 sm:$0xff]   ;;  %v10719_v32 = vld [vmem:[%s15187_s3 + $0x1c0] ss:$16 sps:$4 sm:$0xff]  }
 0x31c   : > { %4857 = vmatprep.subr.bf16.mxu0 %v10713_v23  ;;  %4930 = vmatprep.subr.bf16.mxu1 %v10714_v7  ;;  %v10720_v23 = vld [vmem:[%s15187_s3 + $0x1c8] ss:$16 sps:$4 sm:$0xff]   ;;  %v10721_v7 = vld [vmem:[%s15187_s3 + $0x1e4] ss:$16 sps:$4 sm:$0xff]  }
 0x31f   : > { %4858 = vmatpush1.bf16.msra.mxu0 %v10715_v11  ;;  %4931 = vmatpush1.bf16.msra.mxu1 %v10716_v10  ;;  %v10722_v11 = vld [vmem:[%s15187_s3 + $0x1ec] ss:$16 sps:$4 sm:$0xff]   ;;  %v10723_v10 = vld [vmem:[%s15187_s3 + $0x1e0] ss:$16 sps:$4 sm:$0xff]  }
 0x320   : > { %4859 = vmatprep.subr.bf16.mxu0 %v10717_v40  ;;  %4932 = vmatprep.subr.bf16.mxu1 %v10718_v45  ;;  %v10724_v40 = vld [vmem:[%s15187_s3 + $0x1e8] ss:$16 sps:$4 sm:$0xff]   ;;  %v10725_v45 = vld [vmem:[%s15187_s3 + $0x404] ss:$16 sps:$4 sm:$0xff]  }
 0x323   : > { %4860 = vmatpush1.bf16.msra.mxu0 %v10719_v32  ;;  %4933 = vmatpush1.bf16.msra.mxu1 %v10720_v23  ;;  %v10726_v32 = vld [vmem:[%s15187_s3 + $0x40c] ss:$16 sps:$4 sm:$0xff]   ;;  %v10727_v23 = vld [vmem:[%s15187_s3 + $0x400] ss:$16 sps:$4 sm:$0xff]  }
 0x324   : > { %4861 = vmatprep.subr.bf16.mxu0 %v10721_v7  ;;  %4934 = vmatprep.subr.bf16.mxu1 %v10722_v11  ;;  %v10728_v7 = vld [vmem:[%s15187_s3 + $0x408] ss:$16 sps:$4 sm:$0xff]   ;;  %v10729_v11 = vld [vmem:[%s15187_s3 + $0x424] ss:$16 sps:$4 sm:$0xff]  }
 0x327   : > { %4862 = vmatpush1.bf16.msra.mxu0 %v10723_v10  ;;  %4935 = vmatpush1.bf16.msra.mxu1 %v10724_v40  ;;  %v10731_v10 = vld [vmem:[%s15187_s3 + $0x420] ss:$16 sps:$4 sm:$0xff]   ;;  %v10732_v40 = vld [vmem:[%s15187_s3 + $0x428] ss:$16 sps:$4 sm:$0xff]  }
 0x328   : > { %4977 = vmatprep.subr.bf16.mxu0 %v10725_v45  ;;  %5050 = vmatprep.subr.bf16.mxu1 %v10726_v32  ;;  %v10733_v45 = vld [vmem:[%s15187_s3 + $0x444] ss:$16 sps:$4 sm:$0xff]   ;;  %v10734_v32 = vld [vmem:[%s15187_s3 + $0x44c] ss:$16 sps:$4 sm:$0xff]  }
 0x32a   : > { %4864 = vmatmul.mubr.bf16.vlgmr.msra.gmra.mrb[112].mxu0 %v12070_v1  ;;  %4937 = vmatmul.mubr.bf16.vlgmr.msra.gmra.mrb[112].mxu1 %v12070_v1  ;;  %v10730_v1 = vld [vmem:[%s15187_s3 + $0x42c] ss:$16 sps:$4 sm:$0xff]  }
 0x32b   : > { %4873 = vmatprep.mubr.bf16.mxu0 %v12123_v16  ;;  %4946 = vmatprep.mubr.bf16.mxu1 %v12123_v16 }
 0x32c   : > { %4978 = vmatpush1.bf16.msra.mxu0 %v10727_v23  ;;  %5051 = vmatpush1.bf16.msra.mxu1 %v10728_v7  ;;  %v10735_v23 = vld [vmem:[%s15187_s3 + $0x440] ss:$16 sps:$4 sm:$0xff]   ;;  %v10736_v7 = vld [vmem:[%s15187_s3 + $0x448] ss:$16 sps:$4 sm:$0xff]  }
 0x32d   : > { %4979 = vmatprep.subr.bf16.mxu0 %v10729_v11  ;;  %5052 = vmatprep.subr.bf16.mxu1 %v10730_v1  ;;  %v10737_v11 = vld [vmem:[%s15187_s3 + $0x464] ss:$16 sps:$4 sm:$0xff]   ;;  %v10738_v1 = vld [vmem:[%s15187_s3 + $0x46c] ss:$16 sps:$4 sm:$0xff]  }
 0x330   : > { %4980 = vmatpush1.bf16.msra.mxu0 %v10731_v10  ;;  %5053 = vmatpush1.bf16.msra.mxu1 %v10732_v40  ;;  %v10739_v10 = vld [vmem:[%s15187_s3 + $0x460] ss:$16 sps:$4 sm:$0xff]   ;;  %v10740_v40 = vld [vmem:[%s15187_s3 + $0x468] ss:$16 sps:$4 sm:$0xff]  }
 0x331   : > { %4981 = vmatprep.subr.bf16.mxu0 %v10733_v45  ;;  %5054 = vmatprep.subr.bf16.mxu1 %v10734_v32  ;;  %v10741_v45 = vld [vmem:[%s15187_s3 + $0x484] ss:$16 sps:$4 sm:$0xff]   ;;  %v10742_v32 = vld [vmem:[%s15187_s3 + $0x48c] ss:$16 sps:$4 sm:$0xff]  }
 0x332   : > { %4874 = vmatmul.mubr.bf16.gmra.mrb[116].mxu0 %v12118_v12  ;;  %4947 = vmatmul.mubr.bf16.gmra.mrb[116].mxu1 %v12118_v12 }
 0x333   : > { %4883 = vmatprep.mubr.bf16.mxu0 %v12171_v20  ;;  %4956 = vmatprep.mubr.bf16.mxu1 %v12171_v20 }
 0x334   : > { %4982 = vmatpush1.bf16.msra.mxu0 %v10735_v23  ;;  %5055 = vmatpush1.bf16.msra.mxu1 %v10736_v7  ;;  %v10743_v23 = vld [vmem:[%s15187_s3 + $0x480] ss:$16 sps:$4 sm:$0xff]   ;;  %v10744_v7 = vld [vmem:[%s15187_s3 + $0x488] ss:$16 sps:$4 sm:$0xff]  }
 0x335   : > { %4983 = vmatprep.subr.bf16.mxu0 %v10737_v11  ;;  %5056 = vmatprep.subr.bf16.mxu1 %v10738_v1  ;;  %v10745_v11 = vld [vmem:[%s15187_s3 + $0x4a4] ss:$16 sps:$4 sm:$0xff]   ;;  %v10746_v1 = vld [vmem:[%s15187_s3 + $0x4ac] ss:$16 sps:$4 sm:$0xff]  }
 0x338   : > { %4984 = vmatpush1.bf16.msra.mxu0 %v10739_v10  ;;  %5057 = vmatpush1.bf16.msra.mxu1 %v10740_v40  ;;  %v10747_v10 = vld [vmem:[%s15187_s3 + $0x4a0] ss:$16 sps:$4 sm:$0xff]   ;;  %v10748_v40 = vld [vmem:[%s15187_s3 + $0x4a8] ss:$16 sps:$4 sm:$0xff]  }
 0x339   : > { %4985 = vmatprep.subr.bf16.mxu0 %v10741_v45  ;;  %5058 = vmatprep.subr.bf16.mxu1 %v10742_v32  ;;  %v10749_v45 = vld [vmem:[%s15187_s3 + $0x4c4] ss:$16 sps:$4 sm:$0xff]   ;;  %v10750_v32 = vld [vmem:[%s15187_s3 + $0x4cc] ss:$16 sps:$4 sm:$0xff]  }
 0x33a   : > { %4884 = vmatmul.mubr.bf16.gmra.mrb[120].mxu0 %v12166_v55  ;;  %4957 = vmatmul.mubr.bf16.gmra.mrb[120].mxu1 %v12166_v55 }
 0x33b   : > { %4893 = vmatprep.mubr.bf16.mxu0 %v12219_v8  ;;  %4966 = vmatprep.mubr.bf16.mxu1 %v12219_v8 }
 0x33c   : > { %4986 = vmatpush1.bf16.msra.mxu0 %v10743_v23  ;;  %5059 = vmatpush1.bf16.msra.mxu1 %v10744_v7  ;;  %v10751_v23 = vld [vmem:[%s15187_s3 + $0x4c0] ss:$16 sps:$4 sm:$0xff]   ;;  %v10752_v7 = vld [vmem:[%s15187_s3 + $0x4c8] ss:$16 sps:$4 sm:$0xff]  }
 0x33d   : > { %4987 = vmatprep.subr.bf16.mxu0 %v10745_v11  ;;  %5060 = vmatprep.subr.bf16.mxu1 %v10746_v1  ;;  %v10753_v11 = vld [vmem:[%s15187_s3 + $0x4e4] ss:$16 sps:$4 sm:$0xff]   ;;  %v10754_v1 = vld [vmem:[%s15187_s3 + $0x4ec] ss:$16 sps:$4 sm:$0xff]  }
 0x340   : > { %4988 = vmatpush1.bf16.msra.mxu0 %v10747_v10  ;;  %5061 = vmatpush1.bf16.msra.mxu1 %v10748_v40  ;;  %v10756_v10 = vld [vmem:[%s15187_s3 + $0x4e8] ss:$16 sps:$4 sm:$0xff]   ;;  %v10757_v40 = vld [vmem:[%s15187_s3 + $0x504] ss:$16 sps:$4 sm:$0xff]  }
 0x341   : > { %4989 = vmatprep.subr.bf16.mxu0 %v10749_v45  ;;  %5062 = vmatprep.subr.bf16.mxu1 %v10750_v32  ;;  %v10758_v45 = vld [vmem:[%s15187_s3 + $0x50c] ss:$16 sps:$4 sm:$0xff]   ;;  %v10759_v32 = vld [vmem:[%s15187_s3 + $0x500] ss:$16 sps:$4 sm:$0xff]  }
 0x342   : > { %4894 = vmatmul.mubr.bf16.gmra.mrb[124].mxu0 %v12214_v35  ;;  %4967 = vmatmul.mubr.bf16.gmra.mrb[124].mxu1 %v12214_v35 }
 0x343   : > { %5009 = vmatprep.mubr.bf16.mxu0 %v12123_v16  ;;  %5082 = vmatprep.mubr.bf16.mxu1 %v12123_v16  ;;  %v10755_v16 = vld [vmem:[%s15187_s3 + $0x4e0] ss:$16 sps:$4 sm:$0xff]  }
 0x344   : > { %4990 = vmatpush1.bf16.msra.mxu0 %v10751_v23  ;;  %5063 = vmatpush1.bf16.msra.mxu1 %v10752_v7  ;;  %v10760_v23 = vld [vmem:[%s15187_s3 + $0x508] ss:$16 sps:$4 sm:$0xff]   ;;  %v10761_v7 = vld [vmem:[%s15187_s3 + $0x524] ss:$16 sps:$4 sm:$0xff]  }
 0x345   : > { %4991 = vmatprep.subr.bf16.mxu0 %v10753_v11  ;;  %5064 = vmatprep.subr.bf16.mxu1 %v10754_v1  ;;  %v10762_v11 = vld [vmem:[%s15187_s3 + $0x52c] ss:$16 sps:$4 sm:$0xff]   ;;  %v10763_v1 = vld [vmem:[%s15187_s3 + $0x520] ss:$16 sps:$4 sm:$0xff]  }
 0x348   : > { %4992 = vmatpush1.bf16.msra.mxu0 %v10755_v16  ;;  %5065 = vmatpush1.bf16.msra.mxu1 %v10756_v10  ;;  %v10764_v16 = vld [vmem:[%s15187_s3 + $0x528] ss:$16 sps:$4 sm:$0xff]   ;;  %v10765_v10 = vld [vmem:[%s15187_s3 + $0x544] ss:$16 sps:$4 sm:$0xff]  }
 0x349   : > { %4993 = vmatprep.subr.bf16.mxu0 %v10757_v40  ;;  %5066 = vmatprep.subr.bf16.mxu1 %v10758_v45  ;;  %v10766_v40 = vld [vmem:[%s15187_s3 + $0x54c] ss:$16 sps:$4 sm:$0xff]   ;;  %v10767_v45 = vld [vmem:[%s15187_s3 + $0x540] ss:$16 sps:$4 sm:$0xff]  }
 0x34c   : > { %4994 = vmatpush1.bf16.msra.mxu0 %v10759_v32  ;;  %5067 = vmatpush1.bf16.msra.mxu1 %v10760_v23  ;;  %v10768_v32 = vld [vmem:[%s15187_s3 + $0x548] ss:$16 sps:$4 sm:$0xff]   ;;  %v10769_v23 = vld [vmem:[%s15187_s3 + $0x564] ss:$16 sps:$4 sm:$0xff]  }
 0x34d   : > { %4995 = vmatprep.subr.bf16.mxu0 %v10761_v7  ;;  %5068 = vmatprep.subr.bf16.mxu1 %v10762_v11  ;;  %v10770_v7 = vld [vmem:[%s15187_s3 + $0x56c] ss:$16 sps:$4 sm:$0xff]   ;;  %v10771_v11 = vld [vmem:[%s15187_s3 + $0x560] ss:$16 sps:$4 sm:$0xff]  }
 0x350   : > { %4996 = vmatpush1.bf16.msra.mxu0 %v10763_v1  ;;  %5069 = vmatpush1.bf16.msra.mxu1 %v10764_v16  ;;  %v10772_v1 = vld [vmem:[%s15187_s3 + $0x568] ss:$16 sps:$4 sm:$0xff]   ;;  %v10773_v16 = vld [vmem:[%s15187_s3 + $0x584] ss:$16 sps:$4 sm:$0xff]  }
 0x351   : > { %4997 = vmatprep.subr.bf16.mxu0 %v10765_v10  ;;  %5070 = vmatprep.subr.bf16.mxu1 %v10766_v40  ;;  %v10774_v10 = vld [vmem:[%s15187_s3 + $0x58c] ss:$16 sps:$4 sm:$0xff]   ;;  %v10775_v40 = vld [vmem:[%s15187_s3 + $0x580] ss:$16 sps:$4 sm:$0xff]  }
 0x354   : > { %4998 = vmatpush1.bf16.msra.mxu0 %v10767_v45  ;;  %5071 = vmatpush1.bf16.msra.mxu1 %v10768_v32  ;;  %v10776_v45 = vld [vmem:[%s15187_s3 + $0x588] ss:$16 sps:$4 sm:$0xff]   ;;  %v10777_v32 = vld [vmem:[%s15187_s3 + $0x5a4] ss:$16 sps:$4 sm:$0xff]  }
 0x355   : > { %4999 = vmatprep.subr.bf16.mxu0 %v10769_v23  ;;  %5072 = vmatprep.subr.bf16.mxu1 %v10770_v7  ;;  %v10778_v23 = vld [vmem:[%s15187_s3 + $0x5ac] ss:$16 sps:$4 sm:$0xff]   ;;  %v10779_v7 = vld [vmem:[%s15187_s3 + $0x5a0] ss:$16 sps:$4 sm:$0xff]  }
 0x358   : > { %5000 = vmatpush1.bf16.msra.mxu0 %v10771_v11  ;;  %5073 = vmatpush1.bf16.msra.mxu1 %v10772_v1  ;;  %v10780_v11 = vld [vmem:[%s15187_s3 + $0x5a8] ss:$16 sps:$4 sm:$0xff]   ;;  %v10781_v1 = vld [vmem:[%s15187_s3 + $0x5c4] ss:$16 sps:$4 sm:$0xff]  }
 0x359   : > { %5001 = vmatprep.subr.bf16.mxu0 %v10773_v16  ;;  %5074 = vmatprep.subr.bf16.mxu1 %v10774_v10  ;;  %v10782_v16 = vld [vmem:[%s15187_s3 + $0x5cc] ss:$16 sps:$4 sm:$0xff]   ;;  %v10783_v10 = vld [vmem:[%s15187_s3 + $0x5c0] ss:$16 sps:$4 sm:$0xff]  }
 0x35c   : > { %5002 = vmatpush1.bf16.msra.mxu0 %v10775_v40  ;;  %5075 = vmatpush1.bf16.msra.mxu1 %v10776_v45  ;;  %v10784_v40 = vld [vmem:[%s15187_s3 + $0x5c8] ss:$16 sps:$4 sm:$0xff]   ;;  %v10785_v45 = vld [vmem:[%s15187_s3 + $0x5e4] ss:$16 sps:$4 sm:$0xff]  }
 0x35d   : > { %5003 = vmatprep.subr.bf16.mxu0 %v10777_v32  ;;  %5076 = vmatprep.subr.bf16.mxu1 %v10778_v23  ;;  %v10786_v32 = vld [vmem:[%s15187_s3 + $0x5ec] ss:$16 sps:$4 sm:$0xff]   ;;  %v10787_v23 = vld [vmem:[%s15187_s3 + $0x5e0] ss:$16 sps:$4 sm:$0xff]  }
 0x360   : > { %5004 = vmatpush1.bf16.msra.mxu0 %v10779_v7  ;;  %5077 = vmatpush1.bf16.msra.mxu1 %v10780_v11  ;;  %v10788_v7 = vld [vmem:[%s15187_s3 + $0x5e8] ss:$16 sps:$4 sm:$0xff]   ;;  %v10789_v11 = vld [vmem:[%s15187_s3 + $0x604] ss:$16 sps:$4 sm:$0xff]  }
 0x361   : > { %5005 = vmatprep.subr.bf16.mxu0 %v10781_v1  ;;  %5078 = vmatprep.subr.bf16.mxu1 %v10782_v16  ;;  %v10790_v1 = vld [vmem:[%s15187_s3 + $0x60c] ss:$16 sps:$4 sm:$0xff]   ;;  %v10791_v16 = vld [vmem:[%s15187_s3 + $0x600] ss:$16 sps:$4 sm:$0xff]  }
 0x364   : > { %5006 = vmatpush1.bf16.msra.mxu0 %v10783_v10  ;;  %5079 = vmatpush1.bf16.msra.mxu1 %v10784_v40  ;;  %v10792_v10 = vld [vmem:[%s15187_s3 + $0x608] ss:$16 sps:$4 sm:$0xff]   ;;  %v10793_v40 = vld [vmem:[%s15187_s3 + $0x624] ss:$16 sps:$4 sm:$0xff]  }
 0x365   : > { %5007 = vmatprep.subr.bf16.mxu0 %v10785_v45  ;;  %5080 = vmatprep.subr.bf16.mxu1 %v10786_v32  ;;  %v10795_v45 = vld [vmem:[%s15187_s3 + $0x620] ss:$16 sps:$4 sm:$0xff]   ;;  %v10796_v32 = vld [vmem:[%s15187_s3 + $0x628] ss:$16 sps:$4 sm:$0xff]  }
 0x368   : > { %5008 = vmatpush1.bf16.msra.mxu0 %v10787_v23  ;;  %5081 = vmatpush1.bf16.msra.mxu1 %v10788_v7  ;;  %v10797_v23 = vld [vmem:[%s15187_s3 + $0x644] ss:$16 sps:$4 sm:$0xff]   ;;  %v10798_v7 = vld [vmem:[%s15187_s3 + $0x64c] ss:$16 sps:$4 sm:$0xff]  }
 0x369   : > { %5155 = vmatprep.subr.bf16.mxu0 %v10789_v11  ;;  %5228 = vmatprep.subr.bf16.mxu1 %v10790_v1  ;;  %v10799_v11 = vld [vmem:[%s15187_s3 + $0x640] ss:$16 sps:$4 sm:$0xff]   ;;  %v10800_v1 = vld [vmem:[%s15187_s3 + $0x648] ss:$16 sps:$4 sm:$0xff]  }
 0x36b   : > { %5010 = vmatmul.mubr.bf16.vlgmr.msra.gmra.mrb[112].mxu0 %v12118_v12  ;;  %5083 = vmatmul.mubr.bf16.vlgmr.msra.gmra.mrb[112].mxu1 %v12118_v12  ;;  %v10794_v12 = vld [vmem:[%s15187_s3 + $0x62c] ss:$16 sps:$4 sm:$0xff]  }
 0x36c   : > { %5019 = vmatprep.mubr.bf16.mxu0 %v12171_v20  ;;  %5092 = vmatprep.mubr.bf16.mxu1 %v12171_v20 }
 0x36d   : > { %5156 = vmatpush1.bf16.msra.mxu0 %v10791_v16  ;;  %5229 = vmatpush1.bf16.msra.mxu1 %v10792_v10  ;;  %v10801_v16 = vld [vmem:[%s15187_s3 + $0x664] ss:$16 sps:$4 sm:$0xff]   ;;  %v10802_v10 = vld [vmem:[%s15187_s3 + $0x66c] ss:$16 sps:$4 sm:$0xff]  }
 0x36e   : > { %5157 = vmatprep.subr.bf16.mxu0 %v10793_v40  ;;  %5230 = vmatprep.subr.bf16.mxu1 %v10794_v12  ;;  %v10803_v40 = vld [vmem:[%s15187_s3 + $0x660] ss:$16 sps:$4 sm:$0xff]   ;;  %v10804_v12 = vld [vmem:[%s15187_s3 + $0x668] ss:$16 sps:$4 sm:$0xff]  }
 0x371   : > { %5158 = vmatpush1.bf16.msra.mxu0 %v10795_v45  ;;  %5231 = vmatpush1.bf16.msra.mxu1 %v10796_v32  ;;  %v10805_v45 = vld [vmem:[%s15187_s3 + $0x684] ss:$16 sps:$4 sm:$0xff]   ;;  %v10806_v32 = vld [vmem:[%s15187_s3 + $0x68c] ss:$16 sps:$4 sm:$0xff]  }
 0x372   : > { %5159 = vmatprep.subr.bf16.mxu0 %v10797_v23  ;;  %5232 = vmatprep.subr.bf16.mxu1 %v10798_v7 }
 0x373   : > { %5020 = vmatmul.mubr.bf16.gmra.mrb[116].mxu0 %v12166_v55  ;;  %5093 = vmatmul.mubr.bf16.gmra.mrb[116].mxu1 %v12166_v55 }
 0x374   : > { %5029 = vmatprep.mubr.bf16.mxu0 %v12219_v8  ;;  %5102 = vmatprep.mubr.bf16.mxu1 %v12219_v8 }
 0x375   : > { %5160 = vmatpush1.bf16.msra.mxu0 %v10799_v11  ;;  %5233 = vmatpush1.bf16.msra.mxu1 %v10800_v1  ;;  %v10809_v11 = vld [vmem:[%s15187_s3 + $0x6a4] ss:$16 sps:$4 sm:$0xff]  }
 0x376   : > { %5161 = vmatprep.subr.bf16.mxu0 %v10801_v16  ;;  %5234 = vmatprep.subr.bf16.mxu1 %v10802_v10  ;;  %v10807_v10 = vld [vmem:[%s15187_s3 + $0x680] ss:$16 sps:$4 sm:$0xff]  }
 0x379   : > { %5162 = vmatpush1.bf16.msra.mxu0 %v10803_v40  ;;  %5235 = vmatpush1.bf16.msra.mxu1 %v10804_v12  ;;  %v10808_v40 = vld [vmem:[%s15187_s3 + $0x688] ss:$16 sps:$4 sm:$0xff]  }
 0x37a   : > { %5163 = vmatprep.subr.bf16.mxu0 %v10805_v45  ;;  %5236 = vmatprep.subr.bf16.mxu1 %v10806_v32 }
 0x37b   : > { %5030 = vmatmul.mubr.bf16.gmra.mrb[120].mxu0 %v12214_v35  ;;  %5103 = vmatmul.mubr.bf16.gmra.mrb[120].mxu1 %v12214_v35  ;;  %v13864_v23 = vpop.f32.mrb[96].mxu0  ;;  %v13866_v7 = vpop.f32.mrb[96].mxu1 }
 0x37c   : > { %15370 = vst [vmem:[#allocation4_spill] sm:$0xff] %v13866_v7  ;;  %5039 = vmatprep.mubr.bf16.mxu0 %v12269_v29  ;;  %5112 = vmatprep.mubr.bf16.mxu1 %v12269_v29  ;;  %v13872_v1 = vpop.f32.mrb[97].mxu0  ;;  %v13874_v16 = vpop.f32.mrb[97].mxu1 }
 0x37d   : > { %15371 = vst [vmem:[#allocation3_spill] sm:$0xff] %v13872_v1  ;;  %15372 = vst [vmem:[#allocation27_spill] sm:$0xff] %v13874_v16  ;;  %5164 = vmatpush1.bf16.msra.mxu0 %v10807_v10  ;;  %5237 = vmatpush1.bf16.msra.mxu1 %v10808_v40  ;;  %v13884_v45 = vpop.f32.mrb[98].mxu0  ;;  %v13886_v32 = vpop.f32.mrb[98].mxu1  ;;  %v10810_v10 = vld [vmem:[%s15187_s3 + $0x6ac] ss:$16 sps:$4 sm:$0xff]  }
 0x37e   : > { %15373 = vst [vmem:[#allocation28_spill] sm:$0xff] %v13886_v32  ;;  %5165 = vmatprep.subr.bf16.mxu0 %v10809_v11  ;;  %5238 = vmatprep.subr.bf16.mxu1 %v10810_v10  ;;  %v13896_v7 = vpop.f32.mrb[99].mxu0  ;;  %v13898_v12 = vpop.f32.mrb[99].mxu1  ;;  %v10811_v1 = vld [vmem:[%s15187_s3 + $0x6a0] ss:$16 sps:$4 sm:$0xff]  }
 0x37f   : > { %15374 = vst [vmem:[#allocation29_spill] sm:$0xff] %v13896_v7  ;;  %15375 = vst [vmem:[#allocation30_spill] sm:$0xff] %v13898_v12  ;;  %v10812_v11 = vld [vmem:[%s15187_s3 + $0x6a8] ss:$16 sps:$4 sm:$0xff]   ;;  %v10813_v10 = vld [vmem:[%s15187_s3 + $0x6c4] ss:$16 sps:$4 sm:$0xff]  }
 0x380   : > { %v10814_v40 = vld [vmem:[%s15187_s3 + $0x6cc] ss:$16 sps:$4 sm:$0xff]   ;;  %v10816_v7 = vld [vmem:[%s15187_s3 + $0x6c8] ss:$16 sps:$4 sm:$0xff]  }
 0x381   : > { %5166 = vmatpush1.bf16.msra.mxu0 %v10811_v1  ;;  %5239 = vmatpush1.bf16.msra.mxu1 %v10812_v11 }
 0x382   : > { %5167 = vmatprep.subr.bf16.mxu0 %v10813_v10  ;;  %5240 = vmatprep.subr.bf16.mxu1 %v10814_v40  ;;  %v10815_v40 = vld [vmem:[%s15187_s3 + $0x6c0] ss:$16 sps:$4 sm:$0xff]  }
 0x383   : > { %5040 = vmatmul.mubr.bf16.gmra.mrb[124].mxu0 %v12264_v6  ;;  %5113 = vmatmul.mubr.bf16.gmra.mrb[124].mxu1 %v12264_v6  ;;  %v13916_v1 = vpop.f32.mrb[100].mxu0  ;;  %v13918_v16 = vpop.f32.mrb[100].mxu1 }
 0x384   : > { %15376 = vst [vmem:[#allocation31_spill] sm:$0xff] %v13916_v1  ;;  %15377 = vst [vmem:[#allocation32_spill] sm:$0xff] %v13918_v16  ;;  %5187 = vmatprep.mubr.bf16.mxu0 %v15344_v38  ;;  %5260 = vmatprep.mubr.bf16.mxu1 %v15344_v38  ;;  %v13924_v10 = vpop.f32.mrb[101].mxu0  ;;  %v13926_v12 = vpop.f32.mrb[101].mxu1  ;;  %v10817_v16 = vld [vmem:[%s15187_s3 + $0x6e4] ss:$16 sps:$4 sm:$0xff]  }
 0x385   : > { %15378 = vst [vmem:[#allocation33_spill] sm:$0xff] %v13924_v10  ;;  %15379 = vst [vmem:[#allocation34_spill] sm:$0xff] %v13926_v12  ;;  %5168 = vmatpush1.bf16.msra.mxu0 %v10815_v40  ;;  %5241 = vmatpush1.bf16.msra.mxu1 %v10816_v7  ;;  %v13936_v32 = vpop.f32.mrb[102].mxu0  ;;  %v13938_v11 = vpop.f32.mrb[102].mxu1  ;;  %v10818_v40 = vld [vmem:[%s15187_s3 + $0x6ec] ss:$16 sps:$4 sm:$0xff]  }
 0x386   : > { %15380 = vst [vmem:[#allocation35_spill] sm:$0xff] %v13936_v32  ;;  %15381 = vst [vmem:[#allocation36_spill] sm:$0xff] %v13938_v11  ;;  %5169 = vmatprep.subr.bf16.mxu0 %v10817_v16  ;;  %5242 = vmatprep.subr.bf16.mxu1 %v10818_v40  ;;  %v13948_v1 = vpop.f32.mrb[103].mxu0  ;;  %v13950_v38 = vpop.f32.mrb[103].mxu1  ;;  %v10819_v10 = vld [vmem:[%s15187_s3 + $0x6e0] ss:$16 sps:$4 sm:$0xff]  }
 0x387   : > { %15382 = vst [vmem:[#allocation37_spill] sm:$0xff] %v13948_v1  ;;  %15383 = vst [vmem:[#allocation38_spill] sm:$0xff] %v13950_v38  ;;  %v10820_v16 = vld [vmem:[%s15187_s3 + $0x6e8] ss:$16 sps:$4 sm:$0xff]   ;;  %v10821_v40 = vld [vmem:[%s15187_s3 + $0x704] ss:$16 sps:$4 sm:$0xff]  }
 0x388   : > { %v10822_v7 = vld [vmem:[%s15187_s3 + $0x70c] ss:$16 sps:$4 sm:$0xff]  }
 0x389   : > { %5170 = vmatpush1.bf16.msra.mxu0 %v10819_v10  ;;  %5243 = vmatpush1.bf16.msra.mxu1 %v10820_v16 }
 0x38a   : > { %5171 = vmatprep.subr.bf16.mxu0 %v10821_v40  ;;  %5244 = vmatprep.subr.bf16.mxu1 %v10822_v7  ;;  %v10823_v40 = vld [vmem:[%s15187_s3 + $0x700] ss:$16 sps:$4 sm:$0xff]   ;;  %v10824_v7 = vld [vmem:[%s15187_s3 + $0x708] ss:$16 sps:$4 sm:$0xff]  }
 0x38b   : > { %v13966_v12 = vpop.f32.mrb[104].mxu0  ;;  %v13968_v38 = vpop.f32.mrb[104].mxu1 }
 0x38c   : > { %15384 = vst [vmem:[#allocation39_spill] sm:$0xff] %v13966_v12  ;;  %15385 = vst [vmem:[#allocation40_spill] sm:$0xff] %v13968_v38  ;;  %v13972_v1 = vpop.f32.mrb[105].mxu0  ;;  %v13974_v16 = vpop.f32.mrb[105].mxu1  ;;  %v10825_v38 = vld [vmem:[%s15187_s3 + $0x724] ss:$16 sps:$4 sm:$0xff]  }
 0x38d   : > { %15386 = vst [vmem:[#allocation41_spill] sm:$0xff] %v13972_v1  ;;  %15387 = vst [vmem:[#allocation42_spill] sm:$0xff] %v13974_v16  ;;  %5172 = vmatpush1.bf16.msra.mxu0 %v10823_v40  ;;  %5245 = vmatpush1.bf16.msra.mxu1 %v10824_v7  ;;  %v13984_v32 = vpop.f32.mrb[106].mxu0  ;;  %v13986_v10 = vpop.f32.mrb[106].mxu1  ;;  %v10826_v40 = vld [vmem:[%s15187_s3 + $0x72c] ss:$16 sps:$4 sm:$0xff]  }
 0x38e   : > { %15388 = vst [vmem:[#allocation43_spill] sm:$0xff] %v13984_v32  ;;  %15389 = vst [vmem:[#allocation44_spill] sm:$0xff] %v13986_v10  ;;  %5173 = vmatprep.subr.bf16.mxu0 %v10825_v38  ;;  %5246 = vmatprep.subr.bf16.mxu1 %v10826_v40  ;;  %v13996_v12 = vpop.f32.mrb[107].mxu0  ;;  %v13998_v11 = vpop.f32.mrb[107].mxu1  ;;  %v10827_v1 = vld [vmem:[%s15187_s3 + $0x720] ss:$16 sps:$4 sm:$0xff]  }
 0x38f   : > { %15390 = vst [vmem:[#allocation45_spill] sm:$0xff] %v13996_v12  ;;  %15391 = vst [vmem:[#allocation46_spill] sm:$0xff] %v13998_v11  ;;  %v10828_v38 = vld [vmem:[%s15187_s3 + $0x728] ss:$16 sps:$4 sm:$0xff]   ;;  %v10829_v40 = vld [vmem:[%s15187_s3 + $0x744] ss:$16 sps:$4 sm:$0xff]  }
 0x390   : > { %v10830_v7 = vld [vmem:[%s15187_s3 + $0x74c] ss:$16 sps:$4 sm:$0xff]  }
 0x391   : > { %5174 = vmatpush1.bf16.msra.mxu0 %v10827_v1  ;;  %5247 = vmatpush1.bf16.msra.mxu1 %v10828_v38 }
 0x392   : > { %5175 = vmatprep.subr.bf16.mxu0 %v10829_v40  ;;  %5248 = vmatprep.subr.bf16.mxu1 %v10830_v7  ;;  %v10831_v40 = vld [vmem:[%s15187_s3 + $0x740] ss:$16 sps:$4 sm:$0xff]   ;;  %v10832_v7 = vld [vmem:[%s15187_s3 + $0x748] ss:$16 sps:$4 sm:$0xff]  }
 0x393   : > { %v14014_v16 = vpop.f32.mrb[108].mxu0  ;;  %v14016_v11 = vpop.f32.mrb[108].mxu1 }
 0x394   : > { %15392 = vst [vmem:[#allocation47_spill] sm:$0xff] %v14014_v16  ;;  %15393 = vst [vmem:[#allocation48_spill] sm:$0xff] %v14016_v11  ;;  %v14020_v12 = vpop.f32.mrb[109].mxu0  ;;  %v14022_v38 = vpop.f32.mrb[109].mxu1  ;;  %v10833_v11 = vld [vmem:[%s15187_s3 + $0x764] ss:$16 sps:$4 sm:$0xff]  }
 0x395   : > { %15394 = vst [vmem:[#allocation49_spill] sm:$0xff] %v14020_v12  ;;  %15395 = vst [vmem:[#allocation50_spill] sm:$0xff] %v14022_v38  ;;  %5176 = vmatpush1.bf16.msra.mxu0 %v10831_v40  ;;  %5249 = vmatpush1.bf16.msra.mxu1 %v10832_v7  ;;  %v14032_v32 = vpop.f32.mrb[110].mxu0  ;;  %v14034_v1 = vpop.f32.mrb[110].mxu1  ;;  %v10834_v40 = vld [vmem:[%s15187_s3 + $0x76c] ss:$16 sps:$4 sm:$0xff]  }
 0x396   : > { %5177 = vmatprep.subr.bf16.mxu0 %v10833_v11  ;;  %5250 = vmatprep.subr.bf16.mxu1 %v10834_v40  ;;  %v14044_v16 = vpop.f32.mrb[111].mxu0  ;;  %v14046_v10 = vpop.f32.mrb[111].mxu1  ;;  %v10835_v12 = vld [vmem:[%s15187_s3 + $0x760] ss:$16 sps:$4 sm:$0xff]   ;;  %v10836_v11 = vld [vmem:[%s15187_s3 + $0x768] ss:$16 sps:$4 sm:$0xff]  }
 0x397   : > { %v10837_v40 = vld [vmem:[%s15187_s3 + $0x784] ss:$16 sps:$4 sm:$0xff]   ;;  %v10838_v7 = vld [vmem:[%s15187_s3 + $0x78c] ss:$16 sps:$4 sm:$0xff]   ;;  %v10839_v38 = vld [vmem:[%s15187_s3 + $0x780] ss:$16 sps:$4 sm:$0xff]  }
 0x399   : > { %5178 = vmatpush1.bf16.msra.mxu0 %v10835_v12  ;;  %5251 = vmatpush1.bf16.msra.mxu1 %v10836_v11  ;;  %v10840_v12 = vld [vmem:[%s15187_s3 + $0x788] ss:$16 sps:$4 sm:$0xff]   ;;  %v10841_v11 = vld [vmem:[%s15187_s3 + $0x7a4] ss:$16 sps:$4 sm:$0xff]  }
 0x39a   : > { %5179 = vmatprep.subr.bf16.mxu0 %v10837_v40  ;;  %5252 = vmatprep.subr.bf16.mxu1 %v10838_v7  ;;  %v10842_v40 = vld [vmem:[%s15187_s3 + $0x7ac] ss:$16 sps:$4 sm:$0xff]   ;;  %v10843_v7 = vld [vmem:[%s15187_s3 + $0x7a0] ss:$16 sps:$4 sm:$0xff]  }
 0x39d   : > { %5180 = vmatpush1.bf16.msra.mxu0 %v10839_v38  ;;  %5253 = vmatpush1.bf16.msra.mxu1 %v10840_v12  ;;  %v10844_v38 = vld [vmem:[%s15187_s3 + $0x7a8] ss:$16 sps:$4 sm:$0xff]   ;;  %v10845_v12 = vld [vmem:[%s15187_s3 + $0x7c4] ss:$16 sps:$4 sm:$0xff]  }
 0x39e   : > { %5181 = vmatprep.subr.bf16.mxu0 %v10841_v11  ;;  %5254 = vmatprep.subr.bf16.mxu1 %v10842_v40  ;;  %v10846_v11 = vld [vmem:[%s15187_s3 + $0x7cc] ss:$16 sps:$4 sm:$0xff]   ;;  %v10847_v40 = vld [vmem:[%s15187_s3 + $0x7c0] ss:$16 sps:$4 sm:$0xff]  }
 0x3a1   : > { %5182 = vmatpush1.bf16.msra.mxu0 %v10843_v7  ;;  %5255 = vmatpush1.bf16.msra.mxu1 %v10844_v38  ;;  %v10848_v7 = vld [vmem:[%s15187_s3 + $0x7c8] ss:$16 sps:$4 sm:$0xff]   ;;  %v10849_v38 = vld [vmem:[%s15187_s3 + $0x7e4] ss:$16 sps:$4 sm:$0xff]  }
 0x3a2   : > { %5183 = vmatprep.subr.bf16.mxu0 %v10845_v12  ;;  %5256 = vmatprep.subr.bf16.mxu1 %v10846_v11  ;;  %v10850_v12 = vld [vmem:[%s15187_s3 + $0x7ec] ss:$16 sps:$4 sm:$0xff]   ;;  %v10851_v11 = vld [vmem:[%s15187_s3 + $0x7e0] ss:$16 sps:$4 sm:$0xff]  }
 0x3a5   : > { %5184 = vmatpush1.bf16.msra.mxu0 %v10847_v40  ;;  %5257 = vmatpush1.bf16.msra.mxu1 %v10848_v7  ;;  %v10852_v40 = vld [vmem:[%s15187_s3 + $0x7e8] ss:$16 sps:$4 sm:$0xff]   ;;  %v10853_v7 = vld [vmem:[%s15187_s3 + $0x804] ss:$16 sps:$4 sm:$0xff]  }
 0x3a6   : > { %5185 = vmatprep.subr.bf16.mxu0 %v10849_v38  ;;  %5258 = vmatprep.subr.bf16.mxu1 %v10850_v12  ;;  %v10854_v38 = vld [vmem:[%s15187_s3 + $0x80c] ss:$16 sps:$4 sm:$0xff]   ;;  %v10855_v12 = vld [vmem:[%s15187_s3 + $0x800] ss:$16 sps:$4 sm:$0xff]  }
 0x3a9   : > { %5186 = vmatpush1.bf16.msra.mxu0 %v10851_v11  ;;  %5259 = vmatpush1.bf16.msra.mxu1 %v10852_v40  ;;  %v10856_v11 = vld [vmem:[%s15187_s3 + $0x808] ss:$16 sps:$4 sm:$0xff]   ;;  %v10857_v40 = vld [vmem:[%s15187_s3 + $0x824] ss:$16 sps:$4 sm:$0xff]  }
 0x3aa   : > { %5333 = vmatprep.subr.bf16.mxu0 %v10853_v7  ;;  %5406 = vmatprep.subr.bf16.mxu1 %v10854_v38  ;;  %v10191_v7 = vld [vmem:[%s15189_s5 + $0x304] ss:$16 sps:$4 sm:$0xff]   ;;  %v10194_v38 = vld [vmem:[%s15189_s5 + $0x30c] ss:$16 sps:$4 sm:$0xff]  }
 0x3ac   : > { %5188 = vmatmul.mubr.bf16.vlgmr.msra.gmra.mrb[112].mxu0 %v15345_v61  ;;  %5261 = vmatmul.mubr.bf16.vlgmr.msra.gmra.mrb[112].mxu1 %v15345_v61  ;;  %v10858_v61 = vld [vmem:[%s15187_s3 + $0x82c] ss:$16 sps:$4 sm:$0xff]  }
 0x3ad   : > { %5197 = vmatprep.mubr.bf16.mxu0 %v15346_v14  ;;  %5270 = vmatprep.mubr.bf16.mxu1 %v15346_v14  ;;  %v15397_v14 = vld [vmem:[#allocation19_spill] sm:$0xff] }
 0x3ae   : > { %5334 = vmatpush1.bf16.msra.mxu0 %v10855_v12  ;;  %5407 = vmatpush1.bf16.msra.mxu1 %v10856_v11  ;;  %v10189_v12 = vld [vmem:[%s15189_s5 + $0x300] ss:$16 sps:$4 sm:$0xff]   ;;  %v10192_v11 = vld [vmem:[%s15189_s5 + $0x308] ss:$16 sps:$4 sm:$0xff]  }
 0x3af   : > { %5335 = vmatprep.subr.bf16.mxu0 %v10857_v40  ;;  %5408 = vmatprep.subr.bf16.mxu1 %v10858_v61  ;;  %v10197_v40 = vld [vmem:[%s15189_s5 + $0x324] ss:$16 sps:$4 sm:$0xff]   ;;  %v10200_v61 = vld [vmem:[%s15189_s5 + $0x32c] ss:$16 sps:$4 sm:$0xff]  }
 0x3b2   : > { %5336 = vmatpush1.bf16.msra.mxu0 %v12819_v30  ;;  %5409 = vmatpush1.bf16.msra.mxu1 %v12824_v27  ;;  %v15401_v30 = vld [vmem:[#allocation12_spill] sm:$0xff]  ;;  %v15402_v27 = vld [vmem:[#allocation11_spill] sm:$0xff] }
 0x3b3   : > { %5337 = vmatprep.subr.bf16.mxu0 %v12829_v60  ;;  %5410 = vmatprep.subr.bf16.mxu1 %v12834_v33  ;;  %v15403_v60 = vld [vmem:[#allocation14_spill] sm:$0xff]  ;;  %v15404_v33 = vld [vmem:[#allocation13_spill] sm:$0xff] }
 0x3b4   : > { %5198 = vmatmul.mubr.bf16.gmra.mrb[116].mxu0 %v15347_v43  ;;  %5271 = vmatmul.mubr.bf16.gmra.mrb[116].mxu1 %v15347_v43  ;;  %v15398_v43 = vld [vmem:[#allocation8_spill] sm:$0xff] }
 0x3b5   : > { %5207 = vmatprep.mubr.bf16.mxu0 %v15348_v57  ;;  %5280 = vmatprep.mubr.bf16.mxu1 %v15348_v57  ;;  %v15399_v57 = vld [vmem:[#allocation10_spill] sm:$0xff] }
 0x3b6   : > { %5338 = vmatpush1.bf16.msra.mxu0 %v12841_v48  ;;  %5411 = vmatpush1.bf16.msra.mxu1 %v12846_v58  ;;  %v15405_v48 = vld [vmem:[#allocation16_spill] sm:$0xff]  ;;  %v15406_v58 = vld [vmem:[#allocation15_spill] sm:$0xff] }
 0x3b7   : > { %5339 = vmatprep.subr.bf16.mxu0 %v12853_v39  ;;  %5412 = vmatprep.subr.bf16.mxu1 %v12858_v56  ;;  %v15407_v39 = vld [vmem:[#allocation20_spill] sm:$0xff]  ;;  %v15408_v56 = vld [vmem:[#allocation21_spill] sm:$0xff] }
 0x3ba   : > { %5340 = vmatpush1.bf16.msra.mxu0 %v12869_v50  ;;  %5413 = vmatpush1.bf16.msra.mxu1 %v12874_v17  ;;  %v15409_v50 = vld [vmem:[#allocation22_spill] sm:$0xff]  ;;  %v15410_v17 = vld [vmem:[#allocation23_spill] sm:$0xff] }
 0x3bb   : > { %5341 = vmatprep.subr.bf16.mxu0 %v12881_v2  ;;  %5414 = vmatprep.subr.bf16.mxu1 %v12886_v13  ;;  %v15411_v2 = vld [vmem:[#allocation24_spill] sm:$0xff] }
 0x3bc   : > { %5208 = vmatmul.mubr.bf16.gmra.mrb[120].mxu0 %v15349_v18  ;;  %5281 = vmatmul.mubr.bf16.gmra.mrb[120].mxu1 %v15349_v18  ;;  %v15400_v18 = vld [vmem:[#allocation9_spill] sm:$0xff]  ;;  %v10143_v13 = vld [vmem:[%s15189_s5 + $0x204] ss:$16 sps:$4 sm:$0xff]  }
 0x3bd   : > { %5217 = vmatprep.mubr.bf16.mxu0 %v15368_v49  ;;  %5290 = vmatprep.mubr.bf16.mxu1 %v15368_v49  ;;  %v10183_v49 = vld [vmem:[%s15189_s5 + $0x2e0] ss:$16 sps:$4 sm:$0xff]  }
 0x3be   : > { %5342 = vmatpush1.bf16.msra.mxu0 %v12893_v3  ;;  %5415 = vmatpush1.bf16.msra.mxu1 %v12898_v28  ;;  %v10146_v3 = vld [vmem:[%s15189_s5 + $0x20c] ss:$16 sps:$4 sm:$0xff]  }
 0x3bf   : > { %5343 = vmatprep.subr.bf16.mxu0 %v12905_v47  ;;  %5416 = vmatprep.subr.bf16.mxu1 %v12910_v52  ;;  %v15412_v28 = vld [vmem:[#allocation25_spill] sm:$0xff]  ;;  %v15413_v47 = vld [vmem:[#allocation26_spill] sm:$0xff] }
 0x3c0   : > { %v10141_v52 = vld [vmem:[%s15189_s5 + $0x200] ss:$16 sps:$4 sm:$0xff]  }
 0x3c2   : > { %5344 = vmatpush1.bf16.msra.mxu0 %v12921_v41  ;;  %5417 = vmatpush1.bf16.msra.mxu1 %v12926_v36  ;;  %v10144_v41 = vld [vmem:[%s15189_s5 + $0x208] ss:$16 sps:$4 sm:$0xff]   ;;  %v10149_v36 = vld [vmem:[%s15189_s5 + $0x224] ss:$16 sps:$4 sm:$0xff]  }
 0x3c3   : > { %5345 = vmatprep.subr.bf16.mxu0 %v12933_v0  ;;  %5418 = vmatprep.subr.bf16.mxu1 %v12938_v51  ;;  %v10152_v0 = vld [vmem:[%s15189_s5 + $0x22c] ss:$16 sps:$4 sm:$0xff]   ;;  %v10147_v51 = vld [vmem:[%s15189_s5 + $0x220] ss:$16 sps:$4 sm:$0xff]  }
 0x3c4   : > { %5218 = vmatmul.mubr.bf16.gmra.mrb[124].mxu0 %v15369_v21  ;;  %5291 = vmatmul.mubr.bf16.gmra.mrb[124].mxu1 %v15369_v21  ;;  %v10186_v21 = vld [vmem:[%s15189_s5 + $0x2e8] ss:$16 sps:$4 sm:$0xff]  }
 0x3c5   : > { %5365 = vmatprep.mubr.bf16.mxu0 %v12171_v20  ;;  %5438 = vmatprep.mubr.bf16.mxu1 %v12171_v20  ;;  %v15396_v20 = vld [vmem:[#allocation18_spill] sm:$0xff] }
 0x3c6   : > { %5346 = vmatpush1.bf16.msra.mxu0 %v12945_v15  ;;  %5419 = vmatpush1.bf16.msra.mxu1 %v12950_v5  ;;  %v10150_v15 = vld [vmem:[%s15189_s5 + $0x228] ss:$16 sps:$4 sm:$0xff]   ;;  %v10153_v5 = vld [vmem:[%s15189_s5 + $0x240] ss:$16 sps:$4 sm:$0xff]  }
 0x3c7   : > { %5347 = vmatprep.subr.bf16.mxu0 %v12957_v63  ;;  %5420 = vmatprep.subr.bf16.mxu1 %v12962_v54  ;;  %v10156_v63 = vld [vmem:[%s15189_s5 + $0x248] ss:$16 sps:$4 sm:$0xff]   ;;  %v10161_v54 = vld [vmem:[%s15189_s5 + $0x264] ss:$16 sps:$4 sm:$0xff]  }
 0x3ca   : > { %5348 = vmatpush1.bf16.msra.mxu0 %v12973_v9  ;;  %5421 = vmatpush1.bf16.msra.mxu1 %v12978_v26  ;;  %v10164_v9 = vld [vmem:[%s15189_s5 + $0x26c] ss:$16 sps:$4 sm:$0xff]   ;;  %v10159_v26 = vld [vmem:[%s15189_s5 + $0x260] ss:$16 sps:$4 sm:$0xff]  }
 0x3cb   : > { %5349 = vmatprep.subr.bf16.mxu0 %v12985_v22  ;;  %5422 = vmatprep.subr.bf16.mxu1 %v12990_v59  ;;  %v10162_v22 = vld [vmem:[%s15189_s5 + $0x268] ss:$16 sps:$4 sm:$0xff]   ;;  %v10165_v59 = vld [vmem:[%s15189_s5 + $0x280] ss:$16 sps:$4 sm:$0xff]  }
 0x3ce   : > { %5350 = vmatpush1.bf16.msra.mxu0 %v12997_v19  ;;  %5423 = vmatpush1.bf16.msra.mxu1 %v13002_v42  ;;  %v10168_v19 = vld [vmem:[%s15189_s5 + $0x288] ss:$16 sps:$4 sm:$0xff]   ;;  %v10173_v42 = vld [vmem:[%s15189_s5 + $0x2a4] ss:$16 sps:$4 sm:$0xff]  }
 0x3cf   : > { %5351 = vmatprep.subr.bf16.mxu0 %v13009_v31  ;;  %5424 = vmatprep.subr.bf16.mxu1 %v13014_v34  ;;  %v10176_v31 = vld [vmem:[%s15189_s5 + $0x2ac] ss:$16 sps:$4 sm:$0xff]  }
 0x3d0   : > { %v15414_v34 = vld [vmem:[#allocation17_spill] sm:$0xff] }
 0x3d2   : > { %5352 = vmatpush1.bf16.msra.mxu0 %v13021_v4  ;;  %5425 = vmatpush1.bf16.msra.mxu1 %v13026_v44  ;;  %v10171_v4 = vld [vmem:[%s15189_s5 + $0x2a0] ss:$16 sps:$4 sm:$0xff]   ;;  %v10174_v44 = vld [vmem:[%s15189_s5 + $0x2a8] ss:$16 sps:$4 sm:$0xff]  }
 0x3d3   : > { %5353 = vmatprep.subr.bf16.mxu0 %v13033_v62  ;;  %5426 = vmatprep.subr.bf16.mxu1 %v13038_v53  ;;  %v10182_v62 = vld [vmem:[%s15189_s5 + $0x2cc] ss:$16 sps:$4 sm:$0xff]   ;;  %v10177_v53 = vld [vmem:[%s15189_s5 + $0x2c0] ss:$16 sps:$4 sm:$0xff]  }
 0x3d6   : > { %5354 = vmatpush1.bf16.msra.mxu0 %v13045_v24  ;;  %5427 = vmatpush1.bf16.msra.mxu1 %v13050_v25  ;;  %v10180_v24 = vld [vmem:[%s15189_s5 + $0x2c8] ss:$16 sps:$4 sm:$0xff]   ;;  %v10185_v25 = vld [vmem:[%s15189_s5 + $0x2e4] ss:$16 sps:$4 sm:$0xff]  }
 0x3d7   : > { %5355 = vmatprep.subr.bf16.mxu0 %v13057_v46  ;;  %5428 = vmatprep.subr.bf16.mxu1 %v13062_v37  ;;  %v10188_v46 = vld [vmem:[%s15189_s5 + $0x2ec] ss:$16 sps:$4 sm:$0xff]  }
 0x3d8   : > { %v15415_v37 = vld [vmem:[#allocation5_spill] sm:$0xff] }
 0x3da   : > { %5356 = vmatpush1.bf16.msra.mxu0 %v15396_v20  ;;  %5429 = vmatpush1.bf16.msra.mxu1 %v15397_v14  ;;  %v10195_v20 = vld [vmem:[%s15189_s5 + $0x320] ss:$16 sps:$4 sm:$0xff]   ;;  %v10198_v14 = vld [vmem:[%s15189_s5 + $0x328] ss:$16 sps:$4 sm:$0xff]  }
 0x3db   : > { %5357 = vmatprep.subr.bf16.mxu0 %v15398_v43  ;;  %5430 = vmatprep.subr.bf16.mxu1 %v15399_v57  ;;  %v10203_v43 = vld [vmem:[%s15189_s5 + $0x344] ss:$16 sps:$4 sm:$0xff]   ;;  %v10206_v57 = vld [vmem:[%s15189_s5 + $0x34c] ss:$16 sps:$4 sm:$0xff]  }
 0x3de   : > { %5358 = vmatpush1.bf16.msra.mxu0 %v15400_v18  ;;  %5431 = vmatpush1.bf16.msra.mxu1 %v15401_v30  ;;  %v10201_v18 = vld [vmem:[%s15189_s5 + $0x340] ss:$16 sps:$4 sm:$0xff]   ;;  %v10204_v30 = vld [vmem:[%s15189_s5 + $0x348] ss:$16 sps:$4 sm:$0xff]  }
 0x3df   : > { %5359 = vmatprep.subr.bf16.mxu0 %v15402_v27  ;;  %5432 = vmatprep.subr.bf16.mxu1 %v15403_v60  ;;  %v10209_v27 = vld [vmem:[%s15189_s5 + $0x364] ss:$16 sps:$4 sm:$0xff]   ;;  %v10212_v60 = vld [vmem:[%s15189_s5 + $0x36c] ss:$16 sps:$4 sm:$0xff]  }
 0x3e2   : > { %5360 = vmatpush1.bf16.msra.mxu0 %v15404_v33  ;;  %5433 = vmatpush1.bf16.msra.mxu1 %v15405_v48  ;;  %v10207_v33 = vld [vmem:[%s15189_s5 + $0x360] ss:$16 sps:$4 sm:$0xff]   ;;  %v10210_v48 = vld [vmem:[%s15189_s5 + $0x368] ss:$16 sps:$4 sm:$0xff]  }
 0x3e3   : > { %5361 = vmatprep.subr.bf16.mxu0 %v15406_v58  ;;  %5434 = vmatprep.subr.bf16.mxu1 %v15407_v39  ;;  %v10215_v58 = vld [vmem:[%s15189_s5 + $0x384] ss:$16 sps:$4 sm:$0xff]   ;;  %v10218_v39 = vld [vmem:[%s15189_s5 + $0x38c] ss:$16 sps:$4 sm:$0xff]  }
 0x3e6   : > { %5362 = vmatpush1.bf16.msra.mxu0 %v15408_v56  ;;  %5435 = vmatpush1.bf16.msra.mxu1 %v15409_v50  ;;  %v10213_v56 = vld [vmem:[%s15189_s5 + $0x380] ss:$16 sps:$4 sm:$0xff]   ;;  %v10216_v50 = vld [vmem:[%s15189_s5 + $0x388] ss:$16 sps:$4 sm:$0xff]  }
 0x3e7   : > { %5363 = vmatprep.subr.bf16.mxu0 %v15410_v17  ;;  %5436 = vmatprep.subr.bf16.mxu1 %v15411_v2  ;;  %v10221_v17 = vld [vmem:[%s15189_s5 + $0x3a4] ss:$16 sps:$4 sm:$0xff]   ;;  %v10224_v2 = vld [vmem:[%s15189_s5 + $0x3ac] ss:$16 sps:$4 sm:$0xff]  }
 0x3ea   : > { %5364 = vmatpush1.bf16.msra.mxu0 %v15412_v28  ;;  %5437 = vmatpush1.bf16.msra.mxu1 %v15413_v47  ;;  %v10227_v28 = vld [vmem:[%s15189_s5 + $0x3c4] ss:$16 sps:$4 sm:$0xff]   ;;  %v10230_v47 = vld [vmem:[%s15189_s5 + $0x3cc] ss:$16 sps:$4 sm:$0xff]  }
 0x3eb   : > { %6044 = vmatprep.subr.bf16.mxu0 %v10143_v13  ;;  %6087 = vmatprep.subr.bf16.mxu1 %v10146_v3  ;;  %v10219_v13 = vld [vmem:[%s15189_s5 + $0x3a0] ss:$16 sps:$4 sm:$0xff]   ;;  %v10222_v3 = vld [vmem:[%s15189_s5 + $0x3a8] ss:$16 sps:$4 sm:$0xff]  }
 0x3ed   : > { %5366 = vmatmul.mubr.bf16.vlgmr.msra.gmra.mrb[112].mxu0 %v12166_v55  ;;  %5439 = vmatmul.mubr.bf16.vlgmr.msra.gmra.mrb[112].mxu1 %v12166_v55  ;;  %v10155_v55 = vld [vmem:[%s15189_s5 + $0x244] ss:$16 sps:$4 sm:$0xff]  }
 0x3ee   : > { %5375 = vmatprep.mubr.bf16.mxu0 %v12219_v8  ;;  %5448 = vmatprep.mubr.bf16.mxu1 %v12219_v8  ;;  %v10158_v8 = vld [vmem:[%s15189_s5 + $0x24c] ss:$16 sps:$4 sm:$0xff]  }
 0x3ef   : > { %6045 = vmatpush1.bf16.msra.mxu0 %v10141_v52  ;;  %6088 = vmatpush1.bf16.msra.mxu1 %v10144_v41  ;;  %v10225_v52 = vld [vmem:[%s15189_s5 + $0x3c0] ss:$16 sps:$4 sm:$0xff]   ;;  %v10228_v41 = vld [vmem:[%s15189_s5 + $0x3c8] ss:$16 sps:$4 sm:$0xff]  }
 0x3f0   : > { %6046 = vmatprep.subr.bf16.mxu0 %v10149_v36  ;;  %6089 = vmatprep.subr.bf16.mxu1 %v10152_v0  ;;  %v10233_v36 = vld [vmem:[%s15189_s5 + $0x3e4] ss:$16 sps:$4 sm:$0xff]   ;;  %v10236_v0 = vld [vmem:[%s15189_s5 + $0x3ec] ss:$16 sps:$4 sm:$0xff]  }
 0x3f3   : > { %6047 = vmatpush1.bf16.msra.mxu0 %v10147_v51  ;;  %6090 = vmatpush1.bf16.msra.mxu1 %v10150_v15  ;;  %v10231_v51 = vld [vmem:[%s15189_s5 + $0x3e0] ss:$16 sps:$4 sm:$0xff]   ;;  %v10234_v15 = vld [vmem:[%s15189_s5 + $0x3e8] ss:$16 sps:$4 sm:$0xff]  }
 0x3f4   : > { %6048 = vmatprep.subr.bf16.mxu0 %v10155_v55  ;;  %6091 = vmatprep.subr.bf16.mxu1 %v10158_v8  ;;  %v10239_v55 = vld [vmem:[%s15189_s5 + $0x4] ss:$16 sps:$4 sm:$0xff]   ;;  %v10242_v8 = vld [vmem:[%s15189_s5 + $0xc] ss:$16 sps:$4 sm:$0xff]  }
 0x3f5   : > { %5376 = vmatmul.mubr.bf16.gmra.mrb[116].mxu0 %v12214_v35  ;;  %5449 = vmatmul.mubr.bf16.gmra.mrb[116].mxu1 %v12214_v35  ;;  %v10167_v35 = vld [vmem:[%s15189_s5 + $0x284] ss:$16 sps:$4 sm:$0xff]  }
 0x3f6   : > { %5385 = vmatprep.mubr.bf16.mxu0 %v12269_v29  ;;  %5458 = vmatprep.mubr.bf16.mxu1 %v12269_v29  ;;  %v10170_v29 = vld [vmem:[%s15189_s5 + $0x28c] ss:$16 sps:$4 sm:$0xff]  }
 0x3f7   : > { %6049 = vmatpush1.bf16.msra.mxu0 %v10153_v5  ;;  %6092 = vmatpush1.bf16.msra.mxu1 %v10156_v63  ;;  %v5543_v5 = vld [vmem:[%s15188_s4] sm:$0x3] }
 0x3f8   : > { %6050 = vmatprep.subr.bf16.mxu0 %v10161_v54  ;;  %6093 = vmatprep.subr.bf16.mxu1 %v10164_v9 }
 0x3fb   : > { %6051 = vmatpush1.bf16.msra.mxu0 %v10159_v26  ;;  %6094 = vmatpush1.bf16.msra.mxu1 %v10162_v22  ;;  %v15416_v26 = vld [vmem:[#allocation6_spill] sm:$0xff] }
 0x3fc   : > { %6052 = vmatprep.subr.bf16.mxu0 %v10167_v35  ;;  %6095 = vmatprep.subr.bf16.mxu1 %v10170_v29  ;;  %v14412_v22 = vrot.slane %v5543_v5, %v15416_v26 }
 0x3fd   : > { %5386 = vmatmul.mubr.bf16.gmra.mrb[120].mxu0 %v12264_v6  ;;  %5459 = vmatmul.mubr.bf16.gmra.mrb[120].mxu1 %v12264_v6  ;;  %v10179_v6 = vld [vmem:[%s15189_s5 + $0x2c4] ss:$16 sps:$4 sm:$0xff]  }
 0x3fe   : > { %5395 = vmatprep.mubr.bf16.mxu0 %v15414_v34  ;;  %5468 = vmatprep.mubr.bf16.mxu1 %v15414_v34 }
 0x3ff   : > { %6053 = vmatpush1.bf16.msra.mxu0 %v10165_v59  ;;  %6096 = vmatpush1.bf16.msra.mxu1 %v10168_v19  ;;  %v15417_v19 = vld [vmem:[#allocation7_spill] sm:$0xff] }
 0x400   : > { %6054 = vmatprep.subr.bf16.mxu0 %v10173_v42  ;;  %6097 = vmatprep.subr.bf16.mxu1 %v10176_v31  ;;  %v14415_v42 = vrot.slane %v5543_v5, %v15417_v19 }
 0x403   : > { %6055 = vmatpush1.bf16.msra.mxu0 %v10171_v4  ;;  %6098 = vmatpush1.bf16.msra.mxu1 %v10174_v44  ;;  %v15418_v4 = vld [vmem:[#allocation4_spill] sm:$0xff] }
 0x404   : > { %6056 = vmatprep.subr.bf16.mxu0 %v10179_v6  ;;  %6099 = vmatprep.subr.bf16.mxu1 %v10182_v62  ;;  %v15419_v44 = vmax.f32 %v13864_v23, %v15418_v4 }
 0x405   : > { %5396 = vmatmul.mubr.bf16.gmra.mrb[124].mxu0 %v15415_v37  ;;  %5469 = vmatmul.mubr.bf16.gmra.mrb[124].mxu1 %v15415_v37 }
 0x407   : > { %6057 = vmatpush1.bf16.msra.mxu0 %v10177_v53  ;;  %6100 = vmatpush1.bf16.msra.mxu1 %v10180_v24 }
 0x408   : > { %6058 = vmatprep.subr.bf16.mxu0 %v10185_v25  ;;  %6101 = vmatprep.subr.bf16.mxu1 %v10188_v46  ;;  %v15420_v25 = vld [vmem:[#allocation3_spill] sm:$0xff] }
 0x409   : > { %v15421_v46 = vld [vmem:[#allocation27_spill] sm:$0xff] }
 0x40a   : > { %v15422_v37 = vmax.f32 %v15420_v25, %v15421_v46 }
 0x40b   : > { %6059 = vmatpush1.bf16.msra.mxu0 %v10183_v49  ;;  %6102 = vmatpush1.bf16.msra.mxu1 %v10186_v21 }
 0x40c   : > { %6060 = vmatprep.subr.bf16.mxu0 %v10191_v7  ;;  %6103 = vmatprep.subr.bf16.mxu1 %v10194_v38  ;;  %v15423_v38 = vld [vmem:[#allocation28_spill] sm:$0xff] }
 0x40f   : > { %6061 = vmatpush1.bf16.msra.mxu0 %v10189_v12  ;;  %6104 = vmatpush1.bf16.msra.mxu1 %v10192_v11  ;;  %v15424_v12 = vmax.f32 %v13884_v45, %v15423_v38 }
 0x410   : > { %6062 = vmatprep.subr.bf16.mxu0 %v10197_v40  ;;  %6105 = vmatprep.subr.bf16.mxu1 %v10200_v61  ;;  %v15425_v61 = vld [vmem:[#allocation29_spill] sm:$0xff] }
 0x413   : > { %6063 = vmatpush1.bf16.msra.mxu0 %v10195_v20  ;;  %6106 = vmatpush1.bf16.msra.mxu1 %v10198_v14  ;;  %v15426_v20 = vld [vmem:[#allocation30_spill] sm:$0xff] }
 0x414   : > { %6064 = vmatprep.subr.bf16.mxu0 %v10203_v43  ;;  %6107 = vmatprep.subr.bf16.mxu1 %v10206_v57  ;;  %v15427_v23 = vmax.f32 %v15425_v61, %v15426_v20  ;;  %v15440_v20 = vld [vmem:[#allocation39_spill] sm:$0xff] }
 0x417   : > { %6065 = vmatpush1.bf16.msra.mxu0 %v10201_v18  ;;  %6108 = vmatpush1.bf16.msra.mxu1 %v10204_v30 }
 0x418   : > { %6066 = vmatprep.subr.bf16.mxu0 %v10209_v27  ;;  %6109 = vmatprep.subr.bf16.mxu1 %v10212_v60 }
 0x41b   : > { %6067 = vmatpush1.bf16.msra.mxu0 %v10207_v33  ;;  %6110 = vmatpush1.bf16.msra.mxu1 %v10210_v48 }
 0x41c   : > { %6068 = vmatprep.subr.bf16.mxu0 %v10215_v58  ;;  %6111 = vmatprep.subr.bf16.mxu1 %v10218_v39 }
 0x41f   : > { %6069 = vmatpush1.bf16.msra.mxu0 %v10213_v56  ;;  %6112 = vmatpush1.bf16.msra.mxu1 %v10216_v50 }
 0x420   : > { %6070 = vmatprep.subr.bf16.mxu0 %v10221_v17  ;;  %6113 = vmatprep.subr.bf16.mxu1 %v10224_v2 }
 0x423   : > { %6071 = vmatpush1.bf16.msra.mxu0 %v10219_v13  ;;  %6114 = vmatpush1.bf16.msra.mxu1 %v10222_v3  ;;  %v15428_v13 = vld [vmem:[#allocation31_spill] sm:$0xff]  ;;  %v15429_v3 = vld [vmem:[#allocation32_spill] sm:$0xff] }
 0x424   : > { %6072 = vmatprep.subr.bf16.mxu0 %v10227_v28  ;;  %6115 = vmatprep.subr.bf16.mxu1 %v10230_v47  ;;  %v15430_v28 = vmax.f32 %v15428_v13, %v15429_v3  ;;  %v15447_v13 = vld [vmem:[#allocation44_spill] sm:$0xff] }
 0x427   : > { %6073 = vmatpush1.bf16.msra.mxu0 %v10225_v52  ;;  %6116 = vmatpush1.bf16.msra.mxu1 %v10228_v41 }
 0x428   : > { %6074 = vmatprep.subr.bf16.mxu0 %v10233_v36  ;;  %6117 = vmatprep.subr.bf16.mxu1 %v10236_v0  ;;  %v15431_v0 = vld [vmem:[#allocation33_spill] sm:$0xff] }
 0x42b   : > { %6075 = vmatpush1.bf16.msra.mxu0 %v10231_v51  ;;  %6118 = vmatpush1.bf16.msra.mxu1 %v10234_v15  ;;  %v15432_v51 = vld [vmem:[#allocation34_spill] sm:$0xff] }
 0x42c   : > { %6450 = vmatprep.subr.bf16.mxu0 %v10239_v55  ;;  %6493 = vmatprep.subr.bf16.mxu1 %v10242_v8  ;;  %v15433_v15 = vmax.f32 %v15431_v0, %v15432_v51  ;;  %v10245_v51 = vld [vmem:[%s15189_s5 + $0x24] ss:$16 sps:$4 sm:$0xff]  }
 0x4c0   : > { %v5367_v63 = vpop.f32.mrb[112].mxu0  ;;  %v5440_v54 = vpop.f32.mrb[112].mxu1 }
 0x4c1   : > { %v5511_v9 = vmax.f32 %v5367_v63, %v5440_v54  ;;  %v5369_v35 = vpop.f32.mrb[113].mxu0  ;;  %v5442_v29 = vpop.f32.mrb[113].mxu1  ;;  %v15434_v54 = vld [vmem:[#allocation35_spill] sm:$0xff] }
 0x4c2   : > { %v5512_v59 = vmax.f32 %v5369_v35, %v5442_v29  ;;  %v5371_v31 = vpop.f32.mrb[114].mxu0  ;;  %v5444_v34 = vpop.f32.mrb[114].mxu1 }
 0x4c3   : > { %v5527_v6 = vmax.f32 %v15419_v44, %v5511_v9  ;;  %v5513_v62 = vmax.f32 %v5371_v31, %v5444_v34  ;;  %v5373_v53 = vpop.f32.mrb[115].mxu0  ;;  %v5446_v24 = vpop.f32.mrb[115].mxu1  ;;  %v15435_v9 = vld [vmem:[#allocation36_spill] sm:$0xff]  ;;  %v15437_v31 = vld [vmem:[#allocation37_spill] sm:$0xff]  ;;  %v15438_v34 = vld [vmem:[#allocation38_spill] sm:$0xff] }
 0x4c4   : > { %v5528_v49 = vmax.f32 %v15422_v37, %v5512_v59  ;;  %v5514_v21 = vmax.f32 %v5373_v53, %v5446_v24  ;;  %v15436_v35 = vmax.f32 %v15434_v54, %v15435_v9  ;;  %v15439_v4 = vmax.f32 %v15437_v31, %v15438_v34 }
 0x4c5   : > { %v5555_v7 = vadd.f32 %v14412_v22, %v5527_v6  ;;  %v5529_v11 = vmax.f32 %v15424_v12, %v5513_v62 }
 0x4c6   : > { %v5556_v40 = vadd.f32 %v14415_v42, %v5528_v49  ;;  %v5530_v14 = vmax.f32 %v15427_v23, %v5514_v21  ;;  %v15441_v23 = vld [vmem:[#allocation40_spill] sm:$0xff] }
 0x4c7   : > { %v5557_v43 = vadd.f32 %v14412_v22, %v5529_v11  ;;  %v5571_v27 = vmax.f32 %v5555_v7, 0.0 }
 0x4c8   : > { %v5558_v57 = vadd.f32 %v14415_v42, %v5530_v14  ;;  %v5377_v18 = vpop.f32.mrb[116].mxu0  ;;  %v5450_v30 = vpop.f32.mrb[116].mxu1  ;;  %v5572_v39 = vmax.f32 %v5556_v40, 0.0  ;;  %v15442_v14 = vmax.f32 %v15440_v20, %v15441_v23 }
 0x4c9   : > { %v5573_v60 = vmax.f32 %v5557_v43, 0.0  ;;  %v5515_v33 = vmax.f32 %v5377_v18, %v5450_v30  ;;  %v5379_v48 = vpop.f32.mrb[117].mxu0  ;;  %v5452_v58 = vpop.f32.mrb[117].mxu1 }
 0x4ca   : > { %v5574_v45 = vmax.f32 %v5558_v57, 0.0  ;;  %v5516_v56 = vmax.f32 %v5379_v48, %v5452_v58  ;;  %v5381_v50 = vpop.f32.mrb[118].mxu0  ;;  %v5454_v17 = vpop.f32.mrb[118].mxu1 }
 0x4cb   : > { %v14433_v2 = vpack.c.bf16 %v5573_v60, %v5571_v27  ;;  %v5531_v47 = vmax.f32 %v15430_v28, %v5515_v33  ;;  %v5517_v52 = vmax.f32 %v5381_v50, %v5454_v17  ;;  %v5383_v41 = vpop.f32.mrb[119].mxu0  ;;  %v5456_v36 = vpop.f32.mrb[119].mxu1  ;;  %v15443_v27 = vld [vmem:[#allocation41_spill] sm:$0xff]  ;;  %v15444_v60 = vld [vmem:[#allocation42_spill] sm:$0xff]  ;;  %v15446_v17 = vld [vmem:[#allocation43_spill] sm:$0xff] }
 0x4cc   : > { %v5532_v55 = vmax.f32 %v15433_v15, %v5516_v56  ;;  %v5518_v8 = vmax.f32 %v5383_v41, %v5456_v36  ;;  %v5588_v5 = vpack.c.bf16 %v5574_v45, %v5572_v39  ;;  %v15445_v33 = vmax.f32 %v15443_v27, %v15444_v60  ;;  %v10237_v45 = vld [vmem:[%s15189_s5] ss:$16 sps:$4 sm:$0xff]   ;;  %v10240_v56 = vld [vmem:[%s15189_s5 + $0x8] ss:$16 sps:$4 sm:$0xff]   ;;  %v10248_v15 = vld [vmem:[%s15189_s5 + $0x2c] ss:$16 sps:$4 sm:$0xff]  }
 0x4cd   : > { %v5559_v63 = vadd.f32 %v14412_v22, %v5531_v47  ;;  %v5533_v29 = vmax.f32 %v15436_v35, %v5517_v52  ;;  %v15448_v3 = vmax.f32 %v15446_v17, %v15447_v13  ;;  %v15449_v52 = vld [vmem:[#allocation45_spill] sm:$0xff]  ;;  %v15450_v41 = vld [vmem:[#allocation46_spill] sm:$0xff]  ;;  %v15458_v27 = vmax.f32 %v14032_v32, %v14034_v1 }
 0x4ce   : > { %v5560_v59 = vadd.f32 %v14415_v42, %v5532_v55  ;;  %v5534_v44 = vmax.f32 %v15439_v4, %v5518_v8  ;;  %v15451_v36 = vmax.f32 %v15449_v52, %v15450_v41  ;;  %v10243_v8 = vld [vmem:[%s15189_s5 + $0x20] ss:$16 sps:$4 sm:$0xff]   ;;  %v10246_v35 = vld [vmem:[%s15189_s5 + $0x28] ss:$16 sps:$4 sm:$0xff]   ;;  %v10269_v41 = vld [vmem:[%s15189_s5 + $0xa4] ss:$16 sps:$4 sm:$0xff]  }
 0x4cf   : > { %v5561_v6 = vadd.f32 %v14412_v22, %v5533_v29  ;;  %v5575_v25 = vmax.f32 %v5559_v63, 0.0  ;;  %v10251_v29 = vld [vmem:[%s15189_s5 + $0x44] ss:$16 sps:$4 sm:$0xff]   ;;  %v10255_v1 = vld [vmem:[%s15189_s5 + $0x60] ss:$16 sps:$4 sm:$0xff]  }
 0x4d0   : > { %v5562_v62 = vadd.f32 %v14415_v42, %v5534_v44  ;;  %v5387_v53 = vpop.f32.mrb[120].mxu0  ;;  %v5460_v24 = vpop.f32.mrb[120].mxu1  ;;  %v5576_v7 = vmax.f32 %v5560_v59, 0.0 }
 0x4d1   : > { %v5577_v46 = vmax.f32 %v5561_v6, 0.0  ;;  %v5519_v37 = vmax.f32 %v5387_v53, %v5460_v24  ;;  %v5389_v49 = vpop.f32.mrb[121].mxu0  ;;  %v5462_v21 = vpop.f32.mrb[121].mxu1  ;;  %v10254_v6 = vld [vmem:[%s15189_s5 + $0x4c] ss:$16 sps:$4 sm:$0xff]  }
 0x4d2   : > { %v5578_v38 = vmax.f32 %v5562_v62, 0.0  ;;  %v5520_v12 = vmax.f32 %v5389_v49, %v5462_v21  ;;  %v5391_v11 = vpop.f32.mrb[122].mxu0  ;;  %v5464_v40 = vpop.f32.mrb[122].mxu1  ;;  %v15452_v49 = vld [vmem:[#allocation47_spill] sm:$0xff]  ;;  %v15453_v21 = vld [vmem:[#allocation48_spill] sm:$0xff] }
 0x4d3   : > { %v5589_v61 = vpack.c.bf16 %v5577_v46, %v5575_v25  ;;  %v5535_v43 = vmax.f32 %v15442_v14, %v5519_v37  ;;  %v5521_v57 = vmax.f32 %v5391_v11, %v5464_v40  ;;  %v5393_v18 = vpop.f32.mrb[123].mxu0  ;;  %v5466_v30 = vpop.f32.mrb[123].mxu1  ;;  %v15455_v40 = vld [vmem:[#allocation49_spill] sm:$0xff] }
 0x4d4   : > { %v5536_v48 = vmax.f32 %v15445_v33, %v5520_v12  ;;  %v5522_v58 = vmax.f32 %v5393_v18, %v5466_v30  ;;  %v5590_v39 = vpack.c.bf16 %v5578_v38, %v5576_v7  ;;  %v15454_v7 = vmax.f32 %v15452_v49, %v15453_v21  ;;  %v10257_v33 = vld [vmem:[%s15189_s5 + $0x64] ss:$16 sps:$4 sm:$0xff]   ;;  %v10300_v49 = vld [vmem:[%s15189_s5 + $0x148] ss:$16 sps:$4 sm:$0xff]  }
 0x4d5   : > { %v5563_v50 = vadd.f32 %v14412_v22, %v5535_v43  ;;  %v5537_v28 = vmax.f32 %v15448_v3, %v5521_v57  ;;  %v10249_v43 = vld [vmem:[%s15189_s5 + $0x40] ss:$16 sps:$4 sm:$0xff]   ;;  %v10252_v57 = vld [vmem:[%s15189_s5 + $0x48] ss:$16 sps:$4 sm:$0xff]   ;;  %v10305_v21 = vld [vmem:[%s15189_s5 + $0x164] ss:$16 sps:$4 sm:$0xff]  }
 0x4d6   : > { %v5564_v47 = vadd.f32 %v14415_v42, %v5536_v48  ;;  %v5538_v0 = vmax.f32 %v15451_v36, %v5522_v58  ;;  %6076 = vmatprep.mubr.bf16.mxu0 %v5590_v39  ;;  %6119 = vmatprep.mubr.bf16.mxu1 %v5590_v39  ;;  %v10260_v48 = vld [vmem:[%s15189_s5 + $0x6c] ss:$16 sps:$4 sm:$0xff]   ;;  %v15459_v39 = vmax.f32 %v14044_v16, %v14046_v10  ;;  %v10263_v10 = vld [vmem:[%s15189_s5 + $0x84] ss:$16 sps:$4 sm:$0xff]  }
 0x4d7   : > { %v5565_v55 = vadd.f32 %v14412_v22, %v5537_v28  ;;  %6077 = vmatmul.mubr.bf16.vlgmr.msra.gmra.mrb[128].mxu0 %v5589_v61  ;;  %6120 = vmatmul.mubr.bf16.vlgmr.msra.gmra.mrb[128].mxu1 %v5589_v61  ;;  %v5579_v59 = vmax.f32 %v5563_v50, 0.0  ;;  %v15456_v61 = vld [vmem:[#allocation50_spill] sm:$0xff]  ;;  %v10258_v50 = vld [vmem:[%s15189_s5 + $0x68] ss:$16 sps:$4 sm:$0xff]   ;;  %v10266_v16 = vld [vmem:[%s15189_s5 + $0x8c] ss:$16 sps:$4 sm:$0xff]  }
 0x4d8   : > { %v5566_v63 = vadd.f32 %v14415_v42, %v5538_v0  ;;  %6451 = vmatpush1.bf16.msra.mxu0 %v10237_v45  ;;  %6494 = vmatpush1.bf16.msra.mxu1 %v10240_v56  ;;  %v5397_v54 = vpop.f32.mrb[124].mxu0  ;;  %v5470_v9 = vpop.f32.mrb[124].mxu1  ;;  %v5580_v62 = vmax.f32 %v5564_v47, 0.0  ;;  %v15457_v20 = vmax.f32 %v15455_v40, %v15456_v61  ;;  %v10261_v28 = vld [vmem:[%s15189_s5 + $0x80] ss:$16 sps:$4 sm:$0xff]  }
 0x4d9   : > { %v5581_v31 = vmax.f32 %v5565_v55, 0.0  ;;  %v5523_v34 = vmax.f32 %v5397_v54, %v5470_v9  ;;  %6482 = vmatprep.mubr.bf16.mxu0 %v5588_v5  ;;  %6525 = vmatprep.mubr.bf16.mxu1 %v5588_v5  ;;  %v5399_v4 = vpop.f32.mrb[125].mxu0  ;;  %v5472_v44 = vpop.f32.mrb[125].mxu1  ;;  %v10264_v47 = vld [vmem:[%s15189_s5 + $0x88] ss:$16 sps:$4 sm:$0xff]  }
 0x4da   : > { %v5582_v53 = vmax.f32 %v5566_v63, 0.0  ;;  %v5524_v24 = vmax.f32 %v5399_v4, %v5472_v44  ;;  %v5401_v25 = vpop.f32.mrb[126].mxu0  ;;  %v5474_v46 = vpop.f32.mrb[126].mxu1  ;;  %6452 = vmatprep.subr.bf16.mxu0 %v10245_v51  ;;  %6495 = vmatprep.subr.bf16.mxu1 %v10248_v15  ;;  %v10272_v36 = vld [vmem:[%s15189_s5 + $0xac] ss:$16 sps:$4 sm:$0xff]  }
 0x4db   : > { %v14491_v37 = vpack.c.bf16 %v5581_v31, %v5579_v59  ;;  %v5539_v38 = vmax.f32 %v15454_v7, %v5523_v34  ;;  %v5525_v5 = vmax.f32 %v5401_v25, %v5474_v46  ;;  %v5403_v12 = vpop.f32.mrb[127].mxu0  ;;  %v5476_v11 = vpop.f32.mrb[127].mxu1  ;;  %v10267_v0 = vld [vmem:[%s15189_s5 + $0xa0] ss:$16 sps:$4 sm:$0xff]   ;;  %v10270_v51 = vld [vmem:[%s15189_s5 + $0xa8] ss:$16 sps:$4 sm:$0xff]  }
 0x4dc   : > { %v5540_v23 = vmax.f32 %v15457_v20, %v5524_v24  ;;  %v5526_v14 = vmax.f32 %v5403_v12, %v5476_v11  ;;  %6453 = vmatpush1.bf16.msra.mxu0 %v10243_v8  ;;  %6496 = vmatpush1.bf16.msra.mxu1 %v10246_v35  ;;  %v14505_v18 = vpack.c.bf16 %v5582_v53, %v5580_v62  ;;  %v10275_v15 = vld [vmem:[%s15189_s5 + $0xc4] ss:$16 sps:$4 sm:$0xff]   ;;  %v10278_v55 = vld [vmem:[%s15189_s5 + $0xcc] ss:$16 sps:$4 sm:$0xff]   ;;  %v10273_v8 = vld [vmem:[%s15189_s5 + $0xc0] ss:$16 sps:$4 sm:$0xff]  }
 0x4dd   : > { %v5567_v30 = vadd.f32 %v14412_v22, %v5539_v38  ;;  %v5541_v60 = vmax.f32 %v15458_v27, %v5525_v5  ;;  %6454 = vmatprep.subr.bf16.mxu0 %v10251_v29  ;;  %6497 = vmatprep.subr.bf16.mxu1 %v10254_v6  ;;  %v10276_v63 = vld [vmem:[%s15189_s5 + $0xc8] ss:$16 sps:$4 sm:$0xff]   ;;  %v10281_v54 = vld [vmem:[%s15189_s5 + $0xe4] ss:$16 sps:$4 sm:$0xff]   ;;  %v10284_v9 = vld [vmem:[%s15189_s5 + $0xec] ss:$16 sps:$4 sm:$0xff]  }
 0x4de   : > { %v5568_v58 = vadd.f32 %v14415_v42, %v5540_v23  ;;  %v5542_v45 = vmax.f32 %v15459_v39, %v5526_v14  ;;  %v10279_v35 = vld [vmem:[%s15189_s5 + $0xe0] ss:$16 sps:$4 sm:$0xff]   ;;  %v10282_v29 = vld [vmem:[%s15189_s5 + $0xe8] ss:$16 sps:$4 sm:$0xff]   ;;  %v10287_v59 = vld [vmem:[%s15189_s5 + $0x104] ss:$16 sps:$4 sm:$0xff]  }
 0x4df   : > { %v5569_v56 = vadd.f32 %v14412_v22, %v5541_v60  ;;  %v5583_v17 = vmax.f32 %v5567_v30, 0.0  ;;  %v10290_v31 = vld [vmem:[%s15189_s5 + $0x10c] ss:$16 sps:$4 sm:$0xff]   ;;  %v10285_v34 = vld [vmem:[%s15189_s5 + $0x100] ss:$16 sps:$4 sm:$0xff]  }
 0x4e0   : > { %v5570_v32 = vadd.f32 %v14415_v42, %v5542_v45  ;;  %6455 = vmatpush1.bf16.msra.mxu0 %v10249_v43  ;;  %6498 = vmatpush1.bf16.msra.mxu1 %v10252_v57  ;;  %v5584_v22 = vmax.f32 %v5568_v58, 0.0  ;;  %v10288_v4 = vld [vmem:[%s15189_s5 + $0x108] ss:$16 sps:$4 sm:$0xff]   ;;  %v10293_v44 = vld [vmem:[%s15189_s5 + $0x124] ss:$16 sps:$4 sm:$0xff]  }
 0x4e1   : > { %v5585_v13 = vmax.f32 %v5569_v56, 0.0  ;;  %6456 = vmatprep.subr.bf16.mxu0 %v10257_v33  ;;  %6499 = vmatprep.subr.bf16.mxu1 %v10260_v48  ;;  %v10296_v6 = vld [vmem:[%s15189_s5 + $0x12c] ss:$16 sps:$4 sm:$0xff]   ;;  %v10291_v62 = vld [vmem:[%s15189_s5 + $0x120] ss:$16 sps:$4 sm:$0xff]  }
 0x4e2   : > { %v5586_v42 = vmax.f32 %v5570_v32, 0.0  ;;  %v10294_v53 = vld [vmem:[%s15189_s5 + $0x128] ss:$16 sps:$4 sm:$0xff]   ;;  %v10299_v24 = vld [vmem:[%s15189_s5 + $0x144] ss:$16 sps:$4 sm:$0xff]  }
 0x4e3   : > { %v14535_v3 = vpack.c.bf16 %v5585_v13, %v5583_v17  ;;  %v10302_v25 = vld [vmem:[%s15189_s5 + $0x14c] ss:$16 sps:$4 sm:$0xff]   ;;  %v10297_v46 = vld [vmem:[%s15189_s5 + $0x140] ss:$16 sps:$4 sm:$0xff]   ;;  %v10306_v5 = vld [vmem:[%s15189_s5 + $0x168] ss:$16 sps:$4 sm:$0xff]  }
 0x4e4   : > { %6457 = vmatpush1.bf16.msra.mxu0 %v10255_v1  ;;  %6500 = vmatpush1.bf16.msra.mxu1 %v10258_v50  ;;  %v14543_v52 = vpack.c.bf16 %v5586_v42, %v5584_v22  ;;  %v10308_v7 = vld [vmem:[%s15189_s5 + $0x16c] ss:$16 sps:$4 sm:$0xff]   ;;  %v10303_v38 = vld [vmem:[%s15189_s5 + $0x160] ss:$16 sps:$4 sm:$0xff]   ;;  %v10311_v12 = vld [vmem:[%s15189_s5 + $0x184] ss:$16 sps:$4 sm:$0xff]  }
 0x4e5   : > { %6458 = vmatprep.subr.bf16.mxu0 %v10263_v10  ;;  %6501 = vmatprep.subr.bf16.mxu1 %v10266_v16  ;;  %v10314_v11 = vld [vmem:[%s15189_s5 + $0x18c] ss:$16 sps:$4 sm:$0xff]   ;;  %v10309_v40 = vld [vmem:[%s15189_s5 + $0x180] ss:$16 sps:$4 sm:$0xff]   ;;  %v10312_v61 = vld [vmem:[%s15189_s5 + $0x188] ss:$16 sps:$4 sm:$0xff]  }
 0x4e6   : > { %v10317_v20 = vld [vmem:[%s15189_s5 + $0x1a4] ss:$16 sps:$4 sm:$0xff]   ;;  %v10320_v23 = vld [vmem:[%s15189_s5 + $0x1ac] ss:$16 sps:$4 sm:$0xff]   ;;  %v10315_v14 = vld [vmem:[%s15189_s5 + $0x1a0] ss:$16 sps:$4 sm:$0xff]  }
 0x4e7   : > { %v10318_v43 = vld [vmem:[%s15189_s5 + $0x1a8] ss:$16 sps:$4 sm:$0xff]   ;;  %v10323_v57 = vld [vmem:[%s15189_s5 + $0x1c4] ss:$16 sps:$4 sm:$0xff]   ;;  %v10326_v30 = vld [vmem:[%s15189_s5 + $0x1cc] ss:$16 sps:$4 sm:$0xff]  }
 0x4e8   : > { %6459 = vmatpush1.bf16.msra.mxu0 %v10261_v28  ;;  %6502 = vmatpush1.bf16.msra.mxu1 %v10264_v47  ;;  %v10321_v27 = vld [vmem:[%s15189_s5 + $0x1c0] ss:$16 sps:$4 sm:$0xff]   ;;  %v10324_v60 = vld [vmem:[%s15189_s5 + $0x1c8] ss:$16 sps:$4 sm:$0xff]   ;;  %v10329_v33 = vld [vmem:[%s15189_s5 + $0x1e4] ss:$16 sps:$4 sm:$0xff]  }
 0x4e9   : > { %6460 = vmatprep.subr.bf16.mxu0 %v10269_v41  ;;  %6503 = vmatprep.subr.bf16.mxu1 %v10272_v36  ;;  %v10332_v48 = vld [vmem:[%s15189_s5 + $0x1ec] ss:$16 sps:$4 sm:$0xff]   ;;  %v10327_v58 = vld [vmem:[%s15189_s5 + $0x1e0] ss:$16 sps:$4 sm:$0xff]   ;;  %v10330_v39 = vld [vmem:[%s15189_s5 + $0x1e8] ss:$16 sps:$4 sm:$0xff]  }
 0x4ea   : > { %v10335_v45 = vld [vmem:[%s15189_s5 + $0x404] ss:$16 sps:$4 sm:$0xff]   ;;  %v10338_v56 = vld [vmem:[%s15189_s5 + $0x40c] ss:$16 sps:$4 sm:$0xff]   ;;  %v10333_v32 = vld [vmem:[%s15189_s5 + $0x400] ss:$16 sps:$4 sm:$0xff]  }
 0x4eb   : > { %v10336_v1 = vld [vmem:[%s15189_s5 + $0x408] ss:$16 sps:$4 sm:$0xff]   ;;  %v10341_v50 = vld [vmem:[%s15189_s5 + $0x424] ss:$16 sps:$4 sm:$0xff]   ;;  %v10344_v17 = vld [vmem:[%s15189_s5 + $0x42c] ss:$16 sps:$4 sm:$0xff]  }
 0x4ec   : > { %6461 = vmatpush1.bf16.msra.mxu0 %v10267_v0  ;;  %6504 = vmatpush1.bf16.msra.mxu1 %v10270_v51  ;;  %v10339_v13 = vld [vmem:[%s15189_s5 + $0x420] ss:$16 sps:$4 sm:$0xff]   ;;  %v10342_v10 = vld [vmem:[%s15189_s5 + $0x428] ss:$16 sps:$4 sm:$0xff]   ;;  %v10347_v16 = vld [vmem:[%s15189_s5 + $0x444] ss:$16 sps:$4 sm:$0xff]  }
 0x4ed   : > { %6462 = vmatprep.subr.bf16.mxu0 %v10275_v15  ;;  %6505 = vmatprep.subr.bf16.mxu1 %v10278_v55  ;;  %v10345_v22 = vld [vmem:[%s15189_s5 + $0x440] ss:$16 sps:$4 sm:$0xff]   ;;  %v10353_v42 = vld [vmem:[%s15189_s5 + $0x464] ss:$16 sps:$4 sm:$0xff]   ;;  %v10356_v28 = vld [vmem:[%s15189_s5 + $0x46c] ss:$16 sps:$4 sm:$0xff]  }
 0x4ee   : > { %v10351_v47 = vld [vmem:[%s15189_s5 + $0x460] ss:$16 sps:$4 sm:$0xff]   ;;  %v10354_v41 = vld [vmem:[%s15189_s5 + $0x468] ss:$16 sps:$4 sm:$0xff]   ;;  %v10359_v36 = vld [vmem:[%s15189_s5 + $0x484] ss:$16 sps:$4 sm:$0xff]  }
 0x4ef   : > { %v10362_v0 = vld [vmem:[%s15189_s5 + $0x48c] ss:$16 sps:$4 sm:$0xff]   ;;  %v10357_v51 = vld [vmem:[%s15189_s5 + $0x480] ss:$16 sps:$4 sm:$0xff]   ;;  %v10360_v15 = vld [vmem:[%s15189_s5 + $0x488] ss:$16 sps:$4 sm:$0xff]  }
 0x4f0   : > { %6463 = vmatpush1.bf16.msra.mxu0 %v10273_v8  ;;  %6506 = vmatpush1.bf16.msra.mxu1 %v10276_v63  ;;  %v10365_v55 = vld [vmem:[%s15189_s5 + $0x4a4] ss:$16 sps:$4 sm:$0xff]   ;;  %v10368_v8 = vld [vmem:[%s15189_s5 + $0x4ac] ss:$16 sps:$4 sm:$0xff]   ;;  %v10363_v63 = vld [vmem:[%s15189_s5 + $0x4a0] ss:$16 sps:$4 sm:$0xff]  }
 0x4f1   : > { %6464 = vmatprep.subr.bf16.mxu0 %v10281_v54  ;;  %6507 = vmatprep.subr.bf16.mxu1 %v10284_v9  ;;  %v10366_v54 = vld [vmem:[%s15189_s5 + $0x4a8] ss:$16 sps:$4 sm:$0xff]   ;;  %v10371_v9 = vld [vmem:[%s15189_s5 + $0x4c4] ss:$16 sps:$4 sm:$0xff]  }
 0x4f4   : > { %6465 = vmatpush1.bf16.msra.mxu0 %v10279_v35  ;;  %6508 = vmatpush1.bf16.msra.mxu1 %v10282_v29  ;;  %v10374_v35 = vld [vmem:[%s15189_s5 + $0x4cc] ss:$16 sps:$4 sm:$0xff]   ;;  %v10369_v29 = vld [vmem:[%s15189_s5 + $0x4c0] ss:$16 sps:$4 sm:$0xff]  }
 0x4f5   : > { %6466 = vmatprep.subr.bf16.mxu0 %v10287_v59  ;;  %6509 = vmatprep.subr.bf16.mxu1 %v10290_v31  ;;  %v10372_v59 = vld [vmem:[%s15189_s5 + $0x4c8] ss:$16 sps:$4 sm:$0xff]   ;;  %v10377_v31 = vld [vmem:[%s15189_s5 + $0x4e4] ss:$16 sps:$4 sm:$0xff]  }
 0x4f8   : > { %6467 = vmatpush1.bf16.msra.mxu0 %v10285_v34  ;;  %6510 = vmatpush1.bf16.msra.mxu1 %v10288_v4  ;;  %v10380_v34 = vld [vmem:[%s15189_s5 + $0x4ec] ss:$16 sps:$4 sm:$0xff]   ;;  %v10375_v4 = vld [vmem:[%s15189_s5 + $0x4e0] ss:$16 sps:$4 sm:$0xff]  }
 0x4f9   : > { %6468 = vmatprep.subr.bf16.mxu0 %v10293_v44  ;;  %6511 = vmatprep.subr.bf16.mxu1 %v10296_v6  ;;  %v10378_v44 = vld [vmem:[%s15189_s5 + $0x4e8] ss:$16 sps:$4 sm:$0xff]   ;;  %v10383_v6 = vld [vmem:[%s15189_s5 + $0x504] ss:$16 sps:$4 sm:$0xff]  }
 0x4fc   : > { %6469 = vmatpush1.bf16.msra.mxu0 %v10291_v62  ;;  %6512 = vmatpush1.bf16.msra.mxu1 %v10294_v53  ;;  %v10386_v62 = vld [vmem:[%s15189_s5 + $0x50c] ss:$16 sps:$4 sm:$0xff]   ;;  %v10381_v53 = vld [vmem:[%s15189_s5 + $0x500] ss:$16 sps:$4 sm:$0xff]  }
 0x4fd   : > { %6470 = vmatprep.subr.bf16.mxu0 %v10299_v24  ;;  %6513 = vmatprep.subr.bf16.mxu1 %v10302_v25  ;;  %v10384_v24 = vld [vmem:[%s15189_s5 + $0x508] ss:$16 sps:$4 sm:$0xff]   ;;  %v10389_v25 = vld [vmem:[%s15189_s5 + $0x524] ss:$16 sps:$4 sm:$0xff]  }
 0x500   : > { %6471 = vmatpush1.bf16.msra.mxu0 %v10297_v46  ;;  %6514 = vmatpush1.bf16.msra.mxu1 %v10300_v49  ;;  %v10392_v46 = vld [vmem:[%s15189_s5 + $0x52c] ss:$16 sps:$4 sm:$0xff]   ;;  %v10387_v49 = vld [vmem:[%s15189_s5 + $0x520] ss:$16 sps:$4 sm:$0xff]  }
 0x501   : > { %6472 = vmatprep.subr.bf16.mxu0 %v10305_v21  ;;  %6515 = vmatprep.subr.bf16.mxu1 %v10308_v7  ;;  %v10390_v21 = vld [vmem:[%s15189_s5 + $0x528] ss:$16 sps:$4 sm:$0xff]   ;;  %v10395_v7 = vld [vmem:[%s15189_s5 + $0x544] ss:$16 sps:$4 sm:$0xff]  }
 0x504   : > { %6473 = vmatpush1.bf16.msra.mxu0 %v10303_v38  ;;  %6516 = vmatpush1.bf16.msra.mxu1 %v10306_v5  ;;  %v10398_v38 = vld [vmem:[%s15189_s5 + $0x54c] ss:$16 sps:$4 sm:$0xff]   ;;  %v10393_v5 = vld [vmem:[%s15189_s5 + $0x540] ss:$16 sps:$4 sm:$0xff]  }
 0x505   : > { %6474 = vmatprep.subr.bf16.mxu0 %v10311_v12  ;;  %6517 = vmatprep.subr.bf16.mxu1 %v10314_v11  ;;  %v10396_v12 = vld [vmem:[%s15189_s5 + $0x548] ss:$16 sps:$4 sm:$0xff]   ;;  %v10401_v11 = vld [vmem:[%s15189_s5 + $0x564] ss:$16 sps:$4 sm:$0xff]  }
 0x508   : > { %6475 = vmatpush1.bf16.msra.mxu0 %v10309_v40  ;;  %6518 = vmatpush1.bf16.msra.mxu1 %v10312_v61  ;;  %v10404_v40 = vld [vmem:[%s15189_s5 + $0x56c] ss:$16 sps:$4 sm:$0xff]   ;;  %v10399_v61 = vld [vmem:[%s15189_s5 + $0x560] ss:$16 sps:$4 sm:$0xff]  }
 0x509   : > { %6476 = vmatprep.subr.bf16.mxu0 %v10317_v20  ;;  %6519 = vmatprep.subr.bf16.mxu1 %v10320_v23  ;;  %v10402_v20 = vld [vmem:[%s15189_s5 + $0x568] ss:$16 sps:$4 sm:$0xff]   ;;  %v10407_v23 = vld [vmem:[%s15189_s5 + $0x584] ss:$16 sps:$4 sm:$0xff]  }
 0x50c   : > { %6477 = vmatpush1.bf16.msra.mxu0 %v10315_v14  ;;  %6520 = vmatpush1.bf16.msra.mxu1 %v10318_v43  ;;  %v10410_v14 = vld [vmem:[%s15189_s5 + $0x58c] ss:$16 sps:$4 sm:$0xff]   ;;  %v10405_v43 = vld [vmem:[%s15189_s5 + $0x580] ss:$16 sps:$4 sm:$0xff]  }
 0x50d   : > { %6478 = vmatprep.subr.bf16.mxu0 %v10323_v57  ;;  %6521 = vmatprep.subr.bf16.mxu1 %v10326_v30  ;;  %v10408_v57 = vld [vmem:[%s15189_s5 + $0x588] ss:$16 sps:$4 sm:$0xff]   ;;  %v10413_v30 = vld [vmem:[%s15189_s5 + $0x5a4] ss:$16 sps:$4 sm:$0xff]  }
 0x510   : > { %6479 = vmatpush1.bf16.msra.mxu0 %v10321_v27  ;;  %6522 = vmatpush1.bf16.msra.mxu1 %v10324_v60  ;;  %v10416_v27 = vld [vmem:[%s15189_s5 + $0x5ac] ss:$16 sps:$4 sm:$0xff]   ;;  %v10411_v60 = vld [vmem:[%s15189_s5 + $0x5a0] ss:$16 sps:$4 sm:$0xff]  }
 0x511   : > { %6480 = vmatprep.subr.bf16.mxu0 %v10329_v33  ;;  %6523 = vmatprep.subr.bf16.mxu1 %v10332_v48  ;;  %v10414_v33 = vld [vmem:[%s15189_s5 + $0x5a8] ss:$16 sps:$4 sm:$0xff]   ;;  %v10419_v48 = vld [vmem:[%s15189_s5 + $0x5c4] ss:$16 sps:$4 sm:$0xff]  }
 0x514   : > { %6481 = vmatpush1.bf16.msra.mxu0 %v10327_v58  ;;  %6524 = vmatpush1.bf16.msra.mxu1 %v10330_v39  ;;  %v10422_v58 = vld [vmem:[%s15189_s5 + $0x5cc] ss:$16 sps:$4 sm:$0xff]   ;;  %v10417_v39 = vld [vmem:[%s15189_s5 + $0x5c0] ss:$16 sps:$4 sm:$0xff]  }
 0x515   : > { %6921 = vmatprep.subr.bf16.mxu0 %v10335_v45  ;;  %6964 = vmatprep.subr.bf16.mxu1 %v10338_v56  ;;  %v10420_v45 = vld [vmem:[%s15189_s5 + $0x5c8] ss:$16 sps:$4 sm:$0xff]   ;;  %v10425_v56 = vld [vmem:[%s15189_s5 + $0x5e4] ss:$16 sps:$4 sm:$0xff]  }
 0x517   : > { %6483 = vmatmul.mubr.bf16.vlgmr.msra.gmra.mrb[128].mxu0 %v14433_v2  ;;  %6526 = vmatmul.mubr.bf16.vlgmr.msra.gmra.mrb[128].mxu1 %v14433_v2  ;;  %v10350_v2 = vld [vmem:[%s15189_s5 + $0x44c] ss:$16 sps:$4 sm:$0xff]  }
 0x518   : > { %6922 = vmatpush1.bf16.msra.mxu0 %v10333_v32  ;;  %6953 = vmatprep.mubr.bf16.mxu0 %v14505_v18  ;;  %v10428_v32 = vld [vmem:[%s15189_s5 + $0x5ec] ss:$16 sps:$4 sm:$0xff]  }
 0x519   : > { %6965 = vmatpush1.bf16.msra.mxu1 %v10336_v1  ;;  %6996 = vmatprep.mubr.bf16.mxu1 %v14505_v18  ;;  %v10348_v18 = vld [vmem:[%s15189_s5 + $0x448] ss:$16 sps:$4 sm:$0xff]   ;;  %v10423_v1 = vld [vmem:[%s15189_s5 + $0x5e0] ss:$16 sps:$4 sm:$0xff]  }
 0x51a   : > { %6923 = vmatprep.subr.bf16.mxu0 %v10341_v50  ;;  %6966 = vmatprep.subr.bf16.mxu1 %v10344_v17  ;;  %v10426_v50 = vld [vmem:[%s15189_s5 + $0x5e8] ss:$16 sps:$4 sm:$0xff]   ;;  %v10431_v17 = vld [vmem:[%s15189_s5 + $0x604] ss:$16 sps:$4 sm:$0xff]  }
 0x51c   : > { %6924 = vmatpush1.bf16.msra.mxu0 %v10339_v13  ;;  %v10434_v13 = vld [vmem:[%s15189_s5 + $0x60c] ss:$16 sps:$4 sm:$0xff]  }
 0x51d   : > { %6967 = vmatpush1.bf16.msra.mxu1 %v10342_v10  ;;  %6925 = vmatprep.subr.bf16.mxu0 %v10347_v16  ;;  %v10429_v10 = vld [vmem:[%s15189_s5 + $0x600] ss:$16 sps:$4 sm:$0xff]   ;;  %v10432_v16 = vld [vmem:[%s15189_s5 + $0x608] ss:$16 sps:$4 sm:$0xff]  }
 0x51e   : > { %6968 = vmatprep.subr.bf16.mxu1 %v10350_v2  ;;  %v10437_v2 = vld [vmem:[%s15189_s5 + $0x624] ss:$16 sps:$4 sm:$0xff]  }
 0x520   : > { %6926 = vmatpush1.bf16.msra.mxu0 %v10345_v22  ;;  %v10440_v22 = vld [vmem:[%s15189_s5 + $0x62c] ss:$16 sps:$4 sm:$0xff]  }
 0x521   : > { %6969 = vmatpush1.bf16.msra.mxu1 %v10348_v18  ;;  %6927 = vmatprep.subr.bf16.mxu0 %v10353_v42  ;;  %v10435_v18 = vld [vmem:[%s15189_s5 + $0x620] ss:$16 sps:$4 sm:$0xff]   ;;  %v10438_v42 = vld [vmem:[%s15189_s5 + $0x628] ss:$16 sps:$4 sm:$0xff]  }
 0x522   : > { %6970 = vmatprep.subr.bf16.mxu1 %v10356_v28  ;;  %v10443_v28 = vld [vmem:[%s15189_s5 + $0x644] ss:$16 sps:$4 sm:$0xff]  }
 0x524   : > { %6928 = vmatpush1.bf16.msra.mxu0 %v10351_v47  ;;  %v10441_v47 = vld [vmem:[%s15189_s5 + $0x640] ss:$16 sps:$4 sm:$0xff]  }
 0x525   : > { %6971 = vmatpush1.bf16.msra.mxu1 %v10354_v41  ;;  %6929 = vmatprep.subr.bf16.mxu0 %v10359_v36  ;;  %v10444_v41 = vld [vmem:[%s15189_s5 + $0x648] ss:$16 sps:$4 sm:$0xff]   ;;  %v10452_v36 = vld [vmem:[%s15189_s5 + $0x66c] ss:$16 sps:$4 sm:$0xff]  }
 0x526   : > { %6972 = vmatprep.subr.bf16.mxu1 %v10362_v0  ;;  %v10447_v0 = vld [vmem:[%s15189_s5 + $0x660] ss:$16 sps:$4 sm:$0xff]  }
 0x528   : > { %6930 = vmatpush1.bf16.msra.mxu0 %v10357_v51  ;;  %v10450_v51 = vld [vmem:[%s15189_s5 + $0x668] ss:$16 sps:$4 sm:$0xff]  }
 0x529   : > { %6973 = vmatpush1.bf16.msra.mxu1 %v10360_v15  ;;  %6931 = vmatprep.subr.bf16.mxu0 %v10365_v55  ;;  %v10455_v15 = vld [vmem:[%s15189_s5 + $0x684] ss:$16 sps:$4 sm:$0xff]   ;;  %v10458_v55 = vld [vmem:[%s15189_s5 + $0x68c] ss:$16 sps:$4 sm:$0xff]  }
 0x52a   : > { %6974 = vmatprep.subr.bf16.mxu1 %v10368_v8  ;;  %v10453_v8 = vld [vmem:[%s15189_s5 + $0x680] ss:$16 sps:$4 sm:$0xff]  }
 0x52c   : > { %6932 = vmatpush1.bf16.msra.mxu0 %v10363_v63  ;;  %v10456_v63 = vld [vmem:[%s15189_s5 + $0x688] ss:$16 sps:$4 sm:$0xff]  }
 0x52d   : > { %6975 = vmatpush1.bf16.msra.mxu1 %v10366_v54  ;;  %6933 = vmatprep.subr.bf16.mxu0 %v10371_v9  ;;  %v10461_v54 = vld [vmem:[%s15189_s5 + $0x6a4] ss:$16 sps:$4 sm:$0xff]   ;;  %v10464_v9 = vld [vmem:[%s15189_s5 + $0x6ac] ss:$16 sps:$4 sm:$0xff]  }
 0x52e   : > { %6976 = vmatprep.subr.bf16.mxu1 %v10374_v35  ;;  %v10459_v35 = vld [vmem:[%s15189_s5 + $0x6a0] ss:$16 sps:$4 sm:$0xff]  }
 0x530   : > { %6934 = vmatpush1.bf16.msra.mxu0 %v10369_v29  ;;  %v10462_v29 = vld [vmem:[%s15189_s5 + $0x6a8] ss:$16 sps:$4 sm:$0xff]  }
 0x531   : > { %6977 = vmatpush1.bf16.msra.mxu1 %v10372_v59  ;;  %6935 = vmatprep.subr.bf16.mxu0 %v10377_v31  ;;  %v10467_v59 = vld [vmem:[%s15189_s5 + $0x6c4] ss:$16 sps:$4 sm:$0xff]   ;;  %v10470_v31 = vld [vmem:[%s15189_s5 + $0x6cc] ss:$16 sps:$4 sm:$0xff]  }
 0x532   : > { %6978 = vmatprep.subr.bf16.mxu1 %v10380_v34  ;;  %v10465_v34 = vld [vmem:[%s15189_s5 + $0x6c0] ss:$16 sps:$4 sm:$0xff]  }
 0x534   : > { %6936 = vmatpush1.bf16.msra.mxu0 %v10375_v4  ;;  %v10468_v4 = vld [vmem:[%s15189_s5 + $0x6c8] ss:$16 sps:$4 sm:$0xff]  }
 0x535   : > { %6979 = vmatpush1.bf16.msra.mxu1 %v10378_v44  ;;  %6937 = vmatprep.subr.bf16.mxu0 %v10383_v6  ;;  %v10473_v44 = vld [vmem:[%s15189_s5 + $0x6e4] ss:$16 sps:$4 sm:$0xff]   ;;  %v10476_v6 = vld [vmem:[%s15189_s5 + $0x6ec] ss:$16 sps:$4 sm:$0xff]  }
 0x536   : > { %6980 = vmatprep.subr.bf16.mxu1 %v10386_v62  ;;  %v10471_v62 = vld [vmem:[%s15189_s5 + $0x6e0] ss:$16 sps:$4 sm:$0xff]  }
 0x538   : > { %6938 = vmatpush1.bf16.msra.mxu0 %v10381_v53  ;;  %v10474_v53 = vld [vmem:[%s15189_s5 + $0x6e8] ss:$16 sps:$4 sm:$0xff]  }
 0x539   : > { %6981 = vmatpush1.bf16.msra.mxu1 %v10384_v24  ;;  %6939 = vmatprep.subr.bf16.mxu0 %v10389_v25  ;;  %v10479_v24 = vld [vmem:[%s15189_s5 + $0x704] ss:$16 sps:$4 sm:$0xff]   ;;  %v10482_v25 = vld [vmem:[%s15189_s5 + $0x70c] ss:$16 sps:$4 sm:$0xff]  }
 0x53a   : > { %6982 = vmatprep.subr.bf16.mxu1 %v10392_v46  ;;  %v10477_v46 = vld [vmem:[%s15189_s5 + $0x700] ss:$16 sps:$4 sm:$0xff]  }
 0x53c   : > { %6940 = vmatpush1.bf16.msra.mxu0 %v10387_v49  ;;  %v10480_v49 = vld [vmem:[%s15189_s5 + $0x708] ss:$16 sps:$4 sm:$0xff]  }
 0x53d   : > { %6983 = vmatpush1.bf16.msra.mxu1 %v10390_v21  ;;  %6941 = vmatprep.subr.bf16.mxu0 %v10395_v7  ;;  %v10485_v21 = vld [vmem:[%s15189_s5 + $0x724] ss:$16 sps:$4 sm:$0xff]   ;;  %v10488_v7 = vld [vmem:[%s15189_s5 + $0x72c] ss:$16 sps:$4 sm:$0xff]  }
 0x53e   : > { %6984 = vmatprep.subr.bf16.mxu1 %v10398_v38  ;;  %v10483_v38 = vld [vmem:[%s15189_s5 + $0x720] ss:$16 sps:$4 sm:$0xff]  }
 0x540   : > { %6942 = vmatpush1.bf16.msra.mxu0 %v10393_v5  ;;  %v10486_v5 = vld [vmem:[%s15189_s5 + $0x728] ss:$16 sps:$4 sm:$0xff]  }
 0x541   : > { %6985 = vmatpush1.bf16.msra.mxu1 %v10396_v12  ;;  %6943 = vmatprep.subr.bf16.mxu0 %v10401_v11  ;;  %v10491_v12 = vld [vmem:[%s15189_s5 + $0x744] ss:$16 sps:$4 sm:$0xff]   ;;  %v10494_v11 = vld [vmem:[%s15189_s5 + $0x74c] ss:$16 sps:$4 sm:$0xff]  }
 0x542   : > { %6986 = vmatprep.subr.bf16.mxu1 %v10404_v40  ;;  %v10489_v40 = vld [vmem:[%s15189_s5 + $0x740] ss:$16 sps:$4 sm:$0xff]  }
 0x544   : > { %6944 = vmatpush1.bf16.msra.mxu0 %v10399_v61  ;;  %v10492_v61 = vld [vmem:[%s15189_s5 + $0x748] ss:$16 sps:$4 sm:$0xff]  }
 0x545   : > { %6987 = vmatpush1.bf16.msra.mxu1 %v10402_v20  ;;  %6945 = vmatprep.subr.bf16.mxu0 %v10407_v23  ;;  %v10497_v20 = vld [vmem:[%s15189_s5 + $0x764] ss:$16 sps:$4 sm:$0xff]   ;;  %v10500_v23 = vld [vmem:[%s15189_s5 + $0x76c] ss:$16 sps:$4 sm:$0xff]  }
 0x546   : > { %6988 = vmatprep.subr.bf16.mxu1 %v10410_v14  ;;  %v10495_v14 = vld [vmem:[%s15189_s5 + $0x760] ss:$16 sps:$4 sm:$0xff]  }
 0x548   : > { %6946 = vmatpush1.bf16.msra.mxu0 %v10405_v43  ;;  %v10498_v43 = vld [vmem:[%s15189_s5 + $0x768] ss:$16 sps:$4 sm:$0xff]  }
 0x549   : > { %6989 = vmatpush1.bf16.msra.mxu1 %v10408_v57  ;;  %6947 = vmatprep.subr.bf16.mxu0 %v10413_v30  ;;  %v10503_v57 = vld [vmem:[%s15189_s5 + $0x784] ss:$16 sps:$4 sm:$0xff]   ;;  %v10506_v30 = vld [vmem:[%s15189_s5 + $0x78c] ss:$16 sps:$4 sm:$0xff]  }
 0x54a   : > { %6990 = vmatprep.subr.bf16.mxu1 %v10416_v27  ;;  %v10501_v27 = vld [vmem:[%s15189_s5 + $0x780] ss:$16 sps:$4 sm:$0xff]  }
 0x54c   : > { %6948 = vmatpush1.bf16.msra.mxu0 %v10411_v60  ;;  %v10504_v60 = vld [vmem:[%s15189_s5 + $0x788] ss:$16 sps:$4 sm:$0xff]  }
 0x54d   : > { %6991 = vmatpush1.bf16.msra.mxu1 %v10414_v33  ;;  %6949 = vmatprep.subr.bf16.mxu0 %v10419_v48  ;;  %v10509_v33 = vld [vmem:[%s15189_s5 + $0x7a4] ss:$16 sps:$4 sm:$0xff]   ;;  %v10512_v48 = vld [vmem:[%s15189_s5 + $0x7ac] ss:$16 sps:$4 sm:$0xff]  }
 0x54e   : > { %6992 = vmatprep.subr.bf16.mxu1 %v10422_v58  ;;  %v10507_v58 = vld [vmem:[%s15189_s5 + $0x7a0] ss:$16 sps:$4 sm:$0xff]  }
 0x550   : > { %6950 = vmatpush1.bf16.msra.mxu0 %v10417_v39  ;;  %v10510_v39 = vld [vmem:[%s15189_s5 + $0x7a8] ss:$16 sps:$4 sm:$0xff]  }
 0x551   : > { %6993 = vmatpush1.bf16.msra.mxu1 %v10420_v45  ;;  %6951 = vmatprep.subr.bf16.mxu0 %v10425_v56  ;;  %v10515_v45 = vld [vmem:[%s15189_s5 + $0x7c4] ss:$16 sps:$4 sm:$0xff]   ;;  %v10518_v56 = vld [vmem:[%s15189_s5 + $0x7cc] ss:$16 sps:$4 sm:$0xff]  }
 0x552   : > { %6994 = vmatprep.subr.bf16.mxu1 %v10428_v32  ;;  %v10513_v32 = vld [vmem:[%s15189_s5 + $0x7c0] ss:$16 sps:$4 sm:$0xff]  }
 0x554   : > { %6952 = vmatpush1.bf16.msra.mxu0 %v10423_v1  ;;  %v10516_v1 = vld [vmem:[%s15189_s5 + $0x7c8] ss:$16 sps:$4 sm:$0xff]  }
 0x555   : > { %6995 = vmatpush1.bf16.msra.mxu1 %v10426_v50  ;;  %7400 = vmatprep.subr.bf16.mxu0 %v10431_v17  ;;  %v10521_v50 = vld [vmem:[%s15189_s5 + $0x7e4] ss:$16 sps:$4 sm:$0xff]   ;;  %v10524_v17 = vld [vmem:[%s15189_s5 + $0x7ec] ss:$16 sps:$4 sm:$0xff]  }
 0x556   : > { %7443 = vmatprep.subr.bf16.mxu1 %v10434_v13  ;;  %v10519_v13 = vld [vmem:[%s15189_s5 + $0x7e0] ss:$16 sps:$4 sm:$0xff]  }
 0x557   : > { %6954 = vmatmul.mubr.bf16.vlgmr.msra.gmra.mrb[128].mxu0 %v14491_v37 }
 0x558   : > { %6997 = vmatmul.mubr.bf16.vlgmr.msra.gmra.mrb[128].mxu1 %v14491_v37  ;;  %7401 = vmatpush1.bf16.msra.mxu0 %v10429_v10  ;;  %v10446_v37 = vld [vmem:[%s15189_s5 + $0x64c] ss:$16 sps:$4 sm:$0xff]   ;;  %v10522_v10 = vld [vmem:[%s15189_s5 + $0x7e8] ss:$16 sps:$4 sm:$0xff]  }
 0x559   : > { %7432 = vmatprep.mubr.bf16.mxu0 %v14543_v52  ;;  %7444 = vmatpush1.bf16.msra.mxu1 %v10432_v16  ;;  %v10525_v16 = vld [vmem:[%s15191_s7 + $0x40] sm:$0xff]  }
 0x55a   : > { %7475 = vmatprep.mubr.bf16.mxu1 %v14543_v52  ;;  %7402 = vmatprep.subr.bf16.mxu0 %v10437_v2  ;;  %v10449_v52 = vld [vmem:[%s15189_s5 + $0x664] ss:$16 sps:$4 sm:$0xff]  }
 0x55b   : > { %7445 = vmatprep.subr.bf16.mxu1 %v10440_v22  ;;  %v10526_v2 = vld [vmem:[%s15191_s7 + $0xc0] sm:$0xff]  }
 0x55c   : > { %7403 = vmatpush1.bf16.msra.mxu0 %v10435_v18  ;;  %v10527_v22 = vld [vmem:[%s15191_s7] sm:$0xff]  }
 0x55d   : > { %7446 = vmatpush1.bf16.msra.mxu1 %v10438_v42  ;;  %7404 = vmatprep.subr.bf16.mxu0 %v10443_v28  ;;  %v10528_v18 = vld [vmem:[%s15191_s7 + $0x80] sm:$0xff]   ;;  %v10529_v42 = vld [vmem:[%s15191_s7 + $0x48] sm:$0xff]  }
 0x55e   : > { %7447 = vmatprep.subr.bf16.mxu1 %v10446_v37  ;;  %v10530_v28 = vld [vmem:[%s15191_s7 + $0xc8] sm:$0xff]  }
 0x55f   : > { %v10531_v37 = vld [vmem:[%s15191_s7 + $0x8] sm:$0xff]  }
 0x560   : > { %7405 = vmatpush1.bf16.msra.mxu0 %v10441_v47  ;;  %v10532_v47 = vld [vmem:[%s15191_s7 + $0x88] sm:$0xff]  }
 0x561   : > { %7448 = vmatpush1.bf16.msra.mxu1 %v10444_v41  ;;  %7406 = vmatprep.subr.bf16.mxu0 %v10449_v52  ;;  %v10533_v41 = vld [vmem:[%s15191_s7 + $0x50] sm:$0xff]  }
 0x562   : > { %7449 = vmatprep.subr.bf16.mxu1 %v10452_v36  ;;  %v10535_v52 = vld [vmem:[%s15191_s7 + $0x10] sm:$0xff]  }
 0x563   : > { %v10536_v36 = vld [vmem:[%s15191_s7 + $0x90] sm:$0xff]  }
 0x564   : > { %7407 = vmatpush1.bf16.msra.mxu0 %v10447_v0  ;;  %v10537_v0 = vld [vmem:[%s15191_s7 + $0x58] sm:$0xff]  }
 0x565   : > { %7450 = vmatpush1.bf16.msra.mxu1 %v10450_v51  ;;  %7408 = vmatprep.subr.bf16.mxu0 %v10455_v15  ;;  %v10538_v51 = vld [vmem:[%s15191_s7 + $0xd8] sm:$0xff]  }
 0x566   : > { %7451 = vmatprep.subr.bf16.mxu1 %v10458_v55  ;;  %v10539_v15 = vld [vmem:[%s15191_s7 + $0x18] sm:$0xff]  }
 0x567   : > { %v10540_v55 = vld [vmem:[%s15191_s7 + $0x98] sm:$0xff]  }
 0x568   : > { %7409 = vmatpush1.bf16.msra.mxu0 %v10453_v8  ;;  %v10541_v8 = vld [vmem:[%s15191_s7 + $0x60] sm:$0xff]  }
 0x569   : > { %7452 = vmatpush1.bf16.msra.mxu1 %v10456_v63  ;;  %7410 = vmatprep.subr.bf16.mxu0 %v10461_v54  ;;  %v10542_v63 = vld [vmem:[%s15191_s7 + $0xe0] sm:$0xff]  }
 0x56a   : > { %7453 = vmatprep.subr.bf16.mxu1 %v10464_v9  ;;  %v10543_v54 = vld [vmem:[%s15191_s7 + $0x20] sm:$0xff]  }
 0x56b   : > { %v10544_v9 = vld [vmem:[%s15191_s7 + $0xa0] sm:$0xff]  }
 0x56c   : > { %7411 = vmatpush1.bf16.msra.mxu0 %v10459_v35  ;;  %v10545_v35 = vld [vmem:[%s15191_s7 + $0x68] sm:$0xff]  }
 0x56d   : > { %7454 = vmatpush1.bf16.msra.mxu1 %v10462_v29  ;;  %7412 = vmatprep.subr.bf16.mxu0 %v10467_v59  ;;  %v10546_v29 = vld [vmem:[%s15191_s7 + $0xe8] sm:$0xff]  }
 0x56e   : > { %7455 = vmatprep.subr.bf16.mxu1 %v10470_v31  ;;  %v10547_v59 = vld [vmem:[%s15191_s7 + $0x28] sm:$0xff]  }
 0x56f   : > { %v10548_v31 = vld [vmem:[%s15191_s7 + $0xa8] sm:$0xff]  }
 0x570   : > { %7413 = vmatpush1.bf16.msra.mxu0 %v10465_v34  ;;  %v10549_v34 = vld [vmem:[%s15191_s7 + $0x70] sm:$0xff]  }
 0x571   : > { %7456 = vmatpush1.bf16.msra.mxu1 %v10468_v4  ;;  %7414 = vmatprep.subr.bf16.mxu0 %v10473_v44  ;;  %v10550_v4 = vld [vmem:[%s15191_s7 + $0xf0] sm:$0xff]  }
 0x572   : > { %7457 = vmatprep.subr.bf16.mxu1 %v10476_v6  ;;  %v10551_v44 = vld [vmem:[%s15191_s7 + $0x30] sm:$0xff]  }
 0x573   : > { %v10552_v6 = vld [vmem:[%s15191_s7 + $0xb0] sm:$0xff]  }
 0x574   : > { %7415 = vmatpush1.bf16.msra.mxu0 %v10471_v62  ;;  %v10553_v62 = vld [vmem:[%s15191_s7 + $0x78] sm:$0xff]  }
 0x575   : > { %7458 = vmatpush1.bf16.msra.mxu1 %v10474_v53  ;;  %7416 = vmatprep.subr.bf16.mxu0 %v10479_v24  ;;  %v10554_v53 = vld [vmem:[%s15191_s7 + $0xf8] sm:$0xff]  }
 0x576   : > { %7459 = vmatprep.subr.bf16.mxu1 %v10482_v25  ;;  %v10555_v24 = vld [vmem:[%s15191_s7 + $0x38] sm:$0xff]  }
 0x577   : > { %v10556_v25 = vld [vmem:[%s15191_s7 + $0xb8] sm:$0xff]  }
 0x578   : > { %7417 = vmatpush1.bf16.msra.mxu0 %v10477_v46  ;;  %v7494_v46 = vld [vmem:[%s15190_s6] sm:$0xf] }
 0x579   : > { %7460 = vmatpush1.bf16.msra.mxu1 %v10480_v49  ;;  %7418 = vmatprep.subr.bf16.mxu0 %v10485_v21  ;;  %v15460_v49 = vld [vmem:[#allocation2_spill] sm:$0xff] }
 0x57a   : > { %7461 = vmatprep.subr.bf16.mxu1 %v10488_v7  ;;  %v7506_v21 = vsub.s32 2, %v15460_v49  ;;  %v7510_v7 = vsub.s32 3, %v15460_v49 }
 0x57c   : > { %7419 = vmatpush1.bf16.msra.mxu0 %v10483_v38  ;;  %v7499_v38 = vrot.slane %v7494_v46, %v15416_v26 }
 0x57d   : > { %7462 = vmatpush1.bf16.msra.mxu1 %v10486_v5  ;;  %7420 = vmatprep.subr.bf16.mxu0 %v10491_v12  ;;  %v7507_v5 = vrot.slane %v7494_v46, %v7506_v21  ;;  %v7503_v12 = vrot.slane %v7494_v46, %v15417_v19 }
 0x57e   : > { %7463 = vmatprep.subr.bf16.mxu1 %v10494_v11  ;;  %v7511_v11 = vrot.slane %v7494_v46, %v7510_v7 }
 0x580   : > { %7421 = vmatpush1.bf16.msra.mxu0 %v10489_v40 }
 0x581   : > { %7464 = vmatpush1.bf16.msra.mxu1 %v10492_v61  ;;  %7422 = vmatprep.subr.bf16.mxu0 %v10497_v20 }
 0x582   : > { %7465 = vmatprep.subr.bf16.mxu1 %v10500_v23 }
 0x584   : > { %7423 = vmatpush1.bf16.msra.mxu0 %v10495_v14 }
 0x585   : > { %7466 = vmatpush1.bf16.msra.mxu1 %v10498_v43  ;;  %7424 = vmatprep.subr.bf16.mxu0 %v10503_v57 }
 0x586   : > { %7467 = vmatprep.subr.bf16.mxu1 %v10506_v30 }
 0x588   : > { %7425 = vmatpush1.bf16.msra.mxu0 %v10501_v27 }
 0x589   : > { %7468 = vmatpush1.bf16.msra.mxu1 %v10504_v60  ;;  %7426 = vmatprep.subr.bf16.mxu0 %v10509_v33 }
 0x58a   : > { %7469 = vmatprep.subr.bf16.mxu1 %v10512_v48 }
 0x58c   : > { %7427 = vmatpush1.bf16.msra.mxu0 %v10507_v58 }
 0x58d   : > { %7470 = vmatpush1.bf16.msra.mxu1 %v10510_v39  ;;  %7428 = vmatprep.subr.bf16.mxu0 %v10515_v45 }
 0x58e   : > { %7471 = vmatprep.subr.bf16.mxu1 %v10518_v56 }
 0x590   : > { %7429 = vmatpush1.bf16.msra.mxu0 %v10513_v32 }
 0x591   : > { %7472 = vmatpush1.bf16.msra.mxu1 %v10516_v1  ;;  %7430 = vmatprep.subr.bf16.mxu0 %v10521_v50 }
 0x592   : > { %7473 = vmatprep.subr.bf16.mxu1 %v10524_v17 }
 0x594   : > { %7431 = vmatpush1.bf16.msra.mxu0 %v10519_v13 }
 0x595   : > { %7474 = vmatpush1.bf16.msra.mxu1 %v10522_v10  ;;  %9202 = vmatprep.subr.bf16.mxu0 %v10525_v16 }
 0x596   : > { %9224 = vmatprep.subr.bf16.mxu1 %v10526_v2 }
 0x597   : > { %7433 = vmatmul.mubr.bf16.vlgmr.msra.gmra.mrb[128].mxu0 %v14535_v3 }
 0x598   : > { %7476 = vmatmul.mubr.bf16.vlgmr.msra.gmra.mrb[128].mxu1 %v14535_v3  ;;  %9203 = vmatpush3.bf16.msra.mxu0 %v10527_v22  ;;  %v10534_v3 = vld [vmem:[%s15191_s7 + $0xd0] sm:$0xff]  }
 0x599   : > { %9225 = vmatpush3.bf16.msra.mxu1 %v10528_v18  ;;  %9204 = vmatprep.subr.bf16.mxu0 %v10529_v42 }
 0x59a   : > { %9226 = vmatprep.subr.bf16.mxu1 %v10530_v28 }
 0x59c   : > { %9205 = vmatpush3.bf16.msra.mxu0 %v10531_v37  ;;  %v9166_v37 = vld [vmem:[%s15192_s8] ss:$0 sm:$0xff] }
 0x59d   : > { %9227 = vmatpush3.bf16.msra.mxu1 %v10532_v47  ;;  %9206 = vmatprep.subr.bf16.mxu0 %v10533_v41 }
 0x59e   : > { %9228 = vmatprep.subr.bf16.mxu1 %v10534_v3 }
 0x5a0   : > { %9207 = vmatpush3.bf16.msra.mxu0 %v10535_v52 }
 0x5a1   : > { %9229 = vmatpush3.bf16.msra.mxu1 %v10536_v36  ;;  %9208 = vmatprep.subr.bf16.mxu0 %v10537_v0 }
 0x5a2   : > { %9230 = vmatprep.subr.bf16.mxu1 %v10538_v51 }
 0x5a4   : > { %9209 = vmatpush3.bf16.msra.mxu0 %v10539_v15 }
 0x5a5   : > { %9231 = vmatpush3.bf16.msra.mxu1 %v10540_v55  ;;  %9210 = vmatprep.subr.bf16.mxu0 %v10541_v8 }
 0x5a6   : > { %9232 = vmatprep.subr.bf16.mxu1 %v10542_v63 }
 0x5a8   : > { %9211 = vmatpush3.bf16.msra.mxu0 %v10543_v54 }
 0x5a9   : > { %9233 = vmatpush3.bf16.msra.mxu1 %v10544_v9  ;;  %9212 = vmatprep.subr.bf16.mxu0 %v10545_v35 }
 0x5aa   : > { %9234 = vmatprep.subr.bf16.mxu1 %v10546_v29 }
 0x5ac   : > { %9213 = vmatpush3.bf16.msra.mxu0 %v10547_v59 }
 0x5ad   : > { %9235 = vmatpush3.bf16.msra.mxu1 %v10548_v31  ;;  %9214 = vmatprep.subr.bf16.mxu0 %v10549_v34 }
 0x5ae   : > { %9236 = vmatprep.subr.bf16.mxu1 %v10550_v4 }
 0x5b0   : > { %9215 = vmatpush3.bf16.msra.mxu0 %v10551_v44 }
 0x5b1   : > { %9237 = vmatpush3.bf16.msra.mxu1 %v10552_v6  ;;  %9216 = vmatprep.subr.bf16.mxu0 %v10553_v62 }
 0x5b2   : > { %9238 = vmatprep.subr.bf16.mxu1 %v10554_v53 }
 0x5b4   : > { %9217 = vmatpush3.bf16.msra.mxu0 %v10555_v24 }
 0x5b5   : > { %9239 = vmatpush3.bf16.msra.mxu1 %v10556_v25 }
 0x66a   : > { %v7434_v40 = vpop.f32.mrb[128].mxu0 }
 0x66b   : > { %v7516_v61 = vadd.f32 %v7499_v38, %v7434_v40  ;;  %v7477_v20 = vpop.f32.mrb[128].mxu1  ;;  %v7436_v23 = vpop.f32.mrb[129].mxu0 }
 0x66c   : > { %v7518_v14 = vadd.f32 %v7507_v5, %v7477_v20  ;;  %v7517_v43 = vadd.f32 %v7503_v12, %v7436_v23  ;;  %v7479_v57 = vpop.f32.mrb[129].mxu1  ;;  %v7438_v30 = vpop.f32.mrb[130].mxu0 }
 0x66d   : > { %v7519_v27 = vadd.f32 %v7511_v11, %v7479_v57  ;;  %v7520_v60 = vadd.f32 %v7499_v38, %v7438_v30  ;;  %v7481_v33 = vpop.f32.mrb[130].mxu1  ;;  %v7440_v48 = vpop.f32.mrb[131].mxu0  ;;  %v7524_v26 = vmax.f32 %v7516_v61, 0.0 }
 0x66e   : > { %v7522_v58 = vadd.f32 %v7507_v5, %v7481_v33  ;;  %v7521_v39 = vadd.f32 %v7503_v12, %v7440_v48  ;;  %v7483_v45 = vpop.f32.mrb[131].mxu1  ;;  %v7526_v19 = vmax.f32 %v7518_v14, 0.0  ;;  %v7525_v1 = vmax.f32 %v7517_v43, 0.0 }
 0x66f   : > { %v7528_v56 = vmax.f32 %v7520_v60, 0.0  ;;  %v7523_v32 = vadd.f32 %v7511_v11, %v7483_v45  ;;  %v7527_v13 = vmax.f32 %v7519_v27, 0.0 }
 0x670   : > { %v7530_v50 = vmax.f32 %v7522_v58, 0.0  ;;  %v7529_v17 = vmax.f32 %v7521_v39, 0.0 }
 0x671   : > { %v7532_v10 = vpack.c.bf16 %v7528_v56, %v7524_v26  ;;  %v7531_v16 = vmax.f32 %v7523_v32, 0.0 }
 0x672   : > { %v7534_v2 = vpack.c.bf16 %v7530_v50, %v7526_v19  ;;  %v7533_v22 = vpack.c.bf16 %v7529_v17, %v7525_v1 }
 0x673   : > { %v7535_v18 = vpack.c.bf16 %v7531_v16, %v7527_v13 }
 0x674   : > { %7831 = vmatprep.mubr.bf16.mxu0 %v7533_v22 }
 0x675   : > { %7872 = vmatprep.mubr.bf16.mxu1 %v7535_v18  ;;  %7832 = vmatmul.mubr.bf16.vlgmr.msra.gmra.mrb[132].mxu0 %v7532_v10 }
 0x676   : > { %7873 = vmatmul.mubr.bf16.vlgmr.msra.gmra.mrb[132].mxu1 %v7534_v2 }
 0x748   : > { %v9218_v42 = vpop.f32.mrb[132].mxu0 }
 0x749   : > { %v9240_v28 = vpop.f32.mrb[132].mxu1  ;;  %v9219_v47 = vpop.f32.mrb[133].mxu0 }
 0x74a   : > { %v9220_v41 = vadd.f32 %v9219_v47, %v9218_v42  ;;  %v9241_v3 = vpop.f32.mrb[133].mxu1  ;;  %v9221_v52 = vpop.f32.mrb[134].mxu0 }
 0x74b   : > { %v9242_v36 = vadd.f32 %v9241_v3, %v9240_v28  ;;  %v9243_v0 = vpop.f32.mrb[134].mxu1  ;;  %v9222_v51 = vpop.f32.mrb[135].mxu0 }
 0x74c   : > { %v7834_v15 = vadd.f32 %v9220_v41, %v9166_v37  ;;  %v9223_v55 = vadd.f32 %v9222_v51, %v9221_v52  ;;  %v9244_v8 = vpop.f32.mrb[135].mxu1 }
 0x74d   : > { %v9245_v63 = vadd.f32 %v9244_v8, %v9243_v0 }
 0x74e   : > { %v7837_v54 = vadd.f32 %v9223_v55, %v9166_v37  ;;  %v7875_v9 = vadd.f32 %v9242_v36, %v7834_v15 }
 0x750   : > { %7881 = vmax.xlane.f32.xlu0 %v7875_v9  ;;  %v7878_v35 = vadd.f32 %v9245_v63, %v7837_v54 }
 0x754   : > { %7883 = vmax.xlane.f32.xlu0 %v7878_v35 }
 0x7dd   : > { %v7882_v29 = vpop.xlane.xlu0 %7881 }
 0x7de   : > { %v7885_v59 = vsub.f32 %v7875_v9, %v7882_v29 }
 0x7e0   : > { %v7887_v31 = vmul.f32 1.442695, %v7885_v59 }
 0x7e1   : > { %v7884_v34 = vpop.xlane.xlu0 %7883 }
 0x7e2   : > { %v7886_v4 = vsub.f32 %v7878_v35, %v7884_v34  ;;  %10557 = vpow2.f32 %v7887_v31 }
 0x7e4   : > { %v7889_v44 = vmul.f32 1.442695, %v7886_v4 }
 0x7e6   : > { %10559 = vpow2.f32 %v7889_v44 }
 0x7ec   : > { %v10558_v6 = vpop.eup %10557 }
 0x7ed   : > { %7891 = vadd.xlane.f32.xlu1 %v10558_v6 }
 0x7f0   : > { %v10560_v62 = vpop.eup %10559 }
 0x7f1   : > { %7893 = vadd.xlane.f32.xlu1 %v10560_v62 }
 0x87a   : > { %v7892_v53 = vpop.xlane.xlu1 %7891 }
 0x87b   : > { %10561 = vlog2.f32 %v7892_v53 }
 0x87e   : > { %v7894_v24 = vpop.xlane.xlu1 %7893 }
 0x87f   : > { %10563 = vlog2.f32 %v7894_v24 }
 0x885   : > { %v10562_v25 = vpop.eup %10561 }
 0x886   : > { %v7896_v46 = vmul.f32 0.6931472, %v10562_v25 }
 0x888   : > { %v7899_v49 = vsub.f32 %v7885_v59, %v7896_v46 }
 0x889   : > { %v10564_v21 = vpop.eup %10563 }
 0x88a   : > { %7901 = vst [vmem:[%s332_s25] sm:$0xff] %v7899_v49  ;;  %v7898_v7 = vmul.f32 0.6931472, %v10564_v21 }
 0x88c   : > { %v7900_v38 = vsub.f32 %v7886_v4, %v7898_v7 }
 0x88e   : > { %7902 = vst [vmem:[%s332_s25 + $0x8] sm:$0xff] %v7900_v38 }
 0x88f PF: > { %s19_s30 = sadd.s32 1, %s10865_s30  }
 0x890   : > { %p16_p4 = scmp.ge.s32.totalorder %s19_s30, 6  }
 0x892   :  { %18 = sbr.rel (!%p16_p4) target bundleno = 1 (0x1), region = 96 }

</bundles_post_ra>
